<compile_context>
chip_gen: v5e
topology: v5e:2x2
jax: 0.10.0
libtpu: 0.0.40
codegen_flags: <defaults>
</compile_context>

<pallas_src>
import functools

import numpy as np
import jax
import jax.numpy as jnp
from jax.experimental import pallas as pl
from jax.experimental.pallas import tpu as pltpu


# ----------------------------- fused kernel -----------------------------

def _net_kernel(x_ref, a1_ref, bb1_ref, b2_ref, bb2_ref,
                fw1_ref, fb1_ref, fw2_ref, fb2_ref, o_ref, *, tb):
    f32 = jnp.float32
    x = x_ref[...]                                     # (28*tb, 28), row = h*tb + b

    # conv1 (1->10, k=5) + bias + ReLU: 5 MXU dots against Toeplitz weights.
    acc = None
    for ki in range(5):
        lhs = x[ki * tb:(ki + 24) * tb, :]             # rows h = oh + ki (8-aligned slice)
        t = jnp.dot(lhs, a1_ref[ki], preferred_element_type=f32)
        acc = t if acc is None else acc + t
    h1 = jnp.maximum(acc + bb1_ref[...], 0.0)          # (24*tb, 256), col = pw*128+owp*10+co

    # 2x2 max-pool, fused in VMEM: W = max of lane halves, H = max of row groups.
    hw = jnp.maximum(h1[:, :128], h1[:, 128:])         # (24*tb, 128)
    hh = hw.reshape(12, 2 * tb, 128)
    p1 = jnp.maximum(hh[:, :tb, :], hh[:, tb:, :]).reshape(12 * tb, 128)

    # conv2 (10->20, k=5) + bias + ReLU.
    acc = None
    for ki in range(5):
        lhs = p1[ki * tb:(ki + 8) * tb, :]
        t = jnp.dot(lhs, b2_ref[ki], preferred_element_type=f32)
        acc = t if acc is None else acc + t
    h2 = jnp.maximum(acc + bb2_ref[...], 0.0)          # (8*tb, 256)

    # 2x2 max-pool.
    qw = jnp.maximum(h2[:, :128], h2[:, 128:])         # (8*tb, 128)
    qh = qw.reshape(4, 2 * tb, 128)
    q = jnp.maximum(qh[:, :tb, :], qh[:, tb:, :])      # (4, tb, 128)

    # fc1 (320->50, NCHW flatten folded into fw1) + fc2 (50->10).
    y1 = fb1_ref[...]                                  # (1, 50)
    for r in range(4):
        y1 = y1 + jnp.dot(q[r], fw1_ref[r], preferred_element_type=f32)
    out = jnp.dot(y1, fw2_ref[...], preferred_element_type=f32) + fb2_ref[...]
    o_ref[...] = out.astype(o_ref.dtype)


# ------------------------- weight preprocessing -------------------------

def _prep_params(params):
    f32 = jnp.float32
    w1 = params["w1"].astype(f32)    # (10, 1, 5, 5)
    b1 = params["b1"].astype(f32)    # (10,)
    w2 = params["w2"].astype(f32)    # (20, 10, 5, 5)
    b2 = params["b2"].astype(f32)    # (20,)
    fw1 = params["fw1"].astype(f32)  # (50, 320)
    fb1 = params["fb1"].astype(f32)  # (50,)
    fw2 = params["fw2"].astype(f32)  # (10, 50)
    fb2 = params["fb2"].astype(f32)  # (10,)

    # conv1 -> A1[ki] in (28, 256); output column = pw*128 + owp*10 + co, ow = 2*owp + pw.
    ki, kj, owp, pw, co = np.meshgrid(np.arange(5), np.arange(5), np.arange(12),
                                      np.arange(2), np.arange(10), indexing="ij")
    w_in = 2 * owp + pw + kj
    col = pw * 128 + owp * 10 + co
    a1 = jnp.zeros((5, 28, 256), f32).at[ki, w_in, col].set(w1[co, 0, ki, kj])

    t1 = jnp.tile(b1, 12)                              # (120,)
    bb1 = jnp.zeros((256,), f32).at[0:120].set(t1).at[128:248].set(t1).reshape(1, 256)

    # conv2 -> B2[ki] in (128, 256); in row = owp_in*10 + ci, out col = pw2*128 + owp2*20 + co2.
    ki, kj, ci, owp2, pw2, co2 = np.meshgrid(
        np.arange(5), np.arange(5), np.arange(10), np.arange(4), np.arange(2),
        np.arange(20), indexing="ij")
    row = (2 * owp2 + pw2 + kj) * 10 + ci
    col = pw2 * 128 + owp2 * 20 + co2
    b2m = jnp.zeros((5, 128, 256), f32).at[ki, row, col].set(w2[co2, ci, ki, kj])

    t2 = jnp.tile(b2, 4)                               # (80,)
    bb2 = jnp.zeros((256,), f32).at[0:80].set(t2).at[128:208].set(t2).reshape(1, 256)

    # fc1: fold torch's NCHW flatten (f = c*16 + r*4 + w) into the weight.
    w1fc = fw1.reshape(50, 20, 4, 4)                   # (j, c, r, w)
    w1fc = jnp.transpose(w1fc, (2, 3, 1, 0)).reshape(4, 80, 50)   # (r, w*20 + c, j)
    fw1m = jnp.zeros((4, 128, 50), f32).at[:, :80, :].set(w1fc)

    return (a1, bb1, b2m, bb2, fw1m, fb1.reshape(1, 50), fw2.T, fb2.reshape(1, 10))


# ------------------------------- wrapper -------------------------------

def net_forward(x_nchw, params, *, tile_b=8):
    assert tile_b % 8 == 0
    B = x_nchw.shape[0]
    assert x_nchw.shape[1:] == (1, 28, 28), "Net requires (B, 1, 28, 28) inputs"
    tb = tile_b
    G = (B + tb - 1) // tb
    Bp = G * tb

    x = x_nchw.reshape(B, 28, 28).astype(jnp.float32)
    if Bp != B:
        x = jnp.concatenate([x, jnp.zeros((Bp - B, 28, 28), jnp.float32)], axis=0)
    # Rows ordered (g, h, b): each grid step sees a (28*tb, 28) tile, row = h*tb + b.
    xk = x.reshape(G, tb, 28, 28).transpose(0, 2, 1, 3).reshape(G * 28 * tb, 28)

    a1, bb1, b2m, bb2, fw1m, fb1m, fw2m, fb2m = _prep_params(params)

    flops = G * 2 * (5 * 24 * tb * 28 * 256 + 5 * 8 * tb * 128 * 256
                     + 4 * tb * 128 * 50 + tb * 50 * 10)
    bytes_accessed = 4 * (xk.size + a1.size + bb1.size + b2m.size + bb2.size
                          + fw1m.size + fb1m.size + fw2m.size + fb2m.size + Bp * 10)

    const3 = lambda g: (0, 0, 0)
    const2 = lambda g: (0, 0)
    out = pl.pallas_call(
        functools.partial(_net_kernel, tb=tb),
        out_shape=jax.ShapeDtypeStruct((Bp, 10), jnp.float32),
        grid=(G,),
        in_specs=[
            pl.BlockSpec((28 * tb, 28), lambda g: (g, 0)),   # streamed input tile
            pl.BlockSpec((5, 28, 256), const3),              # resident weights below
            pl.BlockSpec((1, 256), const2),
            pl.BlockSpec((5, 128, 256), const3),
            pl.BlockSpec((1, 256), const2),
            pl.BlockSpec((4, 128, 50), const3),
            pl.BlockSpec((1, 50), const2),
            pl.BlockSpec((50, 10), const2),
            pl.BlockSpec((1, 10), const2),
        ],
        out_specs=pl.BlockSpec((tb, 10), lambda g: (g, 0)),
        compiler_params=pltpu.CompilerParams(dimension_semantics=("parallel",)),
        cost_estimate=pl.CostEstimate(flops=flops, transcendentals=0,
                                      bytes_accessed=bytes_accessed),
    )(xk, a1, bb1, b2m, bb2, fw1m, fb1m, fw2m, fb2m)
    return out[:B]


# --------------------------- reference / demo ---------------------------

def _reference_forward(x_nchw, params):
    hi = jax.lax.Precision.HIGHEST
    x = x_nchw.astype(jnp.float32)

    def conv(x, w, b):
        y = jax.lax.conv_general_dilated(
            x, w, window_strides=(1, 1), padding="VALID",
            dimension_numbers=("NCHW", "OIHW", "NCHW"), precision=hi)
        return y + b.reshape(1, -1, 1, 1)

    def pool(x):
        return jax.lax.reduce_window(x, -jnp.inf, jax.lax.max,
                                     (1, 1, 2, 2), (1, 1, 2, 2), "VALID")

    y = pool(jnp.maximum(conv(x, params["w1"], params["b1"]), 0.0))
    y = pool(jnp.maximum(conv(y, params["w2"], params["b2"]), 0.0))
    y = y.reshape(x.shape[0], -1)
    y = jnp.dot(y, params["fw1"].T, precision=hi) + params["fb1"]
    y = jnp.dot(y, params["fw2"].T, precision=hi) + params["fb2"]
    return y


def init_params(key):
    ks = jax.random.split(key, 8)
    s = 0.1
    return {
        "w1":  jax.random.normal(ks[0], (10, 1, 5, 5), jnp.float32) * s,
        "b1":  jax.random.normal(ks[1], (10,), jnp.float32) * s,
        "w2":  jax.random.normal(ks[2], (20, 10, 5, 5), jnp.float32) * s,
        "b2":  jax.random.normal(ks[3], (20,), jnp.float32) * s,
        "fw1": jax.random.normal(ks[4], (50, 320), jnp.float32) * s,
        "fb1": jax.random.normal(ks[5], (50,), jnp.float32) * s,
        "fw2": jax.random.normal(ks[6], (10, 50), jnp.float32) * s,
        "fb2": jax.random.normal(ks[7], (10,), jnp.float32) * s,
    }


if __name__ == "__main__":
    root = jax.random.PRNGKey(0)
    pkey, xkey = jax.random.split(root)
    params = init_params(pkey)
    # 28x28 input is required so the flatten yields 320 features; batch=10
    # exercises both batch-tile padding and a 2-step ("parallel") grid.
    x = jax.random.normal(xkey, (10, 1, 28, 28), jnp.float32)

    fwd = jax.jit(functools.partial(net_forward, tile_b=8))
    out = jax.block_until_ready(fwd(x, params))
    assert out.shape == (10, 10) and out.dtype == jnp.float32

    ref = jax.block_until_ready(jax.jit(_reference_forward)(x, params))
    err = float(jnp.max(jnp.abs(out - ref)))
    assert err < 1e-3, f"mismatch vs reference: max abs err = {err}"
    print("KERNEL_OK")
</pallas_src>

<mosaic_0001>
module attributes {stable_mosaic.version = 11 : i64} {
  func.func @_net_kernel(%arg0: i32, %arg1: memref<224x28xf32, #tpu.memory_space<vmem>>, %arg2: memref<5x28x256xf32, #tpu.memory_space<vmem>>, %arg3: memref<1x256xf32, #tpu.memory_space<vmem>>, %arg4: memref<5x128x256xf32, #tpu.memory_space<vmem>>, %arg5: memref<1x256xf32, #tpu.memory_space<vmem>>, %arg6: memref<4x128x50xf32, #tpu.memory_space<vmem>>, %arg7: memref<1x50xf32, #tpu.memory_space<vmem>>, %arg8: memref<50x10xf32, #tpu.memory_space<vmem>>, %arg9: memref<1x10xf32, #tpu.memory_space<vmem>>, %arg10: memref<8x10xf32, #tpu.memory_space<vmem>>) attributes {dimension_semantics = [#tpu.dimension_semantics<parallel>], iteration_bounds = array<i64: 2>, scalar_prefetch = 0 : i64, scratch_operands = 0 : i64, tpu.core_type = #tpu.core_type<tc>, window_params = [{transform_indices = @transform_0, window_bounds = array<i64: 224, 28>}, {pipeline_mode = #tpu.pipeline_mode<synchronous>, transform_indices = @transform_1, window_bounds = array<i64: 5, 28, 256>}, {pipeline_mode = #tpu.pipeline_mode<synchronous>, transform_indices = @transform_2, window_bounds = array<i64: 1, 256>}, {pipeline_mode = #tpu.pipeline_mode<synchronous>, transform_indices = @transform_3, window_bounds = array<i64: 5, 128, 256>}, {pipeline_mode = #tpu.pipeline_mode<synchronous>, transform_indices = @transform_4, window_bounds = array<i64: 1, 256>}, {pipeline_mode = #tpu.pipeline_mode<synchronous>, transform_indices = @transform_5, window_bounds = array<i64: 4, 128, 50>}, {pipeline_mode = #tpu.pipeline_mode<synchronous>, transform_indices = @transform_6, window_bounds = array<i64: 1, 50>}, {pipeline_mode = #tpu.pipeline_mode<synchronous>, transform_indices = @transform_7, window_bounds = array<i64: 50, 10>}, {pipeline_mode = #tpu.pipeline_mode<synchronous>, transform_indices = @transform_8, window_bounds = array<i64: 1, 10>}, {transform_indices = @transform_9, window_bounds = array<i64: 8, 10>}]} {
    %c0 = arith.constant 0 : index
    %c0_0 = arith.constant 0 : index
    %0 = vector.load %arg1[%c0, %c0_0] : memref<224x28xf32, #tpu.memory_space<vmem>>, vector<224x28xf32>
    %1 = vector.extract_strided_slice %0 {offsets = [0, 0], sizes = [192, 28], strides = [1, 1]} : vector<224x28xf32> to vector<192x28xf32>
    %c0_1 = arith.constant 0 : index
    %c0_2 = arith.constant 0 : index
    %c0_3 = arith.constant 0 : index
    %2 = vector.load %arg2[%c0_1, %c0_2, %c0_3] : memref<5x28x256xf32, #tpu.memory_space<vmem>>, vector<1x28x256xf32>
    %3 = vector.shape_cast %2 : vector<1x28x256xf32> to vector<28x256xf32>
    %cst = arith.constant dense<0.000000e+00> : vector<192x256xf32>
    %4 = tpu.matmul %1, %3, %cst {dimension_numbers = #tpu.dot_dimension_numbers<[1], [0], [0], [1], [0, 0, 1, 1], [], []>} : vector<192x28xf32>, vector<28x256xf32>, vector<192x256xf32> -> vector<192x256xf32>
    %5 = vector.extract_strided_slice %0 {offsets = [8, 0], sizes = [192, 28], strides = [1, 1]} : vector<224x28xf32> to vector<192x28xf32>
    %c1 = arith.constant 1 : index
    %c0_4 = arith.constant 0 : index
    %c0_5 = arith.constant 0 : index
    %6 = vector.load %arg2[%c1, %c0_4, %c0_5] : memref<5x28x256xf32, #tpu.memory_space<vmem>>, vector<1x28x256xf32>
    %7 = vector.shape_cast %6 : vector<1x28x256xf32> to vector<28x256xf32>
    %cst_6 = arith.constant dense<0.000000e+00> : vector<192x256xf32>
    %8 = tpu.matmul %5, %7, %cst_6 {dimension_numbers = #tpu.dot_dimension_numbers<[1], [0], [0], [1], [0, 0, 1, 1], [], []>} : vector<192x28xf32>, vector<28x256xf32>, vector<192x256xf32> -> vector<192x256xf32>
    %9 = arith.addf %4, %8 : vector<192x256xf32>
    %10 = vector.extract_strided_slice %0 {offsets = [16, 0], sizes = [192, 28], strides = [1, 1]} : vector<224x28xf32> to vector<192x28xf32>
    %c2 = arith.constant 2 : index
    %c0_7 = arith.constant 0 : index
    %c0_8 = arith.constant 0 : index
    %11 = vector.load %arg2[%c2, %c0_7, %c0_8] : memref<5x28x256xf32, #tpu.memory_space<vmem>>, vector<1x28x256xf32>
    %12 = vector.shape_cast %11 : vector<1x28x256xf32> to vector<28x256xf32>
    %cst_9 = arith.constant dense<0.000000e+00> : vector<192x256xf32>
    %13 = tpu.matmul %10, %12, %cst_9 {dimension_numbers = #tpu.dot_dimension_numbers<[1], [0], [0], [1], [0, 0, 1, 1], [], []>} : vector<192x28xf32>, vector<28x256xf32>, vector<192x256xf32> -> vector<192x256xf32>
    %14 = arith.addf %9, %13 : vector<192x256xf32>
    %15 = vector.extract_strided_slice %0 {offsets = [24, 0], sizes = [192, 28], strides = [1, 1]} : vector<224x28xf32> to vector<192x28xf32>
    %c3 = arith.constant 3 : index
    %c0_10 = arith.constant 0 : index
    %c0_11 = arith.constant 0 : index
    %16 = vector.load %arg2[%c3, %c0_10, %c0_11] : memref<5x28x256xf32, #tpu.memory_space<vmem>>, vector<1x28x256xf32>
    %17 = vector.shape_cast %16 : vector<1x28x256xf32> to vector<28x256xf32>
    %cst_12 = arith.constant dense<0.000000e+00> : vector<192x256xf32>
    %18 = tpu.matmul %15, %17, %cst_12 {dimension_numbers = #tpu.dot_dimension_numbers<[1], [0], [0], [1], [0, 0, 1, 1], [], []>} : vector<192x28xf32>, vector<28x256xf32>, vector<192x256xf32> -> vector<192x256xf32>
    %19 = arith.addf %14, %18 : vector<192x256xf32>
    %20 = vector.extract_strided_slice %0 {offsets = [32, 0], sizes = [192, 28], strides = [1, 1]} : vector<224x28xf32> to vector<192x28xf32>
    %c4 = arith.constant 4 : index
    %c0_13 = arith.constant 0 : index
    %c0_14 = arith.constant 0 : index
    %21 = vector.load %arg2[%c4, %c0_13, %c0_14] : memref<5x28x256xf32, #tpu.memory_space<vmem>>, vector<1x28x256xf32>
    %22 = vector.shape_cast %21 : vector<1x28x256xf32> to vector<28x256xf32>
    %cst_15 = arith.constant dense<0.000000e+00> : vector<192x256xf32>
    %23 = tpu.matmul %20, %22, %cst_15 {dimension_numbers = #tpu.dot_dimension_numbers<[1], [0], [0], [1], [0, 0, 1, 1], [], []>} : vector<192x28xf32>, vector<28x256xf32>, vector<192x256xf32> -> vector<192x256xf32>
    %24 = arith.addf %19, %23 : vector<192x256xf32>
    %c0_16 = arith.constant 0 : index
    %c0_17 = arith.constant 0 : index
    %25 = vector.load %arg3[%c0_16, %c0_17] : memref<1x256xf32, #tpu.memory_space<vmem>>, vector<1x256xf32>
    %26 = vector.broadcast %25 : vector<1x256xf32> to vector<192x256xf32>
    %27 = arith.addf %24, %26 : vector<192x256xf32>
    %cst_18 = arith.constant 0.000000e+00 : f32
    %28 = vector.broadcast %cst_18 : f32 to vector<192x256xf32>
    %29 = arith.maximumf %27, %28 : vector<192x256xf32>
    %30 = vector.extract_strided_slice %29 {offsets = [0, 0], sizes = [192, 128], strides = [1, 1]} : vector<192x256xf32> to vector<192x128xf32>
    %31 = vector.extract_strided_slice %29 {offsets = [0, 128], sizes = [192, 128], strides = [1, 1]} : vector<192x256xf32> to vector<192x128xf32>
    %32 = arith.maximumf %30, %31 : vector<192x128xf32>
    %33 = vector.shape_cast %32 : vector<192x128xf32> to vector<12x16x128xf32>
    %34 = vector.extract_strided_slice %33 {offsets = [0, 0, 0], sizes = [12, 8, 128], strides = [1, 1, 1]} : vector<12x16x128xf32> to vector<12x8x128xf32>
    %35 = vector.extract_strided_slice %33 {offsets = [0, 8, 0], sizes = [12, 8, 128], strides = [1, 1, 1]} : vector<12x16x128xf32> to vector<12x8x128xf32>
    %36 = arith.maximumf %34, %35 : vector<12x8x128xf32>
    %37 = vector.shape_cast %36 : vector<12x8x128xf32> to vector<96x128xf32>
    %38 = vector.extract_strided_slice %37 {offsets = [0, 0], sizes = [64, 128], strides = [1, 1]} : vector<96x128xf32> to vector<64x128xf32>
    %c0_19 = arith.constant 0 : index
    %c0_20 = arith.constant 0 : index
    %c0_21 = arith.constant 0 : index
    %39 = vector.load %arg4[%c0_19, %c0_20, %c0_21] : memref<5x128x256xf32, #tpu.memory_space<vmem>>, vector<1x128x256xf32>
    %40 = vector.shape_cast %39 : vector<1x128x256xf32> to vector<128x256xf32>
    %cst_22 = arith.constant dense<0.000000e+00> : vector<64x256xf32>
    %41 = tpu.matmul %38, %40, %cst_22 {dimension_numbers = #tpu.dot_dimension_numbers<[1], [0], [0], [1], [0, 0, 1, 1], [], []>} : vector<64x128xf32>, vector<128x256xf32>, vector<64x256xf32> -> vector<64x256xf32>
    %42 = vector.extract_strided_slice %37 {offsets = [8, 0], sizes = [64, 128], strides = [1, 1]} : vector<96x128xf32> to vector<64x128xf32>
    %c1_23 = arith.constant 1 : index
    %c0_24 = arith.constant 0 : index
    %c0_25 = arith.constant 0 : index
    %43 = vector.load %arg4[%c1_23, %c0_24, %c0_25] : memref<5x128x256xf32, #tpu.memory_space<vmem>>, vector<1x128x256xf32>
    %44 = vector.shape_cast %43 : vector<1x128x256xf32> to vector<128x256xf32>
    %cst_26 = arith.constant dense<0.000000e+00> : vector<64x256xf32>
    %45 = tpu.matmul %42, %44, %cst_26 {dimension_numbers = #tpu.dot_dimension_numbers<[1], [0], [0], [1], [0, 0, 1, 1], [], []>} : vector<64x128xf32>, vector<128x256xf32>, vector<64x256xf32> -> vector<64x256xf32>
    %46 = arith.addf %41, %45 : vector<64x256xf32>
    %47 = vector.extract_strided_slice %37 {offsets = [16, 0], sizes = [64, 128], strides = [1, 1]} : vector<96x128xf32> to vector<64x128xf32>
    %c2_27 = arith.constant 2 : index
    %c0_28 = arith.constant 0 : index
    %c0_29 = arith.constant 0 : index
    %48 = vector.load %arg4[%c2_27, %c0_28, %c0_29] : memref<5x128x256xf32, #tpu.memory_space<vmem>>, vector<1x128x256xf32>
    %49 = vector.shape_cast %48 : vector<1x128x256xf32> to vector<128x256xf32>
    %cst_30 = arith.constant dense<0.000000e+00> : vector<64x256xf32>
    %50 = tpu.matmul %47, %49, %cst_30 {dimension_numbers = #tpu.dot_dimension_numbers<[1], [0], [0], [1], [0, 0, 1, 1], [], []>} : vector<64x128xf32>, vector<128x256xf32>, vector<64x256xf32> -> vector<64x256xf32>
    %51 = arith.addf %46, %50 : vector<64x256xf32>
    %52 = vector.extract_strided_slice %37 {offsets = [24, 0], sizes = [64, 128], strides = [1, 1]} : vector<96x128xf32> to vector<64x128xf32>
    %c3_31 = arith.constant 3 : index
    %c0_32 = arith.constant 0 : index
    %c0_33 = arith.constant 0 : index
    %53 = vector.load %arg4[%c3_31, %c0_32, %c0_33] : memref<5x128x256xf32, #tpu.memory_space<vmem>>, vector<1x128x256xf32>
    %54 = vector.shape_cast %53 : vector<1x128x256xf32> to vector<128x256xf32>
    %cst_34 = arith.constant dense<0.000000e+00> : vector<64x256xf32>
    %55 = tpu.matmul %52, %54, %cst_34 {dimension_numbers = #tpu.dot_dimension_numbers<[1], [0], [0], [1], [0, 0, 1, 1], [], []>} : vector<64x128xf32>, vector<128x256xf32>, vector<64x256xf32> -> vector<64x256xf32>
    %56 = arith.addf %51, %55 : vector<64x256xf32>
    %57 = vector.extract_strided_slice %37 {offsets = [32, 0], sizes = [64, 128], strides = [1, 1]} : vector<96x128xf32> to vector<64x128xf32>
    %c4_35 = arith.constant 4 : index
    %c0_36 = arith.constant 0 : index
    %c0_37 = arith.constant 0 : index
    %58 = vector.load %arg4[%c4_35, %c0_36, %c0_37] : memref<5x128x256xf32, #tpu.memory_space<vmem>>, vector<1x128x256xf32>
    %59 = vector.shape_cast %58 : vector<1x128x256xf32> to vector<128x256xf32>
    %cst_38 = arith.constant dense<0.000000e+00> : vector<64x256xf32>
    %60 = tpu.matmul %57, %59, %cst_38 {dimension_numbers = #tpu.dot_dimension_numbers<[1], [0], [0], [1], [0, 0, 1, 1], [], []>} : vector<64x128xf32>, vector<128x256xf32>, vector<64x256xf32> -> vector<64x256xf32>
    %61 = arith.addf %56, %60 : vector<64x256xf32>
    %c0_39 = arith.constant 0 : index
    %c0_40 = arith.constant 0 : index
    %62 = vector.load %arg5[%c0_39, %c0_40] : memref<1x256xf32, #tpu.memory_space<vmem>>, vector<1x256xf32>
    %63 = vector.broadcast %62 : vector<1x256xf32> to vector<64x256xf32>
    %64 = arith.addf %61, %63 : vector<64x256xf32>
    %cst_41 = arith.constant 0.000000e+00 : f32
    %65 = vector.broadcast %cst_41 : f32 to vector<64x256xf32>
    %66 = arith.maximumf %64, %65 : vector<64x256xf32>
    %67 = vector.extract_strided_slice %66 {offsets = [0, 0], sizes = [64, 128], strides = [1, 1]} : vector<64x256xf32> to vector<64x128xf32>
    %68 = vector.extract_strided_slice %66 {offsets = [0, 128], sizes = [64, 128], strides = [1, 1]} : vector<64x256xf32> to vector<64x128xf32>
    %69 = arith.maximumf %67, %68 : vector<64x128xf32>
    %70 = vector.shape_cast %69 : vector<64x128xf32> to vector<4x16x128xf32>
    %71 = vector.extract_strided_slice %70 {offsets = [0, 0, 0], sizes = [4, 8, 128], strides = [1, 1, 1]} : vector<4x16x128xf32> to vector<4x8x128xf32>
    %72 = vector.extract_strided_slice %70 {offsets = [0, 8, 0], sizes = [4, 8, 128], strides = [1, 1, 1]} : vector<4x16x128xf32> to vector<4x8x128xf32>
    %73 = arith.maximumf %71, %72 : vector<4x8x128xf32>
    %c0_42 = arith.constant 0 : index
    %c0_43 = arith.constant 0 : index
    %74 = vector.load %arg7[%c0_42, %c0_43] : memref<1x50xf32, #tpu.memory_space<vmem>>, vector<1x50xf32>
    %75 = vector.extract_strided_slice %73 {offsets = [0, 0, 0], sizes = [1, 8, 128], strides = [1, 1, 1]} : vector<4x8x128xf32> to vector<1x8x128xf32>
    %76 = vector.shape_cast %75 : vector<1x8x128xf32> to vector<8x128xf32>
    %c0_44 = arith.constant 0 : index
    %c0_45 = arith.constant 0 : index
    %c0_46 = arith.constant 0 : index
    %77 = vector.load %arg6[%c0_44, %c0_45, %c0_46] : memref<4x128x50xf32, #tpu.memory_space<vmem>>, vector<1x128x50xf32>
    %78 = vector.shape_cast %77 : vector<1x128x50xf32> to vector<128x50xf32>
    %cst_47 = arith.constant dense<0.000000e+00> : vector<8x50xf32>
    %79 = tpu.matmul %76, %78, %cst_47 {dimension_numbers = #tpu.dot_dimension_numbers<[1], [0], [0], [1], [0, 0, 1, 1], [], []>} : vector<8x128xf32>, vector<128x50xf32>, vector<8x50xf32> -> vector<8x50xf32>
    %80 = vector.broadcast %74 : vector<1x50xf32> to vector<8x50xf32>
    %81 = arith.addf %80, %79 : vector<8x50xf32>
    %82 = vector.extract_strided_slice %73 {offsets = [1, 0, 0], sizes = [1, 8, 128], strides = [1, 1, 1]} : vector<4x8x128xf32> to vector<1x8x128xf32>
    %83 = vector.shape_cast %82 : vector<1x8x128xf32> to vector<8x128xf32>
    %c1_48 = arith.constant 1 : index
    %c0_49 = arith.constant 0 : index
    %c0_50 = arith.constant 0 : index
    %84 = vector.load %arg6[%c1_48, %c0_49, %c0_50] : memref<4x128x50xf32, #tpu.memory_space<vmem>>, vector<1x128x50xf32>
    %85 = vector.shape_cast %84 : vector<1x128x50xf32> to vector<128x50xf32>
    %cst_51 = arith.constant dense<0.000000e+00> : vector<8x50xf32>
    %86 = tpu.matmul %83, %85, %cst_51 {dimension_numbers = #tpu.dot_dimension_numbers<[1], [0], [0], [1], [0, 0, 1, 1], [], []>} : vector<8x128xf32>, vector<128x50xf32>, vector<8x50xf32> -> vector<8x50xf32>
    %87 = arith.addf %81, %86 : vector<8x50xf32>
    %88 = vector.extract_strided_slice %73 {offsets = [2, 0, 0], sizes = [1, 8, 128], strides = [1, 1, 1]} : vector<4x8x128xf32> to vector<1x8x128xf32>
    %89 = vector.shape_cast %88 : vector<1x8x128xf32> to vector<8x128xf32>
    %c2_52 = arith.constant 2 : index
    %c0_53 = arith.constant 0 : index
    %c0_54 = arith.constant 0 : index
    %90 = vector.load %arg6[%c2_52, %c0_53, %c0_54] : memref<4x128x50xf32, #tpu.memory_space<vmem>>, vector<1x128x50xf32>
    %91 = vector.shape_cast %90 : vector<1x128x50xf32> to vector<128x50xf32>
    %cst_55 = arith.constant dense<0.000000e+00> : vector<8x50xf32>
    %92 = tpu.matmul %89, %91, %cst_55 {dimension_numbers = #tpu.dot_dimension_numbers<[1], [0], [0], [1], [0, 0, 1, 1], [], []>} : vector<8x128xf32>, vector<128x50xf32>, vector<8x50xf32> -> vector<8x50xf32>
    %93 = arith.addf %87, %92 : vector<8x50xf32>
    %94 = vector.extract_strided_slice %73 {offsets = [3, 0, 0], sizes = [1, 8, 128], strides = [1, 1, 1]} : vector<4x8x128xf32> to vector<1x8x128xf32>
    %95 = vector.shape_cast %94 : vector<1x8x128xf32> to vector<8x128xf32>
    %c3_56 = arith.constant 3 : index
    %c0_57 = arith.constant 0 : index
    %c0_58 = arith.constant 0 : index
    %96 = vector.load %arg6[%c3_56, %c0_57, %c0_58] : memref<4x128x50xf32, #tpu.memory_space<vmem>>, vector<1x128x50xf32>
    %97 = vector.shape_cast %96 : vector<1x128x50xf32> to vector<128x50xf32>
    %cst_59 = arith.constant dense<0.000000e+00> : vector<8x50xf32>
    %98 = tpu.matmul %95, %97, %cst_59 {dimension_numbers = #tpu.dot_dimension_numbers<[1], [0], [0], [1], [0, 0, 1, 1], [], []>} : vector<8x128xf32>, vector<128x50xf32>, vector<8x50xf32> -> vector<8x50xf32>
    %99 = arith.addf %93, %98 : vector<8x50xf32>
    %c0_60 = arith.constant 0 : index
    %c0_61 = arith.constant 0 : index
    %100 = vector.load %arg8[%c0_60, %c0_61] : memref<50x10xf32, #tpu.memory_space<vmem>>, vector<50x10xf32>
    %cst_62 = arith.constant dense<0.000000e+00> : vector<8x10xf32>
    %101 = tpu.matmul %99, %100, %cst_62 {dimension_numbers = #tpu.dot_dimension_numbers<[1], [0], [0], [1], [0, 0, 1, 1], [], []>} : vector<8x50xf32>, vector<50x10xf32>, vector<8x10xf32> -> vector<8x10xf32>
    %c0_63 = arith.constant 0 : index
    %c0_64 = arith.constant 0 : index
    %102 = vector.load %arg9[%c0_63, %c0_64] : memref<1x10xf32, #tpu.memory_space<vmem>>, vector<1x10xf32>
    %103 = vector.broadcast %102 : vector<1x10xf32> to vector<8x10xf32>
    %104 = arith.addf %101, %103 : vector<8x10xf32>
    %c0_65 = arith.constant 0 : index
    %c0_66 = arith.constant 0 : index
    %105 = vector.load %arg10[%c0_65, %c0_66] : memref<8x10xf32, #tpu.memory_space<vmem>>, vector<8x10xf32>
    tpu.vector_store %arg10[%c0_65, %c0_66], %104 {strides = array<i32>} : memref<8x10xf32, #tpu.memory_space<vmem>>, vector<8x10xf32>,
    return
  }
  func.func @transform_0(%arg0: i32) -> (i32, i32) {
    %c0_i32 = arith.constant 0 : i32
    %c0_i32_0 = arith.constant 0 : i32
    return %arg0, %c0_i32 : i32, i32
  }
  func.func @transform_1(%arg0: i32) -> (i32, i32, i32) {
    %c0_i32 = arith.constant 0 : i32
    %c0_i32_0 = arith.constant 0 : i32
    %c0_i32_1 = arith.constant 0 : i32
    %c0_i32_2 = arith.constant 0 : i32
    return %c0_i32, %c0_i32_0, %c0_i32_1 : i32, i32, i32
  }
  func.func @transform_2(%arg0: i32) -> (i32, i32) {
    %c0_i32 = arith.constant 0 : i32
    %c0_i32_0 = arith.constant 0 : i32
    %c0_i32_1 = arith.constant 0 : i32
    return %c0_i32, %c0_i32_0 : i32, i32
  }
  func.func @transform_3(%arg0: i32) -> (i32, i32, i32) {
    %c0_i32 = arith.constant 0 : i32
    %c0_i32_0 = arith.constant 0 : i32
    %c0_i32_1 = arith.constant 0 : i32
    %c0_i32_2 = arith.constant 0 : i32
    return %c0_i32, %c0_i32_0, %c0_i32_1 : i32, i32, i32
  }
  func.func @transform_4(%arg0: i32) -> (i32, i32) {
    %c0_i32 = arith.constant 0 : i32
    %c0_i32_0 = arith.constant 0 : i32
    %c0_i32_1 = arith.constant 0 : i32
    return %c0_i32, %c0_i32_0 : i32, i32
  }
  func.func @transform_5(%arg0: i32) -> (i32, i32, i32) {
    %c0_i32 = arith.constant 0 : i32
    %c0_i32_0 = arith.constant 0 : i32
    %c0_i32_1 = arith.constant 0 : i32
    %c0_i32_2 = arith.constant 0 : i32
    return %c0_i32, %c0_i32_0, %c0_i32_1 : i32, i32, i32
  }
  func.func @transform_6(%arg0: i32) -> (i32, i32) {
    %c0_i32 = arith.constant 0 : i32
    %c0_i32_0 = arith.constant 0 : i32
    %c0_i32_1 = arith.constant 0 : i32
    return %c0_i32, %c0_i32_0 : i32, i32
  }
  func.func @transform_7(%arg0: i32) -> (i32, i32) {
    %c0_i32 = arith.constant 0 : i32
    %c0_i32_0 = arith.constant 0 : i32
    %c0_i32_1 = arith.constant 0 : i32
    return %c0_i32, %c0_i32_0 : i32, i32
  }
  func.func @transform_8(%arg0: i32) -> (i32, i32) {
    %c0_i32 = arith.constant 0 : i32
    %c0_i32_0 = arith.constant 0 : i32
    %c0_i32_1 = arith.constant 0 : i32
    return %c0_i32, %c0_i32_0 : i32, i32
  }
  func.func @transform_9(%arg0: i32) -> (i32, i32) {
    %c0_i32 = arith.constant 0 : i32
    %c0_i32_0 = arith.constant 0 : i32
    return %arg0, %c0_i32 : i32, i32
  }
}

</mosaic_0001>

<bundles_post_ra>
// kernel: tile.13
= control target key start
LH: loop header
LB: loop body
LE: loop exit
PB: predicated region body
PF: predicated region fallthrough
CT: control target
= control target key end

     0   :  { %2 = vsyncpa [#allocation1], 0  ;;  %s51_s8 = smov [#allocation0]   ;;  %s71_s0 = inlined_call_operand.hbm [shape: f32[10], index: 0, kind: input, shape index: {}]   ;;  %s72_s1 = inlined_call_operand.vmem [shape: f32[12,10], index: 1, kind: output, shape index: {}]  }
   0x1   :  { %s8_s0 = sshll.u32 %s71_s0, 4  ;;  %s10_s9 = sshll.u32 %s51_s8, 4  ;;  %s9_s0 = int_to_ptr.hbm [resolvable:$true] %s8_s0  ;;  %s11_s9 = int_to_ptr.vmem [resolvable:$true] %s10_s9 }
   0x2   :  { %13 = dma.hbm_to_vmem [thread:$0]  %s9_s0, 16, %s11_s9, [#allocation1]  }
   0x3   :  { %49 = dma.done.wait [#allocation1], 16  }
   0x4   :  { %50 = vsyncadd [#allocation1], 4294967280  ;;  %v18_v0 = vld [vmem:[#allocation0] ss:$0 sm:$0xff] }
   0x5   :  { %19 = vst [vmem:[%s72_s1] sm:$0xff] %v18_v0 }
   0x6   :  { %23 = vst [vmem:[%s72_s1 + $0x8] sm:$0xff] %v18_v0 }
   0x7   :  { %22 = vsyncpa [#allocation1], 1 }

// kernel: tile.18
= control target key start
LH: loop header
LB: loop body
LE: loop exit
PB: predicated region body
PF: predicated region fallthrough
CT: control target
= control target key end

     0   :  { %2 = vsyncpa [#allocation1], 0  ;;  %s48_s8 = smov [#allocation0]   ;;  %s65_s0 = inlined_call_operand.hbm [shape: f32[20], index: 0, kind: input, shape index: {}]   ;;  %s66_s1 = inlined_call_operand.vmem [shape: f32[4,20], index: 1, kind: output, shape index: {}]  }
   0x1   :  { %s8_s0 = sshll.u32 %s65_s0, 4  ;;  %s10_s9 = sshll.u32 %s48_s8, 4  ;;  %s9_s0 = int_to_ptr.hbm [resolvable:$true] %s8_s0  ;;  %s11_s9 = int_to_ptr.vmem [resolvable:$true] %s10_s9 }
   0x2   :  { %13 = dma.hbm_to_vmem [thread:$0]  %s9_s0, 16, %s11_s9, [#allocation1]  }
   0x3   :  { %46 = dma.done.wait [#allocation1], 16  }
   0x4   :  { %47 = vsyncadd [#allocation1], 4294967280  ;;  %v18_v0 = vld [vmem:[#allocation0] ss:$0 sm:$0xff] }
   0x5   :  { %19 = vst [vmem:[%s66_s1] sm:$0xf] %v18_v0 }
   0x6   :  { %20 = vsyncpa [#allocation1], 1 }

// kernel: net_forward.1
= control target key start
LH: loop header
LB: loop body
LE: loop exit
PB: predicated region body
PF: predicated region fallthrough
CT: control target
= control target key end

     0   :  { %s5563_s0 = inlined_call_operand.vmem [shape: f32[448,28], index: 0, kind: input, shape index: {}]   ;;  %s5564_s1 = inlined_call_operand.vmem [shape: f32[5,28,256], index: 1, kind: input, shape index: {}]   ;;  %s5565_s2 = inlined_call_operand.vmem [shape: f32[1,256], index: 2, kind: input, shape index: {}]   ;;  %s5566_s3 = inlined_call_operand.vmem [shape: f32[5,128,256], index: 3, kind: input, shape index: {}]   ;;  %s5567_s4 = inlined_call_operand.hbm [shape: f32[1,256], index: 4, kind: input, shape index: {}]   ;;  %s5568_s5 = inlined_call_operand.vmem [shape: f32[4,128,50], index: 5, kind: input, shape index: {}]   ;;  %s5569_s6 = inlined_call_operand.vmem [shape: f32[1,50], index: 6, kind: input, shape index: {}]   ;;  %s5570_s7 = inlined_call_operand.vmem [shape: f32[50,10], index: 7, kind: input, shape index: {}]   ;;  %s5571_s8 = inlined_call_operand.vmem [shape: f32[1,10], index: 8, kind: input, shape index: {}]   ;;  %s5572_s9 = inlined_call_operand.hbm [shape: f32[16,10], index: 9, kind: output, shape index: {}]  }
   0x1   :  { %5573 = sst [smem:[#allocation91_spill]] %s5563_s0 }
   0x2   :  { %14 = vsyncpa [#allocation3], 0 }
   0x3   :  { %15 = vsyncpa [#allocation4], 0 }
   0x4   :  { %17 = vsyncpa [#allocation4 + $0x1], 0  ;;  %s3341_s30 = smov 0   ;;  %s3343_s10 = smov 0  }
   0x5   :  { %s3345_s11 = smov 0   ;;  %s3347_s12 = smov 0  }
   0x6 LB: > { %s3362_s13 = sadd.s32 4294967295, %s3288_s12   ;;  %s2663_s14 = sadd.s32 4294967294, %s3288_s12   ;;  %s3288_s12 = sphi %s3347_s12, %s5746_s12   ;;  %s3284_s11 = sphi %s3345_s11, %s5745_s11   ;;  %s3280_s10 = sphi %s3343_s10, %s5744_s10   ;;  %s3276_s30 = sphi %s3341_s30, %s5743_s30  }
   0x7   : > { %s3366_s15 = sadd.s32 1, %s3288_s12   ;;  %s224_s16 = sadd.s32 1, %s3284_s11 }
   0x8   : > { %s221_s17 = ssub.s32 %s3288_s12, %s3366_s15  ;;  %p234_p0 = scmp.ne.s32.totalorder %s3284_s11, %s3280_s10 }
   0x9   : > { %p222_p1 = scmp.eq.s32.totalorder %s221_s17, 0  ;;  %p235_p2 = scmp.eq.s32.totalorder %s3362_s13, 1 }
   0xa   : > { %p240_p3 = scmp.ne.s32.totalorder %s3280_s10, %s3276_s30  ;;  %p241_p4 = scmp.eq.s32.totalorder %s2663_s14, 1 }
   0xb   : > { %s3377_s18 = scalar_select %p222_p1, %s3284_s11, %s224_s16  }
   0xc   : > { %p3379_p5 = por %p235_p2, %p234_p0  ;;  %p3383_p6 = por %p241_p4, %p240_p3 }
   0xd   : > { %p2664_p7 = scmp.ge.s32.totalorder %s3288_s12, 1  ;;  %p248_p8 = scmp.lt.s32.totalorder %s3288_s12, 3 }
   0xe   : > { %p3153_p9 = scmp.eq.s32.totalorder %s3362_s13, 0  ;;  %s269_s23 = sshll.u32 %s5567_s4, 4  ;;  %s270_s23 = int_to_ptr.hbm [resolvable:$true] %s269_s23 }
   0xf   : > { %p249_p10 = pnand %p2664_p7, %p248_p8  ;;  %s3290_s24 = smov [#allocation2]  }
  0x10   : > { %s271_s25 = sshll.u32 %s3290_s24, 4  ;;  %s272_s25 = int_to_ptr.vmem [resolvable:$true] %s271_s25 }
  0x11   : > { %p3145_p11 = pneg %p249_p10  ;;  %305 = sbr.rel (%p249_p10) target bundleno = 1295 (0x50f), region = 56 }
  0x13   : > { %p3146_p12 = pnand %p3153_p9, %p3145_p11 }
  0x15   : > { %3148 = dma.hbm_to_vmem [thread:$0]  (!%p3146_p12), %s270_s23, 32, %s272_s25, [#allocation3]  }
  0x16   : > { %3267 = dma.done.wait (%p3153_p9), [#allocation3], 32  }
  0x17   : > { %3269 = vsyncadd (%p3153_p9), [#allocation3], 4294967264  ;;  %s342_s26 = smul.u32 28, %s3362_s13  ;;  %vm466_vm0 = vcmask 1043456   ;;  %v2677_v0 = vld [vmem:[%s5564_s1 + $0x70] sm:$0xf] }
  0x18   : > { %v382_v1 = vld [vmem:[%s5564_s1 + $0x30] sm:$0xf]  ;;  %v2675_v2 = vld [vmem:[%s5564_s1 + $0x60] sm:$0xff]  ;;  %2679 = vmatpush.msk.msra.mxu0 %vm466_vm0, %v2677_v0  ;;  %3135 = vmatpush.msk.msra.mxu1 %vm466_vm0, %v2677_v0  ;;  %v383_v4 = vld [vmem:[%s5564_s1 + $0x38] sm:$0xf]  ;;  %s5576_s0 = sld [smem:[#allocation91_spill]] }
  0x19   : > { %p343_p13 = scmp.lt.s32.totalorder %s342_s26, 55  ;;  %v380_v3 = vld [vmem:[%s5564_s1 + $0x20] sm:$0xff]  ;;  %2729 = vmatpush.msk.msra.mxu2 %vm466_vm0, %v382_v1  ;;  %2754 = vmatpush.msk.msra.mxu3 %vm466_vm0, %v383_v4  ;;  %v2673_v5 = vld [vmem:[%s5564_s1 + $0x50] sm:$0xff]  ;;  %v381_v6 = vld [vmem:[%s5564_s1 + $0x28] sm:$0xff]  ;;  %vm393_vm1 = vcmask 228352   ;;  %vm2550_vm2 = vcmask 1041408  }
  0x1a   : > { %486 = vmatpush.msra.mxu0 %v2675_v2  ;;  %3136 = vmatpush.msra.mxu1 %v2675_v2  ;;  %v378_v7 = vld [vmem:[%s5564_s1 + $0x10] sm:$0xff]  ;;  %v379_v8 = vld [vmem:[%s5564_s1 + $0x18] sm:$0xff]  ;;  %v2671_v9 = vld [vmem:[%s5564_s1 + $0x40] sm:$0xff]  ;;  %vm2546_vm3 = vcmask 408576   ;;  %s3132_s17 = sshll.u32 %s3362_s13, 3  ;;  %vm2574_vm4 = vcmask 80896  }
  0x1b   : > { %s5748_s26 = smov (!%p343_p13, %s342_s26), 55  ;;  %673 = vmatpush.msra.mxu2 %v380_v3  ;;  %762 = vmatpush.msra.mxu3 %v381_v6  ;;  %v376_v10 = vld [vmem:[%s5564_s1] sm:$0xff]  ;;  %v2678_v14 = vld [vmem:[%s5564_s1 + $0x78] sm:$0xf]  ;;  %v377_v15 = vld [vmem:[%s5564_s1 + $0x8] sm:$0xff]  ;;  %s2587_s24 = scalar_lea.hbm %s5572_s9, %s3132_s17 }
  0x1c   : > { %s2670_s27 = sshll.u32 %s5748_s26, 3  ;;  %487 = vmatpush.msra.mxu0 %v2673_v5  ;;  %3137 = vmatpush.msra.mxu1 %v2673_v5  ;;  %v2785_v16 = vld [vmem:[%s5564_s1 + $0xb0] sm:$0xf]  ;;  %v2676_v17 = vld [vmem:[%s5564_s1 + $0x68] sm:$0xff]  ;;  %v2674_v18 = vld [vmem:[%s5564_s1 + $0x58] sm:$0xff]  ;;  %s2591_s29 = sshll.u32 %s2587_s24, 4  ;;  %s2592_s29 = int_to_ptr.hbm [resolvable:$true] %s2591_s29 }
  0x1d   : > { %674 = vmatpush.msra.mxu2 %v378_v7  ;;  %763 = vmatpush.msra.mxu3 %v379_v8  ;;  %v2672_v19 = vld [vmem:[%s5564_s1 + $0x48] sm:$0xff]  ;;  %v2786_v21 = vld [vmem:[%s5564_s1 + $0xb8] sm:$0xf]  ;;  %v2783_v25 = vld [vmem:[%s5564_s1 + $0xa0] sm:$0xff]  ;;  %s3236_s13 = sshra.s32 %s2592_s29, 4  ;;  %s3237_s13 = int_to_ptr.hbm [resolvable:$true] %s3236_s13 }
  0x1e   : > { %s3422_s21 = scalar_lea.vmem %s5576_s0, %s2670_s27  ;;  %488 = vmatpush.msra.mxu0 %v2671_v9  ;;  %3138 = vmatpush.msra.mxu1 %v2671_v9  ;;  %v2784_v24 = vld [vmem:[%s5564_s1 + $0xa8] sm:$0xff]  ;;  %v2782_v32 = vld [vmem:[%s5564_s1 + $0x98] sm:$0xff]  ;;  %v2781_v33 = vld [vmem:[%s5564_s1 + $0x90] sm:$0xff]  ;;  %s3238_s0 = scalar_lea.hbm %s3237_s13, 8 }
  0x1f   : > { %v349_v11 = vld [vmem:[%s3422_s21 + $0x8] sm:$0xff]  ;;  %v3438_v12 = vld [vmem:[%s3422_s21 + $0xc0] sm:$0xff]  ;;  %675 = vmatpush.msra.mxu2 %v376_v10  ;;  %764 = vmatpush.msra.mxu3 %v377_v15  ;;  %v3467_v20 = vld [vmem:[%s3422_s21 + $0x10] sm:$0xff]  ;;  %p3239_p0 = scmp.ne.s32.totalorder %s3237_s13, %s3238_s0  ;;  %p3243_p3 = scmp.lt.s32.totalorder %s3237_s13, %s5572_s9 }
  0x20   : > { %v348_v13 = vld [vmem:[%s3422_s21] sm:$0xff]  ;;  %2680 = vmatmul.msk.f32.vlgmr.msra.gmra.mxu0 %vm393_vm1, %v349_v11  ;;  %2703 = vmatmul.msk.f32.vlgmr.msra.gmra.mxu1 %vm393_vm1, %v3438_v12  ;;  %v3479_v22 = vld [vmem:[%s3422_s21 + $0x18] sm:$0xff]  ;;  %v3507_v26 = vld [vmem:[%s3422_s21 + $0x28] sm:$0xff] }
  0x21   : > { %2730 = vmatmul.msk.f32.vlgmr.msra.gmra.mxu2 %vm393_vm1, %v348_v13  ;;  %2704 = vmatpush.msk.msrb.mxu1 %vm466_vm0, %v2678_v14  ;;  %v3490_v23 = vld [vmem:[%s3422_s21 + $0x20] sm:$0xff]  ;;  %v3518_v27 = vld [vmem:[%s3422_s21 + $0x30] sm:$0xff]  ;;  %v3529_v28 = vld [vmem:[%s3422_s21 + $0x38] sm:$0xff]  ;;  %p3240_p1 = pnand %p3239_p0, %p3379_p5 }
  0x22   : > { %2755 = vmatmul.msk.f32.vlgmr.msra.gmra.mxu3 %vm393_vm1, %v348_v13  ;;  %2787 = vmatpush.msk.msrb.mxu0 %vm466_vm0, %v2785_v16  ;;  %v3540_v29 = vld [vmem:[%s3422_s21 + $0x40] sm:$0xff]  ;;  %v3551_v30 = vld [vmem:[%s3422_s21 + $0x48] sm:$0xff]  ;;  %v3562_v31 = vld [vmem:[%s3422_s21 + $0x50] sm:$0xff] }
  0x23   : > { %575 = vmatpush.msrb.mxu1 %v2676_v17  ;;  %v3579_v34 = vld [vmem:[%s3422_s21 + $0x58] sm:$0xff]  ;;  %v3590_v35 = vld [vmem:[%s3422_s21 + $0x60] sm:$0xff]  ;;  %v3601_v36 = vld [vmem:[%s3422_s21 + $0x68] sm:$0xff]  ;;  %p3241_p2 = pneg %p3240_p1 }
  0x24   : > { %869 = vmatpush.msrb.mxu0 %v2783_v25  ;;  %v3612_v37 = vld [vmem:[%s3422_s21 + $0x70] sm:$0xff]  ;;  %v3623_v38 = vld [vmem:[%s3422_s21 + $0x78] sm:$0xff]  ;;  %v3634_v39 = vld [vmem:[%s3422_s21 + $0x80] sm:$0xff] }
  0x25   : > { %576 = vmatpush.msrb.mxu1 %v2674_v18  ;;  %v2780_v40 = vld [vmem:[%s5564_s1 + $0x88] sm:$0xff]  ;;  %v2779_v41 = vld [vmem:[%s5564_s1 + $0x80] sm:$0xff]  ;;  %v3666_v48 = vld [vmem:[%s3422_s21 + $0x90] sm:$0xff] }
  0x26   : > { %870 = vmatpush.msrb.mxu0 %v2781_v33  ;;  %v3651_v43 = vld [vmem:[%s3422_s21 + $0x88] sm:$0xff]  ;;  %v3681_v53 = vld [vmem:[%s3422_s21 + $0x98] sm:$0xff]  ;;  %v3698_v59 = vld [vmem:[%s3422_s21 + $0xa0] sm:$0xff] }
  0x27   : > { %577 = vmatpush.msrb.mxu1 %v2672_v19  ;;  %v2843_v61 = vld [vmem:[%s5564_s1 + $0xf0] sm:$0xf]  ;;  %v2841_v62 = vld [vmem:[%s5564_s1 + $0xe0] sm:$0xff]  ;;  %v3720_v2 = vld [vmem:[%s3422_s21 + $0xa8] sm:$0xff] }
  0x28   : > { %2681 = vmatmul.msk.f32.gmra.mxu0 %vm393_vm1, %v3467_v20  ;;  %2705 = vmatmul.msk.f32.vlgmr.msrb.gmra.mxu1 %vm393_vm1, %v349_v11  ;;  %v2839_v3 = vld [vmem:[%s5564_s1 + $0xd0] sm:$0xff]  ;;  %v2844_v4 = vld [vmem:[%s5564_s1 + $0xf8] sm:$0xf]  ;;  %v2837_v7 = vld [vmem:[%s5564_s1 + $0xc0] sm:$0xff] }
  0x29   : > { %2731 = vmatmul.msk.f32.gmra.mxu2 %vm393_vm1, %v349_v11  ;;  %2812 = vmatpush.msk.msra.mxu1 %vm466_vm0, %v2786_v21  ;;  %v2842_v8 = vld [vmem:[%s5564_s1 + $0xe8] sm:$0xff]  ;;  %v2840_v9 = vld [vmem:[%s5564_s1 + $0xd8] sm:$0xff]  ;;  %v3756_v15 = vld [vmem:[%s3422_s21 + $0xb0] sm:$0xff] }
  0x2a   : > { %2756 = vmatmul.msk.f32.gmra.mxu3 %vm393_vm1, %v349_v11  ;;  %871 = vmatpush.msrb.mxu0 %v2779_v41  ;;  %v2838_v10 = vld [vmem:[%s5564_s1 + $0xc8] sm:$0xff]  ;;  %v2901_v18 = vld [vmem:[%s5564_s1 + $0x130] sm:$0xf]  ;;  %v2902_v19 = vld [vmem:[%s5564_s1 + $0x138] sm:$0xf] }
  0x2b   : > { %958 = vmatpush.msra.mxu1 %v2784_v24  ;;  %2845 = vmatpush.msk.msrb.mxu2 %vm466_vm0, %v2843_v61 }
  0x2c   : > { %2870 = vmatpush.msk.msrb.mxu3 %vm466_vm0, %v2844_v4  ;;  %2903 = vmatpush.msk.msra.mxu0 %vm466_vm0, %v2901_v18 }
  0x2d   : > { %959 = vmatpush.msra.mxu1 %v2782_v32  ;;  %1113 = vmatpush.msrb.mxu2 %v2841_v62  ;;  %v3781_v32 = vld [vmem:[%s3422_s21 + $0xb8] sm:$0xff] }
  0x2e   : > { %1202 = vmatpush.msrb.mxu3 %v2842_v8 }
  0x2f   : > { %960 = vmatpush.msra.mxu1 %v2780_v40  ;;  %1114 = vmatpush.msrb.mxu2 %v2839_v3 }
  0x30   : > { %2682 = vmatmul.msk.f32.gmra.mxu0 %vm393_vm1, %v3479_v22  ;;  %2706 = vmatmul.msk.f32.gmra.mxu1 %vm393_vm1, %v3467_v20 }
  0x31   : > { %2732 = vmatmul.msk.f32.gmra.mxu2 %vm393_vm1, %v3467_v20  ;;  %1203 = vmatpush.msrb.mxu3 %v2840_v9 }
  0x32   : > { %2757 = vmatmul.msk.f32.gmra.mxu3 %vm393_vm1, %v3467_v20  ;;  %1115 = vmatpush.msrb.mxu2 %v2837_v7 }
  0x33   : > { %1204 = vmatpush.msrb.mxu3 %v2838_v10  ;;  %2928 = vmatpush.msk.msrb.mxu1 %vm466_vm0, %v2902_v19 }
  0x38   : > { %2683 = vmatmul.msk.f32.gmra.mxu0 %vm393_vm1, %v3490_v23  ;;  %2707 = vmatmul.msk.f32.gmra.mxu1 %vm393_vm1, %v3479_v22 }
  0x39   : > { %2733 = vmatmul.msk.f32.gmra.mxu2 %vm393_vm1, %v3479_v22 }
  0x3a   : > { %2758 = vmatmul.msk.f32.gmra.mxu3 %vm393_vm1, %v3479_v22 }
  0x40   : > { %2684 = vmatmul.msk.f32.gmra.mxu0 %vm393_vm1, %v3507_v26  ;;  %2708 = vmatmul.msk.f32.gmra.mxu1 %vm393_vm1, %v3490_v23 }
  0x41   : > { %2734 = vmatmul.msk.f32.gmra.mxu2 %vm393_vm1, %v3490_v23 }
  0x42   : > { %2759 = vmatmul.msk.f32.gmra.mxu3 %vm393_vm1, %v3490_v23 }
  0x48   : > { %2685 = vmatmul.msk.f32.gmra.mxu0 %vm393_vm1, %v3518_v27  ;;  %2709 = vmatmul.msk.f32.gmra.mxu1 %vm393_vm1, %v3507_v26 }
  0x49   : > { %2735 = vmatmul.msk.f32.gmra.mxu2 %vm393_vm1, %v3507_v26 }
  0x4a   : > { %2760 = vmatmul.msk.f32.gmra.mxu3 %vm393_vm1, %v3507_v26 }
  0x50   : > { %2686 = vmatmul.msk.f32.gmra.mxu0 %vm393_vm1, %v3529_v28  ;;  %2710 = vmatmul.msk.f32.gmra.mxu1 %vm393_vm1, %v3518_v27 }
  0x51   : > { %2736 = vmatmul.msk.f32.gmra.mxu2 %vm393_vm1, %v3518_v27 }
  0x52   : > { %2761 = vmatmul.msk.f32.gmra.mxu3 %vm393_vm1, %v3518_v27 }
  0x58   : > { %2687 = vmatmul.msk.f32.gmra.mxu0 %vm393_vm1, %v3540_v29  ;;  %2711 = vmatmul.msk.f32.gmra.mxu1 %vm393_vm1, %v3529_v28 }
  0x59   : > { %2737 = vmatmul.msk.f32.gmra.mxu2 %vm393_vm1, %v3529_v28 }
  0x5a   : > { %2762 = vmatmul.msk.f32.gmra.mxu3 %vm393_vm1, %v3529_v28 }
  0x60   : > { %2688 = vmatmul.msk.f32.gmra.mxu0 %vm393_vm1, %v3551_v30  ;;  %2712 = vmatmul.msk.f32.gmra.mxu1 %vm393_vm1, %v3540_v29 }
  0x61   : > { %2738 = vmatmul.msk.f32.gmra.mxu2 %vm393_vm1, %v3540_v29 }
  0x62   : > { %2763 = vmatmul.msk.f32.gmra.mxu3 %vm393_vm1, %v3540_v29 }
  0x68   : > { %2689 = vmatmul.msk.f32.gmra.mxu0 %vm393_vm1, %v3562_v31  ;;  %2713 = vmatmul.msk.f32.gmra.mxu1 %vm393_vm1, %v3551_v30 }
  0x69   : > { %2739 = vmatmul.msk.f32.gmra.mxu2 %vm393_vm1, %v3551_v30 }
  0x6a   : > { %2764 = vmatmul.msk.f32.gmra.mxu3 %vm393_vm1, %v3551_v30 }
  0x70   : > { %2690 = vmatmul.msk.f32.gmra.mxu0 %vm393_vm1, %v3579_v34  ;;  %2714 = vmatmul.msk.f32.gmra.mxu1 %vm393_vm1, %v3562_v31 }
  0x71   : > { %2740 = vmatmul.msk.f32.gmra.mxu2 %vm393_vm1, %v3562_v31 }
  0x72   : > { %2765 = vmatmul.msk.f32.gmra.mxu3 %vm393_vm1, %v3562_v31 }
  0x78   : > { %2691 = vmatmul.msk.f32.gmra.mxu0 %vm393_vm1, %v3590_v35  ;;  %2715 = vmatmul.msk.f32.gmra.mxu1 %vm393_vm1, %v3579_v34 }
  0x79   : > { %2741 = vmatmul.msk.f32.gmra.mxu2 %vm393_vm1, %v3579_v34 }
  0x7a   : > { %2766 = vmatmul.msk.f32.gmra.mxu3 %vm393_vm1, %v3579_v34 }
  0x80   : > { %2692 = vmatmul.msk.f32.gmra.mxu0 %vm393_vm1, %v3601_v36  ;;  %2716 = vmatmul.msk.f32.gmra.mxu1 %vm393_vm1, %v3590_v35 }
  0x81   : > { %2742 = vmatmul.msk.f32.gmra.mxu2 %vm393_vm1, %v3590_v35 }
  0x82   : > { %2767 = vmatmul.msk.f32.gmra.mxu3 %vm393_vm1, %v3590_v35 }
  0x88   : > { %2693 = vmatmul.msk.f32.gmra.mxu0 %vm393_vm1, %v3612_v37  ;;  %2717 = vmatmul.msk.f32.gmra.mxu1 %vm393_vm1, %v3601_v36 }
  0x89   : > { %2743 = vmatmul.msk.f32.gmra.mxu2 %vm393_vm1, %v3601_v36 }
  0x8a   : > { %2768 = vmatmul.msk.f32.gmra.mxu3 %vm393_vm1, %v3601_v36 }
  0x90   : > { %2694 = vmatmul.msk.f32.gmra.mxu0 %vm393_vm1, %v3623_v38  ;;  %2718 = vmatmul.msk.f32.gmra.mxu1 %vm393_vm1, %v3612_v37 }
  0x91   : > { %2744 = vmatmul.msk.f32.gmra.mxu2 %vm393_vm1, %v3612_v37 }
  0x92   : > { %2769 = vmatmul.msk.f32.gmra.mxu3 %vm393_vm1, %v3612_v37 }
  0x98   : > { %2695 = vmatmul.msk.f32.gmra.mxu0 %vm393_vm1, %v3634_v39  ;;  %2719 = vmatmul.msk.f32.gmra.mxu1 %vm393_vm1, %v3623_v38 }
  0x99   : > { %2745 = vmatmul.msk.f32.gmra.mxu2 %vm393_vm1, %v3623_v38 }
  0x9a   : > { %2770 = vmatmul.msk.f32.gmra.mxu3 %vm393_vm1, %v3623_v38 }
  0x9d   : > { %v490_v42 = vpop.f32.mrf.mxu0  ;;  %v3653_v44 = vpop.f32.mrf.mxu1 }
  0x9e   : > { %5577 = vst [vmem:[#allocation8_spill] sm:$0xff] %v3653_v44 }
  0xa0   : > { %2696 = vmatmul.msk.f32.gmra.mxu0 %vm393_vm1, %v3651_v43  ;;  %2720 = vmatmul.msk.f32.gmra.mxu1 %vm393_vm1, %v3634_v39 }
  0xa1   : > { %2746 = vmatmul.msk.f32.gmra.mxu2 %vm393_vm1, %v3634_v39 }
  0xa2   : > { %2771 = vmatmul.msk.f32.gmra.mxu3 %vm393_vm1, %v3634_v39 }
  0xa4   : > { %v677_v45 = vpop.f32.mrf.mxu2 }
  0xa5   : > { %v3663_v46 = vadd.f32 %v677_v45, %v490_v42  ;;  %v493_v47 = vpop.f32.mrf.mxu0  ;;  %v3668_v49 = vpop.f32.mrf.mxu1 }
  0xa6   : > { %v3693_v56 = vpop.f32.mrf.mxu3 }
  0xa8   : > { %2697 = vmatmul.msk.f32.gmra.mxu0 %vm393_vm1, %v3666_v48  ;;  %2721 = vmatmul.msk.f32.gmra.mxu1 %vm393_vm1, %v3651_v43 }
  0xa9   : > { %2747 = vmatmul.msk.f32.gmra.mxu2 %vm393_vm1, %v3651_v43 }
  0xaa   : > { %2772 = vmatmul.msk.f32.gmra.mxu3 %vm393_vm1, %v3651_v43 }
  0xac   : > { %v680_v50 = vpop.f32.mrf.mxu2 }
  0xad   : > { %v3678_v51 = vadd.f32 %v680_v50, %v493_v47  ;;  %v496_v52 = vpop.f32.mrf.mxu0  ;;  %v3683_v54 = vpop.f32.mrf.mxu1 }
  0xae   : > { %v3731_v6 = vpop.f32.mrf.mxu3 }
  0xb0   : > { %2698 = vmatmul.msk.f32.gmra.mxu0 %vm393_vm1, %v3681_v53  ;;  %2722 = vmatmul.msk.f32.gmra.mxu1 %vm393_vm1, %v3666_v48 }
  0xb1   : > { %2748 = vmatmul.msk.f32.gmra.mxu2 %vm393_vm1, %v3666_v48 }
  0xb2   : > { %2773 = vmatmul.msk.f32.gmra.mxu3 %vm393_vm1, %v3666_v48 }
  0xb4   : > { %v683_v55 = vpop.f32.mrf.mxu2 }
  0xb5   : > { %v3695_v57 = vadd.f32 %v683_v55, %v496_v52  ;;  %v499_v58 = vpop.f32.mrf.mxu0  ;;  %v3700_v60 = vpop.f32.mrf.mxu1 }
  0xb6   : > { %v3762_v17 = vpop.f32.mrf.mxu3 }
  0xb8   : > { %2699 = vmatmul.msk.f32.gmra.mxu0 %vm393_vm1, %v3698_v59  ;;  %2723 = vmatmul.msk.f32.gmra.mxu1 %vm393_vm1, %v3681_v53 }
  0xb9   : > { %2749 = vmatmul.msk.f32.gmra.mxu2 %vm393_vm1, %v3681_v53 }
  0xba   : > { %2774 = vmatmul.msk.f32.gmra.mxu3 %vm393_vm1, %v3681_v53 }
  0xbc   : > { %v686_v63 = vpop.f32.mrf.mxu2 }
  0xbd   : > { %v3717_v0 = vadd.f32 %v686_v63, %v499_v58  ;;  %v502_v1 = vpop.f32.mrf.mxu0  ;;  %v3728_v5 = vpop.f32.mrf.mxu1 }
  0xbe   : > { %v3791_v40 = vpop.f32.mrf.mxu3 }
  0xc0   : > { %2700 = vmatmul.msk.f32.gmra.mxu0 %vm393_vm1, %v3720_v2  ;;  %2724 = vmatmul.msk.f32.gmra.mxu1 %vm393_vm1, %v3698_v59 }
  0xc1   : > { %2750 = vmatmul.msk.f32.gmra.mxu2 %vm393_vm1, %v3698_v59 }
  0xc2   : > { %2775 = vmatmul.msk.f32.gmra.mxu3 %vm393_vm1, %v3698_v59 }
  0xc4   : > { %v689_v11 = vpop.f32.mrf.mxu2 }
  0xc5   : > { %v3753_v13 = vadd.f32 %v689_v11, %v502_v1  ;;  %v505_v14 = vpop.f32.mrf.mxu0  ;;  %v3758_v16 = vpop.f32.mrf.mxu1 }
  0xc6   : > { %v3807_v52 = vpop.f32.mrf.mxu3 }
  0xc8   : > { %2701 = vmatmul.msk.f32.gmra.mxu0 %vm393_vm1, %v3756_v15  ;;  %2725 = vmatmul.msk.f32.gmra.mxu1 %vm393_vm1, %v3720_v2 }
  0xc9   : > { %2751 = vmatmul.msk.f32.gmra.mxu2 %vm393_vm1, %v3720_v2 }
  0xca   : > { %2776 = vmatmul.msk.f32.gmra.mxu3 %vm393_vm1, %v3720_v2 }
  0xcc   : > { %v692_v21 = vpop.f32.mrf.mxu2 }
  0xcd   : > { %v3778_v24 = vadd.f32 %v692_v21, %v505_v14  ;;  %v508_v25 = vpop.f32.mrf.mxu0  ;;  %v3783_v33 = vpop.f32.mrf.mxu1  ;;  %v2900_v21 = vld [vmem:[%s5564_s1 + $0x128] sm:$0xff] }
  0xce   : > { %v3825_v4 = vpop.f32.mrf.mxu3  ;;  %1446 = vmatpush.msrb.mxu1 %v2900_v21 }
  0xd0   : > { %2702 = vmatmul.msk.f32.gmra.mxu0 %vm393_vm1, %v3781_v32  ;;  %2726 = vmatmul.msk.f32.gmra.mxu1 %vm393_vm1, %v3756_v15 }
  0xd1   : > { %2752 = vmatmul.msk.f32.gmra.mxu2 %vm393_vm1, %v3756_v15 }
  0xd2   : > { %2777 = vmatmul.msk.f32.gmra.mxu3 %vm393_vm1, %v3756_v15 }
  0xd4   : > { %v695_v41 = vpop.f32.mrf.mxu2 }
  0xd5   : > { %v3795_v42 = vadd.f32 %v695_v41, %v508_v25  ;;  %v511_v45 = vpop.f32.mrf.mxu0  ;;  %v3797_v47 = vpop.f32.mrf.mxu1 }
  0xd6   : > { %v3841_v11 = vpop.f32.mrf.mxu3 }
  0xd8   : > { %2788 = vmatmul.msk.f32.vlgmr.msrb.gmra.mxu0 %vm393_vm1, %v3467_v20  ;;  %2727 = vmatmul.msk.f32.gmra.mxu1 %vm393_vm1, %v3781_v32 }
  0xd9   : > { %2753 = vmatmul.msk.f32.gmra.mxu2 %vm393_vm1, %v3781_v32 }
  0xda   : > { %2778 = vmatmul.msk.f32.gmra.mxu3 %vm393_vm1, %v3781_v32 }
  0xdc   : > { %v698_v50 = vpop.f32.mrf.mxu2 }
  0xdd   : > { %v3809_v55 = vadd.f32 %v698_v50, %v511_v45  ;;  %v514_v58 = vpop.f32.mrf.mxu0  ;;  %v3811_v61 = vpop.f32.mrf.mxu1 }
  0xde   : > { %v3865_v25 = vpop.f32.mrf.mxu3 }
  0xdf   : > { %5578 = vst [vmem:[#allocation9_spill] sm:$0xff] %v3809_v55 }
  0xe0   : > { %2789 = vmatmul.msk.f32.gmra.mxu0 %vm393_vm1, %v3479_v22  ;;  %2728 = vmatmul.msk.f32.gmra.mxu1 %vm393_vm1, %v3438_v12  ;;  %5585 = vst [vmem:[#allocation16_spill] sm:$0xff] %v3865_v25  ;;  %v2981_v25 = vld [vmem:[%s5566_s3 + $0x1e0] sm:$0xff] }
  0xe1   : > { %2846 = vmatmul.msk.f32.vlgmr.msrb.gmra.mxu2 %vm393_vm1, %v3479_v22 }
  0xe2   : > { %2871 = vmatmul.msk.f32.vlgmr.msrb.gmra.mxu3 %vm393_vm1, %v3479_v22 }
  0xe4   : > { %v701_v62 = vpop.f32.mrf.mxu2 }
  0xe5   : > { %v3821_v63 = vadd.f32 %v701_v62, %v514_v58  ;;  %v517_v1 = vpop.f32.mrf.mxu0  ;;  %v3823_v3 = vpop.f32.mrf.mxu1 }
  0xe6   : > { %5580 = vst [vmem:[#allocation11_spill] sm:$0xff] %v3823_v3  ;;  %v4149_v3 = vld [vmem:[%s3422_s21 + $0xd0] sm:$0xff] }
  0xe7   : > { %5579 = vst [vmem:[#allocation10_spill] sm:$0xff] %v3821_v63 }
  0xe8   : > { %2790 = vmatmul.msk.f32.gmra.mxu0 %vm393_vm1, %v3490_v23  ;;  %2813 = vmatmul.msk.f32.vlgmr.msra.gmra.mxu1 %vm393_vm1, %v3467_v20 }
  0xe9   : > { %2847 = vmatmul.msk.f32.gmra.mxu2 %vm393_vm1, %v3490_v23 }
  0xea   : > { %2872 = vmatmul.msk.f32.gmra.mxu3 %vm393_vm1, %v3490_v23 }
  0xec   : > { %v704_v7 = vpop.f32.mrf.mxu2 }
  0xed   : > { %v3835_v8 = vadd.f32 %v704_v7, %v517_v1  ;;  %v520_v9 = vpop.f32.mrf.mxu0  ;;  %v3837_v10 = vpop.f32.mrf.mxu1 }
  0xee   : > { %5582 = vst [vmem:[#allocation13_spill] sm:$0xff] %v3837_v10  ;;  %v3881_v1 = vpop.f32.mrf.mxu3 }
  0xef   : > { %5581 = vst [vmem:[#allocation12_spill] sm:$0xff] %v3835_v8 }
  0xf0   : > { %2791 = vmatmul.msk.f32.gmra.mxu0 %vm393_vm1, %v3507_v26  ;;  %2814 = vmatmul.msk.f32.gmra.mxu1 %vm393_vm1, %v3479_v22  ;;  %v2899_v22 = vld [vmem:[%s5564_s1 + $0x120] sm:$0xff]  ;;  %5588 = vst [vmem:[#allocation19_spill] sm:$0xff] %v3881_v1 }
  0xf1   : > { %2848 = vmatmul.msk.f32.gmra.mxu2 %vm393_vm1, %v3507_v26  ;;  %1357 = vmatpush.msra.mxu0 %v2899_v22 }
  0xf2   : > { %2873 = vmatmul.msk.f32.gmra.mxu3 %vm393_vm1, %v3507_v26 }
  0xf4   : > { %v707_v20 = vpop.f32.mrf.mxu2 }
  0xf5   : > { %v3849_v14 = vadd.f32 %v707_v20, %v520_v9  ;;  %v523_v18 = vpop.f32.mrf.mxu0  ;;  %v3851_v19 = vpop.f32.mrf.mxu1 }
  0xf6   : > { %5584 = vst [vmem:[#allocation15_spill] sm:$0xff] %v3851_v19 }
  0xf7   : > { %5583 = vst [vmem:[#allocation14_spill] sm:$0xff] %v3849_v14 }
  0xf8   : > { %2792 = vmatmul.msk.f32.gmra.mxu0 %vm393_vm1, %v3518_v27  ;;  %2815 = vmatmul.msk.f32.gmra.mxu1 %vm393_vm1, %v3490_v23 }
  0xf9   : > { %2849 = vmatmul.msk.f32.gmra.mxu2 %vm393_vm1, %v3518_v27 }
  0xfa   : > { %2874 = vmatmul.msk.f32.gmra.mxu3 %vm393_vm1, %v3518_v27 }
  0xfc   : > { %v710_v41 = vpop.f32.mrf.mxu2 }
  0xfd   : > { %v3869_v45 = vadd.f32 %v710_v41, %v523_v18  ;;  %v526_v50 = vpop.f32.mrf.mxu0  ;;  %v3871_v58 = vpop.f32.mrf.mxu1 }
  0xfe   : > { %5587 = vst [vmem:[#allocation18_spill] sm:$0xff] %v3871_v58 }
  0xff   : > { %5586 = vst [vmem:[#allocation17_spill] sm:$0xff] %v3869_v45 }
 0x100   : > { %2793 = vmatmul.msk.f32.gmra.mxu0 %vm393_vm1, %v3529_v28  ;;  %2816 = vmatmul.msk.f32.gmra.mxu1 %vm393_vm1, %v3507_v26 }
 0x101   : > { %2850 = vmatmul.msk.f32.gmra.mxu2 %vm393_vm1, %v3529_v28 }
 0x102   : > { %2875 = vmatmul.msk.f32.gmra.mxu3 %vm393_vm1, %v3529_v28 }
 0x104   : > { %v713_v62 = vpop.f32.mrf.mxu2 }
 0x105   : > { %v3883_v7 = vadd.f32 %v713_v62, %v526_v50  ;;  %v529_v9 = vpop.f32.mrf.mxu0  ;;  %v3885_v20 = vpop.f32.mrf.mxu1 }
 0x106   : > { %5590 = vst [vmem:[#allocation21_spill] sm:$0xff] %v3885_v20  ;;  %v3899_v50 = vpop.f32.mrf.mxu3 }
 0x107   : > { %5589 = vst [vmem:[#allocation20_spill] sm:$0xff] %v3883_v7 }
 0x108   : > { %2794 = vmatmul.msk.f32.gmra.mxu0 %vm393_vm1, %v3540_v29  ;;  %2817 = vmatmul.msk.f32.gmra.mxu1 %vm393_vm1, %v3518_v27  ;;  %5593 = vst [vmem:[#allocation24_spill] sm:$0xff] %v3899_v50  ;;  %v4130_v50 = vld [vmem:[%s3422_s21 + $0xc8] sm:$0xff] }
 0x109   : > { %2851 = vmatmul.msk.f32.gmra.mxu2 %vm393_vm1, %v3540_v29 }
 0x10a   : > { %2876 = vmatmul.msk.f32.gmra.mxu3 %vm393_vm1, %v3540_v29 }
 0x10c   : > { %v716_v18 = vpop.f32.mrf.mxu2 }
 0x10d   : > { %v3895_v22 = vadd.f32 %v716_v18, %v529_v9  ;;  %v532_v21 = vpop.f32.mrf.mxu0  ;;  %v3897_v41 = vpop.f32.mrf.mxu1 }
 0x10e   : > { %5592 = vst [vmem:[#allocation23_spill] sm:$0xff] %v3897_v41 }
 0x10f   : > { %5591 = vst [vmem:[#allocation22_spill] sm:$0xff] %v3895_v22  ;;  %v3915_v22 = vpop.f32.mrf.mxu3 }
 0x110   : > { %2795 = vmatmul.msk.f32.gmra.mxu0 %vm393_vm1, %v3551_v30  ;;  %2818 = vmatmul.msk.f32.gmra.mxu1 %vm393_vm1, %v3529_v28  ;;  %5596 = vst [vmem:[#allocation27_spill] sm:$0xff] %v3915_v22 }
 0x111   : > { %2852 = vmatmul.msk.f32.gmra.mxu2 %vm393_vm1, %v3551_v30 }
 0x112   : > { %2877 = vmatmul.msk.f32.gmra.mxu3 %vm393_vm1, %v3551_v30 }
 0x114   : > { %v719_v62 = vpop.f32.mrf.mxu2 }
 0x115   : > { %v3909_v9 = vadd.f32 %v719_v62, %v532_v21  ;;  %v535_v18 = vpop.f32.mrf.mxu0  ;;  %v3911_v44 = vpop.f32.mrf.mxu1 }
 0x116   : > { %5595 = vst [vmem:[#allocation26_spill] sm:$0xff] %v3911_v44 }
 0x117   : > { %5594 = vst [vmem:[#allocation25_spill] sm:$0xff] %v3909_v9  ;;  %v3933_v44 = vpop.f32.mrf.mxu3 }
 0x118   : > { %2796 = vmatmul.msk.f32.gmra.mxu0 %vm393_vm1, %v3562_v31  ;;  %2819 = vmatmul.msk.f32.gmra.mxu1 %vm393_vm1, %v3540_v29  ;;  %5599 = vst [vmem:[#allocation30_spill] sm:$0xff] %v3933_v44 }
 0x119   : > { %2853 = vmatmul.msk.f32.gmra.mxu2 %vm393_vm1, %v3562_v31 }
 0x11a   : > { %2878 = vmatmul.msk.f32.gmra.mxu3 %vm393_vm1, %v3562_v31 }
 0x11c   : > { %v722_v41 = vpop.f32.mrf.mxu2 }
 0x11d   : > { %v3923_v21 = vadd.f32 %v722_v41, %v535_v18  ;;  %v538_v62 = vpop.f32.mrf.mxu0  ;;  %v3925_v9 = vpop.f32.mrf.mxu1 }
 0x11e   : > { %5598 = vst [vmem:[#allocation29_spill] sm:$0xff] %v3925_v9  ;;  %v2897_v9 = vld [vmem:[%s5564_s1 + $0x110] sm:$0xff] }
 0x11f   : > { %5597 = vst [vmem:[#allocation28_spill] sm:$0xff] %v3923_v21  ;;  %1358 = vmatpush.msra.mxu0 %v2897_v9 }
 0x120   : > { %2797 = vmatmul.msk.f32.gmra.mxu0 %vm393_vm1, %v3579_v34  ;;  %2820 = vmatmul.msk.f32.gmra.mxu1 %vm393_vm1, %v3551_v30 }
 0x121   : > { %2854 = vmatmul.msk.f32.gmra.mxu2 %vm393_vm1, %v3579_v34 }
 0x122   : > { %2879 = vmatmul.msk.f32.gmra.mxu3 %vm393_vm1, %v3579_v34 }
 0x124   : > { %v725_v7 = vpop.f32.mrf.mxu2 }
 0x125   : > { %v3937_v41 = vadd.f32 %v725_v7, %v538_v62  ;;  %v541_v18 = vpop.f32.mrf.mxu0  ;;  %v3939_v21 = vpop.f32.mrf.mxu1  ;;  %v2898_v7 = vld [vmem:[%s5564_s1 + $0x118] sm:$0xff] }
 0x126   : > { %5601 = vst [vmem:[#allocation32_spill] sm:$0xff] %v3939_v21  ;;  %1447 = vmatpush.msrb.mxu1 %v2898_v7 }
 0x127   : > { %5600 = vst [vmem:[#allocation31_spill] sm:$0xff] %v3937_v41  ;;  %v3955_v41 = vpop.f32.mrf.mxu3 }
 0x128   : > { %2798 = vmatmul.msk.f32.gmra.mxu0 %vm393_vm1, %v3590_v35  ;;  %2821 = vmatmul.msk.f32.gmra.mxu1 %vm393_vm1, %v3562_v31  ;;  %5602 = vst [vmem:[#allocation33_spill] sm:$0xff] %v3955_v41 }
 0x129   : > { %2855 = vmatmul.msk.f32.gmra.mxu2 %vm393_vm1, %v3590_v35 }
 0x12a   : > { %2880 = vmatmul.msk.f32.gmra.mxu3 %vm393_vm1, %v3590_v35 }
 0x12c   : > { %v728_v62 = vpop.f32.mrf.mxu2 }
 0x12d   : > { %v3957_v21 = vadd.f32 %v728_v62, %v541_v18  ;;  %v544_v20 = vpop.f32.mrf.mxu0  ;;  %v3959_v45 = vpop.f32.mrf.mxu1 }
 0x12e   : > { %5604 = vst [vmem:[#allocation35_spill] sm:$0xff] %v3959_v45 }
 0x12f   : > { %5603 = vst [vmem:[#allocation34_spill] sm:$0xff] %v3957_v21  ;;  %v3973_v21 = vpop.f32.mrf.mxu3 }
 0x130   : > { %2799 = vmatmul.msk.f32.gmra.mxu0 %vm393_vm1, %v3601_v36  ;;  %2822 = vmatmul.msk.f32.gmra.mxu1 %vm393_vm1, %v3579_v34  ;;  %5607 = vst [vmem:[#allocation38_spill] sm:$0xff] %v3973_v21 }
 0x131   : > { %2856 = vmatmul.msk.f32.gmra.mxu2 %vm393_vm1, %v3601_v36 }
 0x132   : > { %2881 = vmatmul.msk.f32.gmra.mxu3 %vm393_vm1, %v3601_v36 }
 0x134   : > { %v731_v9 = vpop.f32.mrf.mxu2 }
 0x135   : > { %v3969_v7 = vadd.f32 %v731_v9, %v544_v20  ;;  %v547_v18 = vpop.f32.mrf.mxu0  ;;  %v3971_v62 = vpop.f32.mrf.mxu1 }
 0x136   : > { %5606 = vst [vmem:[#allocation37_spill] sm:$0xff] %v3971_v62 }
 0x137   : > { %5605 = vst [vmem:[#allocation36_spill] sm:$0xff] %v3969_v7  ;;  %v3989_v62 = vpop.f32.mrf.mxu3 }
 0x138   : > { %2800 = vmatmul.msk.f32.gmra.mxu0 %vm393_vm1, %v3612_v37  ;;  %2823 = vmatmul.msk.f32.gmra.mxu1 %vm393_vm1, %v3590_v35  ;;  %5610 = vst [vmem:[#allocation41_spill] sm:$0xff] %v3989_v62 }
 0x139   : > { %2857 = vmatmul.msk.f32.gmra.mxu2 %vm393_vm1, %v3612_v37 }
 0x13a   : > { %2882 = vmatmul.msk.f32.gmra.mxu3 %vm393_vm1, %v3612_v37 }
 0x13c   : > { %v734_v45 = vpop.f32.mrf.mxu2 }
 0x13d   : > { %v3983_v20 = vadd.f32 %v734_v45, %v547_v18  ;;  %v550_v9 = vpop.f32.mrf.mxu0  ;;  %v3985_v7 = vpop.f32.mrf.mxu1 }
 0x13e   : > { %5609 = vst [vmem:[#allocation40_spill] sm:$0xff] %v3985_v7 }
 0x13f   : > { %5608 = vst [vmem:[#allocation39_spill] sm:$0xff] %v3983_v20  ;;  %v4007_v7 = vpop.f32.mrf.mxu3 }
 0x140   : > { %2801 = vmatmul.msk.f32.gmra.mxu0 %vm393_vm1, %v3623_v38  ;;  %2824 = vmatmul.msk.f32.gmra.mxu1 %vm393_vm1, %v3601_v36  ;;  %5613 = vst [vmem:[#allocation44_spill] sm:$0xff] %v4007_v7 }
 0x141   : > { %2858 = vmatmul.msk.f32.gmra.mxu2 %vm393_vm1, %v3623_v38 }
 0x142   : > { %2883 = vmatmul.msk.f32.gmra.mxu3 %vm393_vm1, %v3623_v38 }
 0x144   : > { %v737_v21 = vpop.f32.mrf.mxu2 }
 0x145   : > { %v3997_v45 = vadd.f32 %v737_v21, %v550_v9  ;;  %v553_v18 = vpop.f32.mrf.mxu0  ;;  %v3999_v20 = vpop.f32.mrf.mxu1 }
 0x146   : > { %5612 = vst [vmem:[#allocation43_spill] sm:$0xff] %v3999_v20 }
 0x147   : > { %5611 = vst [vmem:[#allocation42_spill] sm:$0xff] %v3997_v45  ;;  %v4023_v7 = vpop.f32.mrf.mxu3 }
 0x148   : > { %2802 = vmatmul.msk.f32.gmra.mxu0 %vm393_vm1, %v3634_v39  ;;  %2825 = vmatmul.msk.f32.gmra.mxu1 %vm393_vm1, %v3612_v37  ;;  %5616 = vst [vmem:[#allocation47_spill] sm:$0xff] %v4023_v7 }
 0x149   : > { %2859 = vmatmul.msk.f32.gmra.mxu2 %vm393_vm1, %v3634_v39 }
 0x14a   : > { %2884 = vmatmul.msk.f32.gmra.mxu3 %vm393_vm1, %v3634_v39 }
 0x14c   : > { %v740_v62 = vpop.f32.mrf.mxu2 }
 0x14d   : > { %v4011_v21 = vadd.f32 %v740_v62, %v553_v18  ;;  %v556_v9 = vpop.f32.mrf.mxu0  ;;  %v4013_v45 = vpop.f32.mrf.mxu1 }
 0x14e   : > { %5615 = vst [vmem:[#allocation46_spill] sm:$0xff] %v4013_v45  ;;  %v2895_v45 = vld [vmem:[%s5564_s1 + $0x100] sm:$0xff] }
 0x14f   : > { %5614 = vst [vmem:[#allocation45_spill] sm:$0xff] %v4011_v21  ;;  %1359 = vmatpush.msra.mxu0 %v2895_v45 }
 0x150   : > { %2803 = vmatmul.msk.f32.gmra.mxu0 %vm393_vm1, %v3651_v43  ;;  %2826 = vmatmul.msk.f32.gmra.mxu1 %vm393_vm1, %v3623_v38 }
 0x151   : > { %2860 = vmatmul.msk.f32.gmra.mxu2 %vm393_vm1, %v3651_v43 }
 0x152   : > { %2885 = vmatmul.msk.f32.gmra.mxu3 %vm393_vm1, %v3651_v43 }
 0x154   : > { %v743_v20 = vpop.f32.mrf.mxu2 }
 0x155   : > { %v4025_v62 = vadd.f32 %v743_v20, %v556_v9  ;;  %v4027_v18 = vpop.f32.mrf.mxu0  ;;  %v4029_v21 = vpop.f32.mrf.mxu1  ;;  %v2896_v20 = vld [vmem:[%s5564_s1 + $0x108] sm:$0xff] }
 0x156   : > { %5618 = vst [vmem:[#allocation49_spill] sm:$0xff] %v4029_v21  ;;  %1448 = vmatpush.msrb.mxu1 %v2896_v20  ;;  %v4049_v21 = vpop.f32.mrf.mxu3 }
 0x157   : > { %5617 = vst [vmem:[#allocation48_spill] sm:$0xff] %v4025_v62 }
 0x158   : > { %2804 = vmatmul.msk.f32.gmra.mxu0 %vm393_vm1, %v3666_v48  ;;  %2827 = vmatmul.msk.f32.gmra.mxu1 %vm393_vm1, %v3634_v39  ;;  %5620 = vst [vmem:[#allocation51_spill] sm:$0xff] %v4049_v21 }
 0x159   : > { %2861 = vmatmul.msk.f32.gmra.mxu2 %vm393_vm1, %v3666_v48 }
 0x15a   : > { %2886 = vmatmul.msk.f32.gmra.mxu3 %vm393_vm1, %v3666_v48 }
 0x15d   : > { %v4045_v9 = vpop.f32.mrf.mxu0  ;;  %v4047_v62 = vpop.f32.mrf.mxu1 }
 0x15e   : > { %5619 = vst [vmem:[#allocation50_spill] sm:$0xff] %v4047_v62  ;;  %v4065_v62 = vpop.f32.mrf.mxu3 }
 0x15f   : > { %5621 = vst [vmem:[#allocation52_spill] sm:$0xff] %v4065_v62 }
 0x160   : > { %2805 = vmatmul.msk.f32.gmra.mxu0 %vm393_vm1, %v3681_v53  ;;  %2828 = vmatmul.msk.f32.gmra.mxu1 %vm393_vm1, %v3651_v43 }
 0x161   : > { %2862 = vmatmul.msk.f32.gmra.mxu2 %vm393_vm1, %v3681_v53 }
 0x162   : > { %2887 = vmatmul.msk.f32.gmra.mxu3 %vm393_vm1, %v3681_v53 }
 0x165   : > { %v4059_v45 = vpop.f32.mrf.mxu0  ;;  %v4061_v20 = vpop.f32.mrf.mxu1 }
 0x166   : > { %v4083_v62 = vpop.f32.mrf.mxu3 }
 0x167   : > { %5622 = vst [vmem:[#allocation53_spill] sm:$0xff] %v4083_v62 }
 0x168   : > { %2806 = vmatmul.msk.f32.gmra.mxu0 %vm393_vm1, %v3698_v59  ;;  %2829 = vmatmul.msk.f32.gmra.mxu1 %vm393_vm1, %v3666_v48 }
 0x169   : > { %2863 = vmatmul.msk.f32.gmra.mxu2 %vm393_vm1, %v3698_v59 }
 0x16a   : > { %2888 = vmatmul.msk.f32.gmra.mxu3 %vm393_vm1, %v3698_v59 }
 0x16d   : > { %v4073_v21 = vpop.f32.mrf.mxu0  ;;  %v4075_v7 = vpop.f32.mrf.mxu1 }
 0x16e   : > { %v4099_v62 = vpop.f32.mrf.mxu3 }
 0x16f   : > { %5623 = vst [vmem:[#allocation54_spill] sm:$0xff] %v4099_v62 }
 0x170   : > { %2807 = vmatmul.msk.f32.gmra.mxu0 %vm393_vm1, %v3720_v2  ;;  %2830 = vmatmul.msk.f32.gmra.mxu1 %vm393_vm1, %v3681_v53 }
 0x171   : > { %2864 = vmatmul.msk.f32.gmra.mxu2 %vm393_vm1, %v3720_v2 }
 0x172   : > { %2889 = vmatmul.msk.f32.gmra.mxu3 %vm393_vm1, %v3720_v2 }
 0x175   : > { %v4087_v41 = vpop.f32.mrf.mxu0  ;;  %v4089_v44 = vpop.f32.mrf.mxu1 }
 0x176   : > { %v4117_v62 = vpop.f32.mrf.mxu3 }
 0x177   : > { %5624 = vst [vmem:[#allocation55_spill] sm:$0xff] %v4117_v62 }
 0x178   : > { %2808 = vmatmul.msk.f32.gmra.mxu0 %vm393_vm1, %v3756_v15  ;;  %2831 = vmatmul.msk.f32.gmra.mxu1 %vm393_vm1, %v3698_v59 }
 0x179   : > { %2865 = vmatmul.msk.f32.gmra.mxu2 %vm393_vm1, %v3756_v15 }
 0x17a   : > { %2890 = vmatmul.msk.f32.gmra.mxu3 %vm393_vm1, %v3756_v15 }
 0x17d   : > { %v4101_v58 = vpop.f32.mrf.mxu0  ;;  %v4103_v14 = vpop.f32.mrf.mxu1 }
 0x17e   : > { %v4136_v62 = vpop.f32.mrf.mxu3 }
 0x17f   : > { %5626 = vst [vmem:[#allocation57_spill] sm:$0xff] %v4136_v62 }
 0x180   : > { %2809 = vmatmul.msk.f32.gmra.mxu0 %vm393_vm1, %v3781_v32  ;;  %2832 = vmatmul.msk.f32.gmra.mxu1 %vm393_vm1, %v3720_v2 }
 0x181   : > { %2866 = vmatmul.msk.f32.gmra.mxu2 %vm393_vm1, %v3781_v32 }
 0x182   : > { %2891 = vmatmul.msk.f32.gmra.mxu3 %vm393_vm1, %v3781_v32 }
 0x185   : > { %v4113_v22 = vpop.f32.mrf.mxu0  ;;  %v4115_v19 = vpop.f32.mrf.mxu1 }
 0x186   : > { %v4159_v62 = vpop.f32.mrf.mxu3 }
 0x187   : > { %5629 = vst [vmem:[#allocation60_spill] sm:$0xff] %v4159_v62  ;;  %v2984_v62 = vld [vmem:[%s5566_s3 + $0x1f8] sm:$0xff] }
 0x188   : > { %2810 = vmatmul.msk.f32.gmra.mxu0 %vm393_vm1, %v3438_v12  ;;  %2833 = vmatmul.msk.f32.gmra.mxu1 %vm393_vm1, %v3756_v15 }
 0x189   : > { %2867 = vmatmul.msk.f32.gmra.mxu2 %vm393_vm1, %v3438_v12  ;;  %1814 = vmatpush.msra.mxu3 %v2984_v62  ;;  %v2982_v62 = vld [vmem:[%s5566_s3 + $0x1e8] sm:$0xff] }
 0x18a   : > { %2892 = vmatmul.msk.f32.gmra.mxu3 %vm393_vm1, %v3438_v12 }
 0x18b   : > { %1815 = vmatpush.msra.mxu3 %v2982_v62  ;;  %v2980_v62 = vld [vmem:[%s5566_s3 + $0x1d8] sm:$0xff] }
 0x18d   : > { %v4127_v8 = vpop.f32.mrf.mxu0  ;;  %v4132_v10 = vpop.f32.mrf.mxu1  ;;  %1816 = vmatpush.msra.mxu3 %v2980_v62 }
 0x18e   : > { %5625 = vst [vmem:[#allocation56_spill] sm:$0xff] %v4127_v8  ;;  %v4153_v8 = vpop.f32.mrf.mxu2 }
 0x18f   : > { %5628 = vst [vmem:[#allocation59_spill] sm:$0xff] %v4153_v8 }
 0x190   : > { %2811 = vmatmul.msk.f32.gmra.mxu0 %vm393_vm1, %v4130_v50  ;;  %2834 = vmatmul.msk.f32.gmra.mxu1 %vm393_vm1, %v3781_v32 }
 0x191   : > { %2868 = vmatmul.msk.f32.gmra.mxu2 %vm393_vm1, %v4130_v50 }
 0x192   : > { %2893 = vmatmul.msk.f32.gmra.mxu3 %vm393_vm1, %v4130_v50 }
 0x195   : > { %v4144_v63 = vpop.f32.mrf.mxu0  ;;  %v4146_v1 = vpop.f32.mrf.mxu1 }
 0x196   : > { %5627 = vst [vmem:[#allocation58_spill] sm:$0xff] %v4144_v63 }
 0x198   : > { %2904 = vmatmul.msk.f32.vlgmr.msra.gmra.mxu0 %vm393_vm1, %v3490_v23  ;;  %2835 = vmatmul.msk.f32.gmra.mxu1 %vm393_vm1, %v3438_v12  ;;  %v2983_v12 = vld [vmem:[%s5566_s3 + $0x1f0] sm:$0xff] }
 0x199   : > { %2869 = vmatmul.msk.f32.gmra.mxu2 %vm393_vm1, %v4149_v3 }
 0x19a   : > { %2894 = vmatmul.msk.f32.gmra.mxu3 %vm393_vm1, %v4149_v3  ;;  %1773 = vmatpush.msra.mxu2 %v2983_v12 }
 0x19c   : > { %1774 = vmatpush.msra.mxu2 %v2981_v25  ;;  %v2979_v25 = vld [vmem:[%s5566_s3 + $0x1d0] sm:$0xff] }
 0x19d   : > { %v4163_v63 = vpop.f32.mrf.mxu0  ;;  %v4165_v55 = vpop.f32.mrf.mxu1 }
 0x19e   : > { %5630 = vst [vmem:[#allocation61_spill] sm:$0xff] %v4163_v63  ;;  %1775 = vmatpush.msra.mxu2 %v2979_v25  ;;  %v2978_v25 = vld [vmem:[%s5566_s3 + $0x1c8] sm:$0xff] }
 0x19f   : > { %5631 = vst [vmem:[#allocation62_spill] sm:$0xff] %v4165_v55  ;;  %1817 = vmatpush.msra.mxu3 %v2978_v25  ;;  %v2976_v25 = vld [vmem:[%s5566_s3 + $0x1b8] sm:$0xff] }
 0x1a0   : > { %2905 = vmatmul.msk.f32.gmra.mxu0 %vm393_vm1, %v3507_v26  ;;  %2836 = vmatmul.msk.f32.gmra.mxu1 %vm393_vm1, %v4130_v50 }
 0x1a1   : > { %1818 = vmatpush.msra.mxu3 %v2976_v25 }
 0x1a5   : > { %v4177_v8 = vpop.f32.mrf.mxu0  ;;  %v4179_v63 = vpop.f32.mrf.mxu1 }
 0x1a6   : > { %5632 = vst [vmem:[#allocation63_spill] sm:$0xff] %v4177_v8  ;;  %v2962_v8 = vld [vmem:[%s5566_s3 + $0x148] sm:$0xff] }
 0x1a8   : > { %2906 = vmatmul.msk.f32.gmra.mxu0 %vm393_vm1, %v3518_v27  ;;  %2929 = vmatmul.msk.f32.vlgmr.msrb.gmra.mxu1 %vm393_vm1, %v3490_v23 }
 0x1ad   : > { %v4185_v55 = vpop.f32.mrf.mxu0  ;;  %v4193_v12 = vpop.f32.mrf.mxu1 }
 0x1ae   : > { %5633 = vst [vmem:[#allocation64_spill] sm:$0xff] %v4185_v55 }
 0x1b0   : > { %2907 = vmatmul.msk.f32.gmra.mxu0 %vm393_vm1, %v3529_v28  ;;  %2930 = vmatmul.msk.f32.gmra.mxu1 %vm393_vm1, %v3507_v26 }
 0x1b5   : > { %v4199_v23 = vpop.f32.mrf.mxu0  ;;  %v4201_v55 = vpop.f32.mrf.mxu1 }
 0x1b6   : > { %5634 = vst [vmem:[#allocation65_spill] sm:$0xff] %v4199_v23 }
 0x1b7   : > { %5635 = vst [vmem:[#allocation66_spill] sm:$0xff] %v4201_v55  ;;  %v2977_v55 = vld [vmem:[%s5566_s3 + $0x1c0] sm:$0xff] }
 0x1b8   : > { %2908 = vmatmul.msk.f32.gmra.mxu0 %vm393_vm1, %v3540_v29  ;;  %2931 = vmatmul.msk.f32.gmra.mxu1 %vm393_vm1, %v3518_v27 }
 0x1b9   : > { %1776 = vmatpush.msra.mxu2 %v2977_v55  ;;  %v2975_v55 = vld [vmem:[%s5566_s3 + $0x1b0] sm:$0xff] }
 0x1bb   : > { %1777 = vmatpush.msra.mxu2 %v2975_v55  ;;  %v2974_v55 = vld [vmem:[%s5566_s3 + $0x1a8] sm:$0xff] }
 0x1bc   : > { %1819 = vmatpush.msra.mxu3 %v2974_v55  ;;  %v2972_v55 = vld [vmem:[%s5566_s3 + $0x198] sm:$0xff] }
 0x1bd   : > { %v4213_v26 = vpop.f32.mrf.mxu0  ;;  %v4215_v23 = vpop.f32.mrf.mxu1 }
 0x1be   : > { %5636 = vst [vmem:[#allocation67_spill] sm:$0xff] %v4213_v26  ;;  %1820 = vmatpush.msra.mxu3 %v2972_v55  ;;  %v2970_v55 = vld [vmem:[%s5566_s3 + $0x188] sm:$0xff] }
 0x1bf   : > { %5637 = vst [vmem:[#allocation68_spill] sm:$0xff] %v4215_v23  ;;  %v2961_v23 = vld [vmem:[%s5566_s3 + $0x140] sm:$0xff] }
 0x1c0   : > { %2909 = vmatmul.msk.f32.gmra.mxu0 %vm393_vm1, %v3551_v30  ;;  %2932 = vmatmul.msk.f32.gmra.mxu1 %vm393_vm1, %v3529_v28 }
 0x1c1   : > { %1821 = vmatpush.msra.mxu3 %v2970_v55 }
 0x1c5   : > { %v4221_v27 = vpop.f32.mrf.mxu0  ;;  %v4229_v62 = vpop.f32.mrf.mxu1 }
 0x1c6   : > { %5638 = vst [vmem:[#allocation69_spill] sm:$0xff] %v4221_v27 }
 0x1c7   : > { %5639 = vst [vmem:[#allocation70_spill] sm:$0xff] %v4229_v62  ;;  %v767_v62 = vadd.f32 %v3693_v56, %v3668_v49 }
 0x1c8   : > { %2910 = vmatmul.msk.f32.gmra.mxu0 %vm393_vm1, %v3562_v31  ;;  %2933 = vmatmul.msk.f32.gmra.mxu1 %vm393_vm1, %v3540_v29 }
 0x1c9   : > { %v1035_v56 = vadd.f32 %v4061_v20, %v767_v62 }
 0x1cd   : > { %v4235_v28 = vpop.f32.mrf.mxu0  ;;  %v4237_v27 = vpop.f32.mrf.mxu1 }
 0x1ce   : > { %5640 = vst [vmem:[#allocation71_spill] sm:$0xff] %v4235_v28 }
 0x1cf   : > { %5641 = vst [vmem:[#allocation72_spill] sm:$0xff] %v4237_v27  ;;  %v2973_v27 = vld [vmem:[%s5566_s3 + $0x1a0] sm:$0xff] }
 0x1d0   : > { %2911 = vmatmul.msk.f32.gmra.mxu0 %vm393_vm1, %v3579_v34  ;;  %2934 = vmatmul.msk.f32.gmra.mxu1 %vm393_vm1, %v3551_v30 }
 0x1d1   : > { %1778 = vmatpush.msra.mxu2 %v2973_v27  ;;  %v2971_v27 = vld [vmem:[%s5566_s3 + $0x190] sm:$0xff] }
 0x1d3   : > { %1779 = vmatpush.msra.mxu2 %v2971_v27  ;;  %v2969_v27 = vld [vmem:[%s5566_s3 + $0x180] sm:$0xff] }
 0x1d5   : > { %v4249_v29 = vpop.f32.mrf.mxu0  ;;  %v4251_v28 = vpop.f32.mrf.mxu1  ;;  %1780 = vmatpush.msra.mxu2 %v2969_v27  ;;  %v2967_v27 = vld [vmem:[%s5566_s3 + $0x170] sm:$0xff] }
 0x1d6   : > { %5642 = vst [vmem:[#allocation73_spill] sm:$0xff] %v4249_v29 }
 0x1d7   : > { %5643 = vst [vmem:[#allocation74_spill] sm:$0xff] %v4251_v28  ;;  %1781 = vmatpush.msra.mxu2 %v2967_v27  ;;  %v2965_v27 = vld [vmem:[%s5566_s3 + $0x160] sm:$0xff] }
 0x1d8   : > { %2912 = vmatmul.msk.f32.gmra.mxu0 %vm393_vm1, %v3590_v35  ;;  %2935 = vmatmul.msk.f32.gmra.mxu1 %vm393_vm1, %v3562_v31 }
 0x1d9   : > { %1782 = vmatpush.msra.mxu2 %v2965_v27 }
 0x1dd   : > { %v4257_v30 = vpop.f32.mrf.mxu0  ;;  %v4265_v25 = vpop.f32.mrf.mxu1 }
 0x1de   : > { %5644 = vst [vmem:[#allocation75_spill] sm:$0xff] %v4257_v30 }
 0x1df   : > { %5645 = vst [vmem:[#allocation76_spill] sm:$0xff] %v4265_v25 }
 0x1e0   : > { %2913 = vmatmul.msk.f32.gmra.mxu0 %vm393_vm1, %v3601_v36  ;;  %2936 = vmatmul.msk.f32.gmra.mxu1 %vm393_vm1, %v3579_v34 }
 0x1e5   : > { %v4271_v31 = vpop.f32.mrf.mxu0  ;;  %v4273_v30 = vpop.f32.mrf.mxu1 }
 0x1e6   : > { %5646 = vst [vmem:[#allocation77_spill] sm:$0xff] %v4271_v31 }
 0x1e7   : > { %5647 = vst [vmem:[#allocation78_spill] sm:$0xff] %v4273_v30  ;;  %v1117_v30 = vpop.f32.mrf.mxu2 }
 0x1e8   : > { %2914 = vmatmul.msk.f32.gmra.mxu0 %vm393_vm1, %v3612_v37  ;;  %2937 = vmatmul.msk.f32.gmra.mxu1 %vm393_vm1, %v3590_v35  ;;  %v4293_v35 = vpop.f32.mrf.mxu3 }
 0x1e9   : > { %v1279_v20 = vadd.f32 %v4293_v35, %v1035_v56 }
 0x1ed   : > { %v4285_v34 = vpop.f32.mrf.mxu0  ;;  %v4287_v31 = vpop.f32.mrf.mxu1 }
 0x1ee   : > { %5648 = vst [vmem:[#allocation79_spill] sm:$0xff] %v4285_v34 }
 0x1ef   : > { %5649 = vst [vmem:[#allocation80_spill] sm:$0xff] %v4287_v31 }
 0x1f0   : > { %2915 = vmatmul.msk.f32.gmra.mxu0 %vm393_vm1, %v3623_v38  ;;  %2938 = vmatmul.msk.f32.gmra.mxu1 %vm393_vm1, %v3601_v36  ;;  %v4309_v36 = vpop.f32.mrf.mxu2  ;;  %v4313_v31 = vpop.f32.mrf.mxu3 }
 0x1f5   : > { %v4295_v29 = vpop.f32.mrf.mxu0  ;;  %v4303_v34 = vpop.f32.mrf.mxu1 }
 0x1f6   : > { %5650 = vst [vmem:[#allocation81_spill] sm:$0xff] %v4295_v29 }
 0x1f7   : > { %5651 = vst [vmem:[#allocation82_spill] sm:$0xff] %v4303_v34 }
 0x1f8   : > { %2916 = vmatmul.msk.f32.gmra.mxu0 %vm393_vm1, %v3634_v39  ;;  %2939 = vmatmul.msk.f32.gmra.mxu1 %vm393_vm1, %v3612_v37  ;;  %v2968_v37 = vld [vmem:[%s5566_s3 + $0x178] sm:$0xff]  ;;  %v4327_v55 = vpop.f32.mrf.mxu2  ;;  %v4333_v34 = vpop.f32.mrf.mxu3 }
 0x1f9   : > { %1822 = vmatpush.msra.mxu3 %v2968_v37  ;;  %v2966_v37 = vld [vmem:[%s5566_s3 + $0x168] sm:$0xff] }
 0x1fb   : > { %1823 = vmatpush.msra.mxu3 %v2966_v37 }
 0x1fd   : > { %v4311_v29 = vpop.f32.mrf.mxu0  ;;  %v4315_v25 = vpop.f32.mrf.mxu1 }
 0x1fe   : > { %5652 = vst [vmem:[#allocation83_spill] sm:$0xff] %v4311_v29 }
 0x1ff   : > { %5653 = vst [vmem:[#allocation84_spill] sm:$0xff] %v4315_v25 }
 0x200   : > { %2917 = vmatmul.msk.f32.gmra.mxu0 %vm393_vm1, %v3651_v43  ;;  %2940 = vmatmul.msk.f32.gmra.mxu1 %vm393_vm1, %v3623_v38 }
 0x205   : > { %v4329_v29 = vpop.f32.mrf.mxu0  ;;  %v4331_v25 = vpop.f32.mrf.mxu1 }
 0x206   : > { %5654 = vst [vmem:[#allocation85_spill] sm:$0xff] %v4329_v29  ;;  %v4347_v29 = vpop.f32.mrf.mxu2 }
 0x207   : > { %5655 = vst [vmem:[#allocation86_spill] sm:$0xff] %v4331_v25 }
 0x208   : > { %2918 = vmatmul.msk.f32.gmra.mxu0 %vm393_vm1, %v3666_v48  ;;  %2941 = vmatmul.msk.f32.gmra.mxu1 %vm393_vm1, %v3634_v39  ;;  %v4355_v39 = vpop.f32.mrf.mxu3 }
 0x20d   : > { %v4339_v38 = vpop.f32.mrf.mxu0  ;;  %v4349_v25 = vpop.f32.mrf.mxu1 }
 0x20e   : > { %5656 = vst [vmem:[#allocation87_spill] sm:$0xff] %v4339_v38  ;;  %v4359_v26 = vpop.f32.mrf.mxu2 }
 0x20f   : > { %5657 = vst [vmem:[#allocation88_spill] sm:$0xff] %v4349_v25  ;;  %v2964_v25 = vld [vmem:[%s5566_s3 + $0x158] sm:$0xff] }
 0x210   : > { %2919 = vmatmul.msk.f32.gmra.mxu0 %vm393_vm1, %v3681_v53  ;;  %2942 = vmatmul.msk.f32.gmra.mxu1 %vm393_vm1, %v3651_v43  ;;  %v4365_v27 = vpop.f32.mrf.mxu3  ;;  %v2963_v43 = vld [vmem:[%s5566_s3 + $0x150] sm:$0xff] }
 0x211   : > { %1783 = vmatpush.msra.mxu2 %v2963_v43  ;;  %1824 = vmatpush.msra.mxu3 %v2964_v25 }
 0x213   : > { %1784 = vmatpush.msra.mxu2 %v2961_v23  ;;  %1825 = vmatpush.msra.mxu3 %v2962_v8  ;;  %v2958_v8 = vld [vmem:[%s5566_s3 + $0x128] sm:$0xff] }
 0x215   : > { %v1361_v38 = vpop.f32.mrf.mxu0  ;;  %v4357_v28 = vpop.f32.mrf.mxu1 }
 0x216   : > { %5658 = vst [vmem:[#allocation89_spill] sm:$0xff] %v4357_v28  ;;  %v4399_v25 = vpop.f32.mrf.mxu2 }
 0x218   : > { %2920 = vmatmul.msk.f32.gmra.mxu0 %vm393_vm1, %v3698_v59  ;;  %2943 = vmatmul.msk.f32.gmra.mxu1 %vm393_vm1, %v3666_v48  ;;  %v1034_v48 = vadd.f32 %v4027_v18, %v3663_v46  ;;  %v2959_v46 = vld [vmem:[%s5566_s3 + $0x130] sm:$0xff]  ;;  %v2960_v18 = vld [vmem:[%s5566_s3 + $0x138] sm:$0xff] }
 0x219   : > { %1785 = vmatpush.msra.mxu2 %v2959_v46  ;;  %1826 = vmatpush.msra.mxu3 %v2960_v18  ;;  %v770_v18 = vadd.f32 %v3731_v6, %v3683_v54 }
 0x21a   : > { %v1278_v49 = vadd.f32 %v1117_v30, %v1034_v48  ;;  %v2956_v48 = vld [vmem:[%s5566_s3 + $0x118] sm:$0xff] }
 0x21b   : > { %1827 = vmatpush.msra.mxu3 %v2958_v8  ;;  %v2954_v8 = vld [vmem:[%s5566_s3 + $0x108] sm:$0xff] }
 0x21c   : > { %v1522_v43 = vadd.f32 %v1361_v38, %v1278_v49  ;;  %v2955_v38 = vld [vmem:[%s5566_s3 + $0x110] sm:$0xff]  ;;  %v4418_v49 = vpop.f32.mrf.mxu3 }
 0x21d   : > { %v1364_v37 = vpop.f32.mrf.mxu0  ;;  %v4373_v28 = vpop.f32.mrf.mxu1  ;;  %1828 = vmatpush.msra.mxu3 %v2956_v48 }
 0x21e   : > { %5659 = vst [vmem:[#allocation90_spill] sm:$0xff] %v4373_v28  ;;  %v1570_v28 = vld [vmem:[%s5565_s2] sm:$0x3] }
 0x21f   : > { %v4401_v23 = vperm.slane %v1570_v28, 0  ;;  %v4410_v30 = vperm.slane %v1570_v28, 1  ;;  %v1036_v28 = vadd.f32 %v4045_v9, %v3678_v51  ;;  %v1037_v51 = vadd.f32 %v4075_v7, %v770_v18  ;;  %1829 = vmatpush.msra.mxu3 %v2954_v8  ;;  %v3047_v9 = vld [vmem:[%s5566_s3 + $0x3f0] sm:$0xff]  ;;  %v4444_v7 = vpop.f32.mrf.mxu2 }
 0x220   : > { %2921 = vmatmul.msk.f32.gmra.mxu0 %vm393_vm1, %v3720_v2  ;;  %2944 = vmatmul.msk.f32.gmra.mxu1 %vm393_vm1, %v3681_v53  ;;  %v2957_v53 = vld [vmem:[%s5566_s3 + $0x120] sm:$0xff]  ;;  %v1038_v8 = vadd.f32 %v4059_v45, %v3695_v57 }
 0x221   : > { %1786 = vmatpush.msra.mxu2 %v2957_v53  ;;  %v1576_v35 = vadd.f32 %v4401_v23, %v1522_v43  ;;  %v2953_v53 = vld [vmem:[%s5566_s3 + $0x100] sm:$0xff]  ;;  %v1280_v54 = vadd.f32 %v4309_v36, %v1036_v28  ;;  %v3048_v43 = vld [vmem:[%s5566_s3 + $0x3f8] sm:$0xff]  ;;  %2101 = vmatpush.msrb.mxu0 %v3047_v9  ;;  %v3046_v36 = vld [vmem:[%s5566_s3 + $0x3e8] sm:$0xff] }
 0x222   : > { %2142 = vmatpush.msra.mxu1 %v3048_v43  ;;  %v1282_v57 = vadd.f32 %v4327_v55, %v1038_v8  ;;  %v3039_v9 = vld [vmem:[%s5566_s3 + $0x3b0] sm:$0xff]  ;;  %v3040_v43 = vld [vmem:[%s5566_s3 + $0x3b8] sm:$0xff] }
 0x223   : > { %1787 = vmatpush.msra.mxu2 %v2955_v38  ;;  %v1524_v38 = vadd.f32 %v1364_v37, %v1280_v54  ;;  %v773_v37 = vadd.f32 %v3762_v17, %v3700_v60  ;;  %v3041_v60 = vld [vmem:[%s5566_s3 + $0x3c0] sm:$0xff]  ;;  %v3042_v17 = vld [vmem:[%s5566_s3 + $0x3c8] sm:$0xff] }
 0x224   : > { %2143 = vmatpush.msra.mxu1 %v3046_v36 }
 0x225   : > { %v1367_v62 = vpop.f32.mrf.mxu0  ;;  %v1450_v46 = vpop.f32.mrf.mxu1  ;;  %1788 = vmatpush.msra.mxu2 %v2953_v53  ;;  %v3044_v53 = vld [vmem:[%s5566_s3 + $0x3d8] sm:$0xff]  ;;  %v1039_v45 = vadd.f32 %v4089_v44, %v773_v37  ;;  %v3037_v44 = vld [vmem:[%s5566_s3 + $0x3a0] sm:$0xff] }
 0x226   : > { %v1523_v56 = vadd.f32 %v1450_v46, %v1279_v20  ;;  %v1624_v20 = vmax.f32 %v1576_v35, 0.0  ;;  %v1281_v46 = vadd.f32 %v4313_v31, %v1037_v51  ;;  %v1578_v31 = vadd.f32 %v4401_v23, %v1524_v38  ;;  %2144 = vmatpush.msra.mxu1 %v3044_v53  ;;  %v4464_v51 = vpop.f32.mrf.mxu3 }
 0x227   : > { %v1526_v38 = vadd.f32 %v1367_v62, %v1282_v57  ;;  %v776_v62 = vadd.f32 %v3791_v40, %v3728_v5  ;;  %v4508_v40 = vld [vmem:[%s3422_s21 + $0xc0] sm:$0xff]  ;;  %v3032_v57 = vld [vmem:[%s5566_s3 + $0x378] sm:$0xff] }
 0x228   : > { %2922 = vmatmul.msk.f32.gmra.mxu0 %vm393_vm1, %v3756_v15  ;;  %v1577_v6 = vadd.f32 %v4410_v30, %v1523_v56  ;;  %2945 = vmatmul.msk.f32.gmra.mxu1 %vm393_vm1, %v3698_v59  ;;  %v3045_v59 = vld [vmem:[%s5566_s3 + $0x3e0] sm:$0xff]  ;;  %v3043_v56 = vld [vmem:[%s5566_s3 + $0x3d0] sm:$0xff] }
 0x229   : > { %2102 = vmatpush.msrb.mxu0 %v3045_v59  ;;  %2145 = vmatpush.msra.mxu1 %v3042_v17  ;;  %v1580_v53 = vadd.f32 %v4401_v23, %v1526_v38  ;;  %v3031_v17 = vld [vmem:[%s5566_s3 + $0x370] sm:$0xff] }
 0x22a   : > { %v1625_v48 = vmax.f32 %v1577_v6, 0.0 }
 0x22b   : > { %2103 = vmatpush.msrb.mxu0 %v3043_v56  ;;  %2146 = vmatpush.msra.mxu1 %v3040_v43  ;;  %v3036_v56 = vld [vmem:[%s5566_s3 + $0x398] sm:$0xff] }
 0x22c   : > { %v1672_v18 = vmax.f32 %v1624_v20, %v1625_v48  ;;  %v1626_v20 = vmax.f32 %v1578_v31, 0.0  ;;  %v1283_v48 = vadd.f32 %v4333_v34, %v1039_v45  ;;  %v1040_v34 = vadd.f32 %v4073_v21, %v3717_v0  ;;  %v3033_v31 = vld [vmem:[%s5566_s3 + $0x380] sm:$0xff]  ;;  %v3034_v0 = vld [vmem:[%s5566_s3 + $0x388] sm:$0xff] }
 0x22d   : > { %v1370_v28 = vpop.f32.mrf.mxu0  ;;  %v1453_v35 = vpop.f32.mrf.mxu1  ;;  %2104 = vmatpush.msrb.mxu0 %v3041_v60 }
 0x22e   : > { %v1525_v54 = vadd.f32 %v1453_v35, %v1281_v46  ;;  %v4494_v46 = vpop.f32.mrf.mxu2  ;;  %v3035_v35 = vld [vmem:[%s5566_s3 + $0x390] sm:$0xff]  ;;  %v1284_v21 = vadd.f32 %v4347_v29, %v1040_v34  ;;  %v4523_v60 = vpop.f32.mrf.mxu3  ;;  %v1628_v29 = vmax.f32 %v1580_v53, 0.0  ;;  %v3022_v53 = vld [vmem:[%s5566_s3 + $0x328] sm:$0xff] }
 0x22f   : > { %2105 = vmatpush.msrb.mxu0 %v3039_v9 }
 0x230   : > { %2923 = vmatmul.msk.f32.gmra.mxu0 %vm393_vm1, %v3781_v32  ;;  %v1579_v6 = vadd.f32 %v4410_v30, %v1525_v54  ;;  %2946 = vmatmul.msk.f32.gmra.mxu1 %vm393_vm1, %v3720_v2  ;;  %v3038_v2 = vld [vmem:[%s5566_s3 + $0x3a8] sm:$0xff]  ;;  %v1528_v45 = vadd.f32 %v1370_v28, %v1284_v21  ;;  %v3027_v28 = vld [vmem:[%s5566_s3 + $0x350] sm:$0xff] }
 0x231   : > { %2106 = vmatpush.msrb.mxu0 %v3037_v44  ;;  %2147 = vmatpush.msra.mxu1 %v3038_v2  ;;  %v779_v44 = vadd.f32 %v3807_v52, %v3758_v16  ;;  %v1042_v2 = vadd.f32 %v4087_v41, %v3753_v13  ;;  %v3026_v16 = vld [vmem:[%s5566_s3 + $0x348] sm:$0xff] }
 0x232   : > { %v1627_v55 = vmax.f32 %v1579_v6, 0.0  ;;  %v3030_v6 = vld [vmem:[%s5566_s3 + $0x368] sm:$0xff] }
 0x233   : > { %2107 = vmatpush.msrb.mxu0 %v3035_v35  ;;  %2148 = vmatpush.msra.mxu1 %v3036_v56  ;;  %v1286_v13 = vadd.f32 %v4359_v26, %v1042_v2  ;;  %v1043_v52 = vadd.f32 %v4115_v19, %v779_v44  ;;  %v3024_v35 = vld [vmem:[%s5566_s3 + $0x338] sm:$0xff]  ;;  %v1046_v44 = vadd.f32 %v4113_v22, %v3795_v42 }
 0x234   : > { %v1673_v59 = vmax.f32 %v1626_v20, %v1627_v55  ;;  %v3028_v55 = vld [vmem:[%s5566_s3 + $0x358] sm:$0xff] }
 0x235   : > { %v1373_v36 = vpop.f32.mrf.mxu0  ;;  %v1456_v37 = vpop.f32.mrf.mxu1  ;;  %2108 = vmatpush.msrb.mxu0 %v3033_v31  ;;  %2149 = vmatpush.msra.mxu1 %v3034_v0 }
 0x236   : > { %v4505_v8 = vmax.f32 %v1672_v18, %v1673_v59  ;;  %v1527_v5 = vadd.f32 %v1456_v37, %v1283_v48  ;;  %v1041_v18 = vadd.f32 %v4103_v14, %v776_v62  ;;  %v4549_v59 = vpop.f32.mrf.mxu2  ;;  %v3025_v62 = vld [vmem:[%s5566_s3 + $0x340] sm:$0xff]  ;;  %v3023_v37 = vld [vmem:[%s5566_s3 + $0x330] sm:$0xff]  ;;  %v1530_v34 = vadd.f32 %v1373_v36, %v1286_v13  ;;  %v4570_v19 = vpop.f32.mrf.mxu3 }
 0x237   : > { %2109 = vmatpush.msrb.mxu0 %v3031_v17  ;;  %2150 = vmatpush.msra.mxu1 %v3032_v57  ;;  %v782_v36 = vadd.f32 %v3825_v4, %v3783_v33  ;;  %v1044_v17 = vadd.f32 %v4101_v58, %v3778_v24  ;;  %v3017_v33 = vld [vmem:[%s5566_s3 + $0x300] sm:$0xff]  ;;  %v3018_v4 = vld [vmem:[%s5566_s3 + $0x308] sm:$0xff] }
 0x238   : > { %2924 = vmatmul.msk.f32.gmra.mxu0 %vm393_vm1, %v4508_v40  ;;  %v1581_v54 = vadd.f32 %v4410_v30, %v1527_v5  ;;  %2947 = vmatmul.msk.f32.gmra.mxu1 %vm393_vm1, %v3756_v15  ;;  %v3029_v15 = vld [vmem:[%s5566_s3 + $0x360] sm:$0xff]  ;;  %v1285_v9 = vadd.f32 %v4355_v39, %v1041_v18  ;;  %v1582_v39 = vadd.f32 %v4401_v23, %v1528_v45  ;;  %v3019_v18 = vld [vmem:[%s5566_s3 + $0x310] sm:$0xff] }
 0x239   : > { %2110 = vmatpush.msrb.mxu0 %v3029_v15  ;;  %2151 = vmatpush.msra.mxu1 %v3030_v6  ;;  %v1287_v5 = vadd.f32 %v4365_v27, %v1043_v52  ;;  %v1584_v27 = vadd.f32 %v4401_v23, %v1530_v34  ;;  %v1288_v24 = vadd.f32 %v4399_v25, %v1044_v17  ;;  %v5660_v52 = vld [vmem:[#allocation16_spill] sm:$0xff]  ;;  %v5664_v17 = vld [vmem:[#allocation11_spill] sm:$0xff] }
 0x23a   : > { %v1629_v14 = vmax.f32 %v1581_v54, 0.0  ;;  %v1630_v56 = vmax.f32 %v1582_v39, 0.0  ;;  %v3020_v54 = vld [vmem:[%s5566_s3 + $0x318] sm:$0xff]  ;;  %v1045_v58 = vadd.f32 %v4132_v10, %v782_v36 }
 0x23b   : > { %2111 = vmatpush.msrb.mxu0 %v3027_v28  ;;  %2152 = vmatpush.msra.mxu1 %v3028_v55  ;;  %v1632_v15 = vmax.f32 %v1584_v27, 0.0  ;;  %v5665_v27 = vld [vmem:[#allocation19_spill] sm:$0xff] }
 0x23c   : > { %v1674_v43 = vmax.f32 %v1628_v29, %v1629_v14  ;;  %v1289_v25 = vadd.f32 %v4418_v49, %v1045_v58 }
 0x23d   : > { %v1376_v20 = vpop.f32.mrf.mxu0  ;;  %v1459_v38 = vpop.f32.mrf.mxu1  ;;  %2112 = vmatpush.msrb.mxu0 %v3025_v62  ;;  %2153 = vmatpush.msra.mxu1 %v3026_v16 }
 0x23e   : > { %v1529_v48 = vadd.f32 %v1459_v38, %v1285_v9  ;;  %v4606_v14 = vpop.f32.mrf.mxu2  ;;  %v1532_v6 = vadd.f32 %v1376_v20, %v1288_v24  ;;  %v375_v38 = vld [vmem:[%s3422_s21 + $0xd8] sm:$0xff]  ;;  %v4611_v28 = vpop.f32.mrf.mxu3  ;;  %v1290_v20 = vadd.f32 %v4444_v7, %v1046_v44  ;;  %s339_s21 = sand.u32 1, %s3280_s10  }
 0x23f   : > { %2113 = vmatpush.msrb.mxu0 %v3023_v37  ;;  %2154 = vmatpush.msra.mxu1 %v3024_v35  ;;  %v5661_v37 = vld [vmem:[#allocation9_spill] sm:$0xff]  ;;  %s2669_s16 = sshll.u32 %s339_s21, 3  ;;  %s2577_s14 = scalar_lea.sflag [#allocation4], %s339_s21 }
 0x240   : > { %2925 = vmatmul.msk.f32.gmra.mxu0 %vm393_vm1, %v4130_v50  ;;  %v1583_v41 = vadd.f32 %v4410_v30, %v1529_v48  ;;  %2948 = vmatmul.msk.f32.gmra.mxu1 %vm393_vm1, %v3781_v32  ;;  %v3021_v32 = vld [vmem:[%s5566_s3 + $0x320] sm:$0xff]  ;;  %v1586_v2 = vadd.f32 %v4401_v23, %v1532_v6  ;;  %s341_s28 = scalar_lea.vmem [#allocation5], %s2669_s16  ;;  %s3242_s16 = scalar_lea.hbm %s5572_s9, 16 }
 0x241   : > { %2114 = vmatpush.msrb.mxu0 %v3021_v32  ;;  %2155 = vmatpush.msra.mxu1 %v3022_v53  ;;  %v5663_v53 = vld [vmem:[#allocation62_spill] sm:$0xff]  ;;  %v5668_v44 = vld [vmem:[#allocation13_spill] sm:$0xff]  ;;  %s2589_s27 = sshll.u32 %s341_s28, 4  ;;  %p3244_p4 = scmp.lt.s32.totalorder %s3242_s16, %s3238_s0  ;;  %s2590_s27 = int_to_ptr.vmem [resolvable:$true] %s2589_s27 }
 0x242   : > { %v1631_v26 = vmax.f32 %v1583_v41, 0.0  ;;  %v1634_v62 = vmax.f32 %v1586_v2, 0.0  ;;  %v788_v41 = vadd.f32 %v5660_v52, %v3811_v61  ;;  %v5669_v2 = vld [vmem:[#allocation24_spill] sm:$0xff] }
 0x243   : > { %2115 = vmatpush.msrb.mxu0 %v3019_v18  ;;  %2156 = vmatpush.msra.mxu1 %v3020_v54  ;;  %p3245_p7 = por %p3244_p4, %p3243_p3 }
 0x244   : > { %v1675_v31 = vmax.f32 %v1630_v56, %v1631_v26 }
 0x245   : > { %v1379_v0 = vpop.f32.mrf.mxu0  ;;  %v1462_v21 = vpop.f32.mrf.mxu1  ;;  %2116 = vmatpush.msrb.mxu0 %v3017_v33  ;;  %2157 = vmatpush.msra.mxu1 %v3018_v4  ;;  %v5666_v33 = vld [vmem:[#allocation10_spill] sm:$0xff]  ;;  %p3246_p8 = pnand %p3245_p7, %p3241_p2 }
 0x246   : > { %v4590_v57 = vmax.f32 %v1674_v43, %v1675_v31  ;;  %v1531_v29 = vadd.f32 %v1462_v21, %v1287_v5  ;;  %v1534_v16 = vadd.f32 %v1379_v0, %v1290_v20  ;;  %v4634_v26 = vpop.f32.mrf.mxu3  ;;  %v5667_v4 = vld [vmem:[#allocation58_spill] sm:$0xff] }
 0x248   : > { %2926 = vmatmul.msk.f32.gmra.mxu0 %vm393_vm1, %v4149_v3  ;;  %v1585_v45 = vadd.f32 %v4410_v30, %v1531_v29  ;;  %2949 = vmatmul.msk.f32.gmra.mxu1 %vm393_vm1, %v4508_v40  ;;  %v785_v40 = vadd.f32 %v3841_v11, %v3797_v47  ;;  %v4624_v11 = vpop.f32.mrf.mxu2  ;;  %v1588_v56 = vadd.f32 %v4401_v23, %v1534_v16  ;;  %v1738_v16 = vld [vmem:[%s5566_s3 + $0xf0] sm:$0xff] }
 0x249   : > { %1789 = vmatmul.f32.vlgmr.msra.gmra.mxu2 %v4590_v57  ;;  %1830 = vmatmul.f32.vlgmr.msra.gmra.mxu3 %v4590_v57  ;;  %v791_v29 = vadd.f32 %v5665_v27, %v5664_v17  ;;  %v5676_v27 = vld [vmem:[#allocation66_spill] sm:$0xff] }
 0x24a   : > { %v1633_v9 = vmax.f32 %v1585_v45, 0.0  ;;  %v1047_v49 = vadd.f32 %v4146_v1, %v785_v40  ;;  %v5662_v1 = vld [vmem:[#allocation56_spill] sm:$0xff]  ;;  %v1636_v61 = vmax.f32 %v1588_v56, 0.0  ;;  %1855 = vmatpush.msrb.mxu2 %v1738_v16 }
 0x24b   : > { %v1048_v35 = vadd.f32 %v5662_v1, %v5661_v37 }
 0x24c   : > { %v1676_v43 = vmax.f32 %v1632_v15, %v1633_v9  ;;  %v1291_v42 = vadd.f32 %v4464_v51, %v1047_v49  ;;  %v1049_v51 = vadd.f32 %v5663_v53, %v788_v41  ;;  %v1051_v15 = vadd.f32 %v4179_v63, %v791_v29  ;;  %v5671_v49 = vld [vmem:[#allocation61_spill] sm:$0xff] }
 0x24d   : > { %v1382_v10 = vpop.f32.mrf.mxu0  ;;  %v1465_v55 = vpop.f32.mrf.mxu1  ;;  %v1292_v32 = vadd.f32 %v4494_v46, %v1048_v35  ;;  %v1732_v53 = vld [vmem:[%s5566_s3 + $0xc0] sm:$0xff] }
 0x24e   : > { %v1533_v39 = vadd.f32 %v1465_v55, %v1289_v25  ;;  %v1293_v36 = vadd.f32 %v4523_v60, %v1049_v51  ;;  %v4655_v6 = vpop.f32.mrf.mxu3 }
 0x24f   : > { %v1536_v31 = vadd.f32 %v1382_v10, %v1292_v32  ;;  %v1295_v10 = vadd.f32 %v4570_v19, %v1051_v15  ;;  %v1739_v19 = vld [vmem:[%s5566_s3 + $0xf8] sm:$0xff] }
 0x250   : > { %2927 = vmatmul.msk.f32.gmra.mxu0 %vm393_vm1, %v375_v38  ;;  %v1587_v48 = vadd.f32 %v4410_v30, %v1533_v39  ;;  %2950 = vmatmul.msk.f32.gmra.mxu1 %vm393_vm1, %v4130_v50  ;;  %v4644_v54 = vpop.f32.mrf.mxu2  ;;  %v794_v39 = vadd.f32 %v5669_v2, %v5668_v44  ;;  %v1735_v32 = vld [vmem:[%s5566_s3 + $0xd8] sm:$0xff] }
 0x251   : > { %v1590_v24 = vadd.f32 %v4401_v23, %v1536_v31  ;;  %1896 = vmatpush.msrb.mxu3 %v1739_v19  ;;  %v5680_v44 = vld [vmem:[#allocation64_spill] sm:$0xff] }
 0x252   : > { %v1635_v47 = vmax.f32 %v1587_v48, 0.0  ;;  %v1053_v52 = vadd.f32 %v4193_v12, %v794_v39 }
 0x253   : > { %v1638_v9 = vmax.f32 %v1590_v24, 0.0 }
 0x254   : > { %v1677_v22 = vmax.f32 %v1634_v62, %v1635_v47 }
 0x255   : > { %v1385_v13 = vpop.f32.mrf.mxu0  ;;  %v1468_v7 = vpop.f32.mrf.mxu1 }
 0x256   : > { %v4632_v34 = vmax.f32 %v1676_v43, %v1677_v22  ;;  %v1535_v50 = vadd.f32 %v1468_v7, %v1291_v42  ;;  %v1736_v42 = vld [vmem:[%s5566_s3 + $0xe0] sm:$0xff]  ;;  %v1737_v22 = vld [vmem:[%s5566_s3 + $0xe8] sm:$0xff]  ;;  %v4686_v35 = vpop.f32.mrf.mxu3 }
 0x257   : > { %1856 = vmatpush.msrb.mxu2 %v1736_v42  ;;  %1897 = vmatpush.msrb.mxu3 %v1737_v22 }
 0x258   : > { %v1589_v5 = vadd.f32 %v4410_v30, %v1535_v50  ;;  %2951 = vmatmul.msk.f32.gmra.mxu1 %vm393_vm1, %v4149_v3  ;;  %1792 = vmatmul.f32.gmra.mxu2 %v4632_v34  ;;  %v1050_v3 = vadd.f32 %v5667_v4, %v5666_v33  ;;  %v4671_v47 = vpop.f32.mrf.mxu2  ;;  %v1734_v50 = vld [vmem:[%s5566_s3 + $0xd0] sm:$0xff] }
 0x259   : > { %1833 = vmatmul.f32.gmra.mxu3 %v4632_v34  ;;  %1857 = vmatpush.msrb.mxu2 %v1734_v50  ;;  %v5683_v50 = vld [vmem:[#allocation33_spill] sm:$0xff] }
 0x25a   : > { %v1637_v0 = vmax.f32 %v1589_v5, 0.0  ;;  %v1294_v45 = vadd.f32 %v4549_v59, %v1050_v3  ;;  %v5670_v59 = vld [vmem:[#allocation12_spill] sm:$0xff]  ;;  %1898 = vmatpush.msrb.mxu3 %v1735_v32  ;;  %v5672_v5 = vld [vmem:[#allocation15_spill] sm:$0xff] }
 0x25b   : > { %v1052_v63 = vadd.f32 %v5671_v49, %v5670_v59  ;;  %1858 = vmatpush.msrb.mxu2 %v1732_v53  ;;  %v1728_v49 = vld [vmem:[%s5566_s3 + $0xa0] sm:$0xff]  ;;  %v5684_v53 = vld [vmem:[#allocation20_spill] sm:$0xff] }
 0x25c   : > { %v1678_v21 = vmax.f32 %v1636_v61, %v1637_v0  ;;  %v1538_v25 = vadd.f32 %v1385_v13, %v1294_v45  ;;  %v5673_v61 = vld [vmem:[#allocation27_spill] sm:$0xff]  ;;  %v5674_v0 = vld [vmem:[#allocation14_spill] sm:$0xff] }
 0x25d   : > { %v1388_v18 = vpop.f32.mrf.mxu0  ;;  %v1471_v46 = vpop.f32.mrf.mxu1  ;;  %v1296_v13 = vadd.f32 %v4606_v14, %v1052_v63  ;;  %v1297_v14 = vadd.f32 %v4611_v28, %v1053_v52  ;;  %v1733_v28 = vld [vmem:[%s5566_s3 + $0xc8] sm:$0xff]  ;;  %v797_v31 = vadd.f32 %v5673_v61, %v5672_v5 }
 0x25e   : > { %v1537_v58 = vadd.f32 %v1471_v46, %v1293_v36  ;;  %v1592_v48 = vadd.f32 %v4401_v23, %v1538_v25  ;;  %v5675_v36 = vld [vmem:[#allocation63_spill] sm:$0xff]  ;;  %1899 = vmatpush.msrb.mxu3 %v1733_v28  ;;  %v5678_v25 = vld [vmem:[#allocation30_spill] sm:$0xff] }
 0x25f   : > { %v1540_v37 = vadd.f32 %v1388_v18, %v1296_v13  ;;  %v1055_v29 = vadd.f32 %v5676_v27, %v797_v31  ;;  %v1729_v63 = vld [vmem:[%s5566_s3 + $0xa8] sm:$0xff] }
 0x260   : > { %v1591_v60 = vadd.f32 %v4410_v30, %v1537_v58  ;;  %2952 = vmatmul.msk.f32.gmra.mxu1 %vm393_vm1, %v375_v38  ;;  %v1640_v7 = vmax.f32 %v1592_v48, 0.0  ;;  %v4709_v4 = vpop.f32.mrf.mxu2 }
 0x261   : > { %v1594_v18 = vadd.f32 %v4401_v23, %v1540_v37  ;;  %v1299_v45 = vadd.f32 %v4634_v26, %v1055_v29  ;;  %v1730_v26 = vld [vmem:[%s5566_s3 + $0xb0] sm:$0xff] }
 0x262   : > { %v1639_v43 = vmax.f32 %v1591_v60, 0.0  ;;  %1859 = vmatpush.msrb.mxu2 %v1730_v26  ;;  %v1726_v37 = vld [vmem:[%s5566_s3 + $0x90] sm:$0xff] }
 0x263   : > { %v1642_v3 = vmax.f32 %v1594_v18, 0.0  ;;  %v5691_v26 = vld [vmem:[#allocation72_spill] sm:$0xff] }
 0x264   : > { %v1679_v55 = vmax.f32 %v1638_v9, %v1639_v43  ;;  %v5677_v9 = vld [vmem:[#allocation18_spill] sm:$0xff]  ;;  %1860 = vmatpush.msrb.mxu2 %v1728_v49 }
 0x265   : > { %v1391_v40 = vpop.f32.mrf.mxu0  ;;  %v1474_v20 = vpop.f32.mrf.mxu1  ;;  %v800_v43 = vadd.f32 %v5678_v25, %v5677_v9  ;;  %v5689_v25 = vld [vmem:[#allocation22_spill] sm:$0xff] }
 0x266   : > { %v4663_v62 = vmax.f32 %v1678_v21, %v1679_v55  ;;  %v1539_v38 = vadd.f32 %v1474_v20, %v1295_v10  ;;  %v1054_v21 = vadd.f32 %v5675_v36, %v5674_v0  ;;  %v4714_v10 = vpop.f32.mrf.mxu3  ;;  %1861 = vmatpush.msrb.mxu2 %v1726_v37  ;;  %v5686_v36 = vld [vmem:[#allocation70_spill] sm:$0xff]  ;;  %v5693_v37 = vld [vmem:[#allocation41_spill] sm:$0xff] }
 0x268   : > { %v1593_v41 = vadd.f32 %v4410_v30, %v1539_v38  ;;  %1795 = vmatmul.f32.gmra.mxu2 %v4663_v62  ;;  %1836 = vmatmul.f32.gmra.mxu3 %v4663_v62  ;;  %v1298_v17 = vadd.f32 %v4624_v11, %v1054_v21  ;;  %v5679_v11 = vld [vmem:[#allocation17_spill] sm:$0xff]  ;;  %v5681_v38 = vld [vmem:[#allocation68_spill] sm:$0xff]  ;;  %v4740_v52 = vpop.f32.mrf.mxu2 }
 0x269   : > { %2117 = vmatmul.f32.vlgmr.msrb.gmra.mxu0 %v4663_v62  ;;  %2158 = vmatmul.f32.vlgmr.msra.gmra.mxu1 %v4663_v62  ;;  %v1056_v2 = vadd.f32 %v5680_v44, %v5679_v11  ;;  %v1057_v16 = vadd.f32 %v5681_v38, %v800_v43  ;;  %v5690_v43 = vld [vmem:[#allocation67_spill] sm:$0xff] }
 0x26a   : > { %v1641_v1 = vmax.f32 %v1593_v41, 0.0  ;;  %v1542_v24 = vadd.f32 %v1391_v40, %v1298_v17  ;;  %v1731_v40 = vld [vmem:[%s5566_s3 + $0xb8] sm:$0xff] }
 0x26b   : > { %1900 = vmatpush.msrb.mxu3 %v1731_v40  ;;  %v1300_v48 = vadd.f32 %v4644_v54, %v1056_v2  ;;  %v1301_v54 = vadd.f32 %v4655_v6, %v1057_v16  ;;  %v1725_v6 = vld [vmem:[%s5566_s3 + $0x88] sm:$0xff]  ;;  %v1720_v2 = vld [vmem:[%s5566_s3 + $0x60] sm:$0xff] }
 0x26c   : > { %v1680_v12 = vmax.f32 %v1640_v7, %v1641_v1  ;;  %v1596_v39 = vadd.f32 %v4401_v23, %v1542_v24  ;;  %v1727_v1 = vld [vmem:[%s5566_s3 + $0x98] sm:$0xff]  ;;  %v5687_v24 = vld [vmem:[#allocation23_spill] sm:$0xff] }
 0x26d   : > { %v1394_v56 = vpop.f32.mrf.mxu0  ;;  %v1477_v51 = vpop.f32.mrf.mxu1  ;;  %1901 = vmatpush.msrb.mxu3 %v1729_v63 }
 0x26e   : > { %v1541_v46 = vadd.f32 %v1477_v51, %v1297_v14  ;;  %v1644_v42 = vmax.f32 %v1596_v39, 0.0  ;;  %v1544_v22 = vadd.f32 %v1394_v56, %v1300_v48  ;;  %v1724_v14 = vld [vmem:[%s5566_s3 + $0x80] sm:$0xff]  ;;  %v1248_v31 = vpop.f32.mrf.mxu3  ;;  %v1721_v39 = vld [vmem:[%s5566_s3 + $0x68] sm:$0xff] }
 0x26f   : > { %1902 = vmatpush.msrb.mxu3 %v1727_v1  ;;  %v5682_v56 = vld [vmem:[#allocation21_spill] sm:$0xff]  ;;  %1862 = vmatpush.msrb.mxu2 %v1724_v14 }
 0x270   : > { %v1595_v33 = vadd.f32 %v4410_v30, %v1541_v46  ;;  %v803_v32 = vadd.f32 %v5683_v50, %v5682_v56  ;;  %v5685_v51 = vld [vmem:[#allocation65_spill] sm:$0xff]  ;;  %v1598_v5 = vadd.f32 %v4401_v23, %v1544_v22  ;;  %v1718_v22 = vld [vmem:[%s5566_s3 + $0x50] sm:$0xff] }
 0x271   : > { %v1058_v28 = vadd.f32 %v5685_v51, %v5684_v53  ;;  %1903 = vmatpush.msrb.mxu3 %v1725_v6  ;;  %v5694_v14 = vld [vmem:[#allocation25_spill] sm:$0xff]  ;;  %v5696_v51 = vld [vmem:[#allocation74_spill] sm:$0xff] }
 0x272   : > { %v1643_v58 = vmax.f32 %v1595_v33, 0.0  ;;  %v1059_v21 = vadd.f32 %v5686_v36, %v803_v32  ;;  %v1646_v46 = vmax.f32 %v1598_v5, 0.0 }
 0x273   : > { %v1302_v0 = vadd.f32 %v4671_v47, %v1058_v28  ;;  %v1060_v47 = vadd.f32 %v5690_v43, %v5689_v25 }
 0x274   : > { %v1681_v15 = vmax.f32 %v1642_v3, %v1643_v58  ;;  %v1303_v29 = vadd.f32 %v4686_v35, %v1059_v21  ;;  %v5688_v58 = vld [vmem:[#allocation38_spill] sm:$0xff]  ;;  %v1722_v35 = vld [vmem:[%s5566_s3 + $0x70] sm:$0xff] }
 0x275   : > { %v1397_v60 = vpop.f32.mrf.mxu0  ;;  %v1480_v55 = vpop.f32.mrf.mxu1  ;;  %1863 = vmatpush.msrb.mxu2 %v1722_v35  ;;  %v5701_v35 = vld [vmem:[#allocation76_spill] sm:$0xff] }
 0x276   : > { %v4719_v20 = vmax.f32 %v1680_v12, %v1681_v15  ;;  %v1543_v59 = vadd.f32 %v1480_v55, %v1299_v45  ;;  %v1546_v17 = vadd.f32 %v1397_v60, %v1302_v0  ;;  %v806_v45 = vadd.f32 %v5688_v58, %v5687_v24  ;;  %v4766_v15 = vpop.f32.mrf.mxu2  ;;  %v1723_v60 = vld [vmem:[%s5566_s3 + $0x78] sm:$0xff]  ;;  %v1251_v63 = vpop.f32.mrf.mxu3 }
 0x277   : > { %1904 = vmatpush.msrb.mxu3 %v1723_v60  ;;  %1864 = vmatpush.msrb.mxu2 %v1720_v2  ;;  %v5699_v58 = vld [vmem:[#allocation28_spill] sm:$0xff] }
 0x278   : > { %v1597_v19 = vadd.f32 %v4410_v30, %v1543_v59  ;;  %1798 = vmatmul.f32.gmra.mxu2 %v4719_v20  ;;  %1839 = vmatmul.f32.gmra.mxu3 %v4719_v20  ;;  %v1600_v55 = vadd.f32 %v4401_v23, %v1546_v17  ;;  %v1304_v59 = vadd.f32 %v4709_v4, %v1060_v47  ;;  %v1712_v47 = vld [vmem:[%s5566_s3 + $0x20] sm:$0xff] }
 0x279   : > { %2120 = vmatmul.f32.gmra.mxu0 %v4719_v20  ;;  %2161 = vmatmul.f32.gmra.mxu1 %v4719_v20  ;;  %v1061_v40 = vadd.f32 %v5691_v26, %v806_v45  ;;  %v5700_v45 = vld [vmem:[#allocation71_spill] sm:$0xff] }
 0x27a   : > { %v1645_v13 = vmax.f32 %v1597_v19, 0.0  ;;  %v1648_v48 = vmax.f32 %v1600_v55, 0.0  ;;  %1905 = vmatpush.msrb.mxu3 %v1721_v39  ;;  %1865 = vmatpush.msrb.mxu2 %v1718_v22  ;;  %v1713_v55 = vld [vmem:[%s5566_s3 + $0x28] sm:$0xff]  ;;  %v5702_v22 = vld [vmem:[#allocation32_spill] sm:$0xff] }
 0x27b   : > { %v1305_v4 = vadd.f32 %v4714_v10, %v1061_v40  ;;  %v1717_v10 = vld [vmem:[%s5566_s3 + $0x48] sm:$0xff] }
 0x27c   : > { %v1682_v41 = vmax.f32 %v1644_v42, %v1645_v13  ;;  %v1719_v13 = vld [vmem:[%s5566_s3 + $0x58] sm:$0xff] }
 0x27d   : > { %v1400_v7 = vpop.f32.mrf.mxu0  ;;  %v1483_v12 = vpop.f32.mrf.mxu1  ;;  %1906 = vmatpush.msrb.mxu3 %v1719_v13  ;;  %v5703_v13 = vld [vmem:[#allocation47_spill] sm:$0xff] }
 0x27e   : > { %v1545_v61 = vadd.f32 %v1483_v12, %v1301_v54  ;;  %v1548_v38 = vadd.f32 %v1400_v7, %v1304_v59  ;;  %v1716_v54 = vld [vmem:[%s5566_s3 + $0x40] sm:$0xff]  ;;  %v1165_v32 = vpop.f32.mrf.mxu2  ;;  %v1254_v21 = vpop.f32.mrf.mxu3 }
 0x27f   : > { %v5692_v7 = vld [vmem:[#allocation26_spill] sm:$0xff]  ;;  %v5695_v12 = vld [vmem:[#allocation69_spill] sm:$0xff]  ;;  %1866 = vmatpush.msrb.mxu2 %v1716_v54  ;;  %1907 = vmatpush.msrb.mxu3 %v1717_v10  ;;  %v815_v54 = vadd.f32 %v5703_v13, %v5702_v22 }
 0x280   : > { %v1599_v18 = vadd.f32 %v4410_v30, %v1545_v61  ;;  %v809_v1 = vadd.f32 %v5693_v37, %v5692_v7  ;;  %v1062_v6 = vadd.f32 %v5695_v12, %v5694_v14  ;;  %v1602_v56 = vadd.f32 %v4401_v23, %v1548_v38  ;;  %v1710_v38 = vld [vmem:[%s5566_s3 + $0x10] sm:$0xff]  ;;  %v5705_v10 = vld [vmem:[#allocation73_spill] sm:$0xff]  ;;  %v5706_v12 = vld [vmem:[#allocation78_spill] sm:$0xff] }
 0x282   : > { %v1647_v27 = vmax.f32 %v1599_v18, 0.0  ;;  %v1306_v53 = vadd.f32 %v4740_v52, %v1062_v6  ;;  %v1063_v28 = vadd.f32 %v5696_v51, %v809_v1  ;;  %v1650_v61 = vmax.f32 %v1602_v56, 0.0 }
 0x283   : > { %v1067_v6 = vadd.f32 %v5706_v12, %v815_v54 }
 0x284   : > { %v1683_v33 = vmax.f32 %v1646_v46, %v1647_v27  ;;  %v1307_v18 = vadd.f32 %v1248_v31, %v1063_v28  ;;  %v5697_v27 = vld [vmem:[#allocation29_spill] sm:$0xff] }
 0x285   : > { %v1403_v3 = vpop.f32.mrf.mxu0  ;;  %v1486_v9 = vpop.f32.mrf.mxu1  ;;  %v1715_v31 = vld [vmem:[%s5566_s3 + $0x38] sm:$0xff] }
 0x286   : > { %v4771_v11 = vmax.f32 %v1682_v41, %v1683_v33  ;;  %v1547_v44 = vadd.f32 %v1486_v9, %v1303_v29  ;;  %v1550_v0 = vadd.f32 %v1403_v3, %v1306_v53  ;;  %v5698_v29 = vld [vmem:[#allocation44_spill] sm:$0xff]  ;;  %v1064_v9 = vadd.f32 %v5700_v45, %v5699_v58  ;;  %1908 = vmatpush.msrb.mxu3 %v1715_v31  ;;  %v1168_v39 = vpop.f32.mrf.mxu2 }
 0x287   : > { %v812_v33 = vadd.f32 %v5698_v29, %v5697_v27  ;;  %v1714_v3 = vld [vmem:[%s5566_s3 + $0x30] sm:$0xff]  ;;  %v5709_v29 = vld [vmem:[#allocation34_spill] sm:$0xff] }
 0x288   : > { %v1601_v49 = vadd.f32 %v4410_v30, %v1547_v44  ;;  %1801 = vmatmul.f32.gmra.mxu2 %v4771_v11  ;;  %1842 = vmatmul.f32.gmra.mxu3 %v4771_v11  ;;  %v1604_v52 = vadd.f32 %v4401_v23, %v1550_v0  ;;  %v1308_v44 = vadd.f32 %v4766_v15, %v1064_v9  ;;  %v5707_v0 = vld [vmem:[#allocation35_spill] sm:$0xff]  ;;  %v5711_v31 = vld [vmem:[#allocation80_spill] sm:$0xff] }
 0x289   : > { %2123 = vmatmul.f32.gmra.mxu0 %v4771_v11  ;;  %2164 = vmatmul.f32.gmra.mxu1 %v4771_v11  ;;  %v1065_v60 = vadd.f32 %v5701_v35, %v812_v33  ;;  %v5710_v33 = vld [vmem:[#allocation75_spill] sm:$0xff] }
 0x28a   : > { %v1649_v16 = vmax.f32 %v1601_v49, 0.0  ;;  %1867 = vmatpush.msrb.mxu2 %v1714_v3  ;;  %v1652_v59 = vmax.f32 %v1604_v52, 0.0  ;;  %1909 = vmatpush.msrb.mxu3 %v1713_v55  ;;  %v3013_v52 = vld [vmem:[%s5566_s3 + $0x2e0] sm:$0xff] }
 0x28b   : > { %v1309_v49 = vadd.f32 %v1251_v63, %v1065_v60  ;;  %v1709_v63 = vld [vmem:[%s5566_s3 + $0x8] sm:$0xff] }
 0x28c   : > { %v1684_v19 = vmax.f32 %v1648_v48, %v1649_v16  ;;  %1868 = vmatpush.msrb.mxu2 %v1712_v47  ;;  %v1711_v16 = vld [vmem:[%s5566_s3 + $0x18] sm:$0xff] }
 0x28d   : > { %v1406_v42 = vpop.f32.mrf.mxu0  ;;  %v1489_v41 = vpop.f32.mrf.mxu1  ;;  %1910 = vmatpush.msrb.mxu3 %v1711_v16  ;;  %v5713_v16 = vld [vmem:[#allocation52_spill] sm:$0xff] }
 0x28e   : > { %v1549_v50 = vadd.f32 %v1489_v41, %v1305_v4  ;;  %v1552_v26 = vadd.f32 %v1406_v42, %v1308_v44  ;;  %v1708_v4 = vld [vmem:[%s5566_s3] sm:$0xff]  ;;  %1869 = vmatpush.msrb.mxu2 %v1710_v38  ;;  %v5704_v41 = vld [vmem:[#allocation31_spill] sm:$0xff]  ;;  %v1171_v28 = vpop.f32.mrf.mxu2 }
 0x28f   : > { %v1066_v7 = vadd.f32 %v5705_v10, %v5704_v41  ;;  %1911 = vmatpush.msrb.mxu3 %v1709_v63  ;;  %v5712_v38 = vld [vmem:[#allocation37_spill] sm:$0xff]  ;;  %v5716_v10 = vld [vmem:[#allocation82_spill] sm:$0xff] }
 0x290   : > { %v1603_v5 = vadd.f32 %v4410_v30, %v1549_v50  ;;  %v1606_v37 = vadd.f32 %v4401_v23, %v1552_v26  ;;  %1870 = vmatpush.msrb.mxu2 %v1708_v4  ;;  %v3012_v26 = vld [vmem:[%s5566_s3 + $0x2d8] sm:$0xff]  ;;  %v821_v4 = vadd.f32 %v5713_v16, %v5712_v38 }
 0x291   : > { %v1310_v14 = vadd.f32 %v1165_v32, %v1066_v7  ;;  %v5725_v38 = vld [vmem:[#allocation81_spill] sm:$0xff] }
 0x292   : > { %v1651_v36 = vmax.f32 %v1603_v5, 0.0  ;;  %v1654_v50 = vmax.f32 %v1606_v37, 0.0  ;;  %v1311_v5 = vadd.f32 %v1254_v21, %v1067_v6  ;;  %v3016_v21 = vld [vmem:[%s5566_s3 + $0x2f8] sm:$0xff]  ;;  %v1071_v7 = vadd.f32 %v5716_v10, %v821_v4 }
 0x293   : > { %2011 = vmatpush.msra.mxu3 %v3016_v21  ;;  %v5721_v21 = vld [vmem:[#allocation84_spill] sm:$0xff] }
 0x294   : > { %v1685_v46 = vmax.f32 %v1650_v61, %v1651_v36  ;;  %v5708_v36 = vld [vmem:[#allocation51_spill] sm:$0xff] }
 0x295   : > { %v1409_v17 = vpop.f32.mrf.mxu0  ;;  %v1492_v24 = vpop.f32.mrf.mxu1 }
 0x296   : > { %v4818_v25 = vmax.f32 %v1684_v19, %v1685_v46  ;;  %v1551_v43 = vadd.f32 %v1492_v24, %v1307_v18  ;;  %v1257_v19 = vpop.f32.mrf.mxu3  ;;  %v1554_v53 = vadd.f32 %v1409_v17, %v1310_v14  ;;  %v818_v18 = vadd.f32 %v5708_v36, %v5707_v0  ;;  %v3015_v17 = vld [vmem:[%s5566_s3 + $0x2f0] sm:$0xff] }
 0x297   : > { %v1068_v24 = vadd.f32 %v5710_v33, %v5709_v29  ;;  %1970 = vmatpush.msra.mxu2 %v3015_v17  ;;  %v5719_v0 = vld [vmem:[#allocation39_spill] sm:$0xff] }
 0x298   : > { %v1605_v2 = vadd.f32 %v4410_v30, %v1551_v43  ;;  %1804 = vmatmul.f32.gmra.mxu2 %v4818_v25  ;;  %1845 = vmatmul.f32.gmra.mxu3 %v4818_v25  ;;  %v1608_v32 = vadd.f32 %v4401_v23, %v1554_v53  ;;  %v3014_v43 = vld [vmem:[%s5566_s3 + $0x2e8] sm:$0xff]  ;;  %v1069_v47 = vadd.f32 %v5711_v31, %v818_v18  ;;  %v5717_v53 = vld [vmem:[#allocation40_spill] sm:$0xff] }
 0x299   : > { %2126 = vmatmul.f32.gmra.mxu0 %v4818_v25  ;;  %2167 = vmatmul.f32.gmra.mxu1 %v4818_v25  ;;  %v1312_v3 = vadd.f32 %v1168_v39, %v1068_v24  ;;  %v3011_v39 = vld [vmem:[%s5566_s3 + $0x2d0] sm:$0xff] }
 0x29a   : > { %v1653_v40 = vmax.f32 %v1605_v2, 0.0  ;;  %v1656_v44 = vmax.f32 %v1608_v32, 0.0  ;;  %1971 = vmatpush.msra.mxu2 %v3013_v52  ;;  %2012 = vmatpush.msra.mxu3 %v3014_v43  ;;  %v1313_v2 = vadd.f32 %v1257_v19, %v1069_v47  ;;  %v5714_v19 = vld [vmem:[#allocation36_spill] sm:$0xff]  ;;  %v5720_v36 = vld [vmem:[#allocation79_spill] sm:$0xff]  ;;  %v3005_v32 = vld [vmem:[%s5566_s3 + $0x2a0] sm:$0xff] }
 0x29b   : > { %v1072_v18 = vadd.f32 %v5720_v36, %v5719_v0  ;;  %v3007_v33 = vld [vmem:[%s5566_s3 + $0x2b0] sm:$0xff]  ;;  %v5729_v0 = vld [vmem:[#allocation45_spill] sm:$0xff] }
 0x29c   : > { %v1686_v15 = vmax.f32 %v1652_v59, %v1653_v40  ;;  %v3009_v40 = vld [vmem:[%s5566_s3 + $0x2c0] sm:$0xff]  ;;  %1972 = vmatpush.msra.mxu2 %v3011_v39  ;;  %2013 = vmatpush.msra.mxu3 %v3012_v26  ;;  %v3002_v26 = vld [vmem:[%s5566_s3 + $0x288] sm:$0xff] }
 0x29d   : > { %v1412_v48 = vpop.f32.mrf.mxu0  ;;  %v1495_v42 = vpop.f32.mrf.mxu1  ;;  %v5730_v36 = vld [vmem:[#allocation83_spill] sm:$0xff] }
 0x29e   : > { %v1553_v1 = vadd.f32 %v1495_v42, %v1309_v49  ;;  %v1260_v9 = vpop.f32.mrf.mxu3  ;;  %v1556_v35 = vadd.f32 %v1412_v48, %v1312_v3  ;;  %v1174_v49 = vpop.f32.mrf.mxu2  ;;  %v3010_v48 = vld [vmem:[%s5566_s3 + $0x2c8] sm:$0xff]  ;;  %v5715_v42 = vld [vmem:[#allocation77_spill] sm:$0xff]  ;;  %1973 = vmatpush.msra.mxu2 %v3009_v40 }
 0x29f   : > { %v1070_v63 = vadd.f32 %v5715_v42, %v5714_v19  ;;  %2014 = vmatpush.msra.mxu3 %v3010_v48  ;;  %v1316_v17 = vadd.f32 %v1174_v49, %v1072_v18  ;;  %v5722_v40 = vld [vmem:[#allocation43_spill] sm:$0xff]  ;;  %v5723_v49 = vld [vmem:[#allocation54_spill] sm:$0xff]  ;;  %v1076_v18 = vadd.f32 %v5730_v36, %v5729_v0 }
 0x2a0   : > { %v1607_v56 = vadd.f32 %v4410_v30, %v1553_v1  ;;  %v1610_v22 = vadd.f32 %v4401_v23, %v1556_v35  ;;  %1974 = vmatpush.msra.mxu2 %v3007_v33  ;;  %v5724_v48 = vld [vmem:[#allocation42_spill] sm:$0xff] }
 0x2a1   : > { %v1314_v41 = vadd.f32 %v1171_v28, %v1070_v63  ;;  %v1074_v16 = vadd.f32 %v5725_v38, %v5724_v48  ;;  %v5726_v63 = vld [vmem:[#allocation86_spill] sm:$0xff] }
 0x2a2   : > { %v1655_v51 = vmax.f32 %v1607_v56, 0.0  ;;  %v1658_v14 = vmax.f32 %v1610_v22, 0.0  ;;  %v1315_v56 = vadd.f32 %v1260_v9, %v1071_v7  ;;  %1975 = vmatpush.msra.mxu2 %v3005_v32 }
 0x2a4   : > { %v1687_v61 = vmax.f32 %v1654_v50, %v1655_v51  ;;  %v5718_v51 = vld [vmem:[#allocation53_spill] sm:$0xff] }
 0x2a5   : > { %v1415_v46 = vpop.f32.mrf.mxu0  ;;  %v1498_v27 = vpop.f32.mrf.mxu1 }
 0x2a6   : > { %v4863_v58 = vmax.f32 %v1686_v15, %v1687_v61  ;;  %v1555_v45 = vadd.f32 %v1498_v27, %v1311_v5  ;;  %v1263_v1 = vpop.f32.mrf.mxu3  ;;  %v1558_v12 = vadd.f32 %v1415_v46, %v1314_v41  ;;  %v824_v5 = vadd.f32 %v5718_v51, %v5717_v53  ;;  %v3008_v46 = vld [vmem:[%s5566_s3 + $0x2b8] sm:$0xff]  ;;  %v1177_v24 = vpop.f32.mrf.mxu2 }
 0x2a7   : > { %2015 = vmatpush.msra.mxu3 %v3008_v46  ;;  %v1318_v42 = vadd.f32 %v1177_v24, %v1074_v16  ;;  %v5731_v24 = vld [vmem:[#allocation88_spill] sm:$0xff]  ;;  %v5736_v16 = vld [vmem:[#allocation89_spill] sm:$0xff] }
 0x2a8   : > { %v1609_v55 = vadd.f32 %v4410_v30, %v1555_v45  ;;  %1807 = vmatmul.f32.gmra.mxu2 %v4863_v58  ;;  %1848 = vmatmul.f32.gmra.mxu3 %v4863_v58  ;;  %v1612_v27 = vadd.f32 %v4401_v23, %v1558_v12  ;;  %v3006_v45 = vld [vmem:[%s5566_s3 + $0x2a8] sm:$0xff]  ;;  %v1073_v9 = vadd.f32 %v5721_v21, %v824_v5  ;;  %v2999_v12 = vld [vmem:[%s5566_s3 + $0x270] sm:$0xff]  ;;  %v2996_v21 = vld [vmem:[%s5566_s3 + $0x258] sm:$0xff] }
 0x2a9   : > { %2129 = vmatmul.f32.gmra.mxu0 %v4863_v58  ;;  %2170 = vmatmul.f32.gmra.mxu1 %v4863_v58 }
 0x2aa   : > { %v1657_v60 = vmax.f32 %v1609_v55, 0.0  ;;  %v1660_v3 = vmax.f32 %v1612_v27, 0.0  ;;  %2016 = vmatpush.msra.mxu3 %v3006_v45 }
 0x2ac   : > { %v1688_v59 = vmax.f32 %v1656_v44, %v1657_v60  ;;  %v1317_v44 = vadd.f32 %v1263_v1, %v1073_v9  ;;  %v3003_v60 = vld [vmem:[%s5566_s3 + $0x290] sm:$0xff] }
 0x2ad   : > { %v1501_v15 = vpop.f32.mrf.mxu1  ;;  %v1418_v54 = vpop.f32.mrf.mxu0  ;;  %1976 = vmatpush.msra.mxu2 %v3003_v60  ;;  %v5732_v60 = vld [vmem:[#allocation49_spill] sm:$0xff] }
 0x2ae   : > { %v1557_v13 = vadd.f32 %v1501_v15, %v1313_v2  ;;  %v1560_v31 = vadd.f32 %v1418_v54, %v1316_v17  ;;  %v1266_v55 = vpop.f32.mrf.mxu3  ;;  %v3004_v2 = vld [vmem:[%s5566_s3 + $0x298] sm:$0xff]  ;;  %v827_v15 = vadd.f32 %v5723_v49, %v5722_v40  ;;  %v1180_v54 = vpop.f32.mrf.mxu2  ;;  %v2995_v17 = vld [vmem:[%s5566_s3 + $0x250] sm:$0xff] }
 0x2af   : > { %2017 = vmatpush.msra.mxu3 %v3004_v2  ;;  %v1320_v46 = vadd.f32 %v1180_v54, %v1076_v18  ;;  %v5733_v2 = vld [vmem:[#allocation57_spill] sm:$0xff] }
 0x2b0   : > { %v1611_v37 = vadd.f32 %v4410_v30, %v1557_v13  ;;  %v1614_v4 = vadd.f32 %v4401_v23, %v1560_v31  ;;  %v1075_v22 = vadd.f32 %v5726_v63, %v827_v15  ;;  %v2994_v31 = vld [vmem:[%s5566_s3 + $0x248] sm:$0xff]  ;;  %v2992_v63 = vld [vmem:[%s5566_s3 + $0x238] sm:$0xff] }
 0x2b1   : > { %2018 = vmatpush.msra.mxu3 %v3002_v26  ;;  %v5735_v26 = vld [vmem:[#allocation85_spill] sm:$0xff] }
 0x2b2   : > { %v1659_v6 = vmax.f32 %v1611_v37, 0.0  ;;  %v1662_v41 = vmax.f32 %v1614_v4, 0.0  ;;  %v1319_v1 = vadd.f32 %v1266_v55, %v1075_v22  ;;  %v2989_v22 = vld [vmem:[%s5566_s3 + $0x220] sm:$0xff] }
 0x2b4   : > { %v1689_v50 = vmax.f32 %v1658_v14, %v1659_v6  ;;  %v3000_v6 = vld [vmem:[%s5566_s3 + $0x278] sm:$0xff] }
 0x2b5   : > { %v1504_v61 = vpop.f32.mrf.mxu1  ;;  %v1421_v43 = vpop.f32.mrf.mxu0  ;;  %2019 = vmatpush.msra.mxu3 %v3000_v6  ;;  %v5739_v6 = vld [vmem:[#allocation50_spill] sm:$0xff] }
 0x2b6   : > { %v4907_v28 = vmax.f32 %v1688_v59, %v1689_v50  ;;  %v1559_v29 = vadd.f32 %v1504_v61, %v1315_v56  ;;  %v3001_v59 = vld [vmem:[%s5566_s3 + $0x280] sm:$0xff]  ;;  %v1562_v10 = vadd.f32 %v1421_v43, %v1318_v42  ;;  %v5728_v50 = vld [vmem:[#allocation55_spill] sm:$0xff]  ;;  %v1269_v51 = vpop.f32.mrf.mxu3 }
 0x2b7   : > { %1977 = vmatpush.msra.mxu2 %v3001_v59  ;;  %v2997_v56 = vld [vmem:[%s5566_s3 + $0x260] sm:$0xff]  ;;  %v2998_v61 = vld [vmem:[%s5566_s3 + $0x268] sm:$0xff]  ;;  %v833_v59 = vadd.f32 %v5733_v2, %v5732_v60  ;;  %v2991_v42 = vld [vmem:[%s5566_s3 + $0x230] sm:$0xff] }
 0x2b8   : > { %v1613_v52 = vadd.f32 %v4410_v30, %v1559_v29  ;;  %1810 = vmatmul.f32.gmra.mxu2 %v4907_v28  ;;  %1851 = vmatmul.f32.gmra.mxu3 %v4907_v28  ;;  %v1616_v27 = vadd.f32 %v4401_v23, %v1562_v10  ;;  %v3079_v60 = vld [vmem:[%s5566_s3 + $0x4f0] sm:$0xff]  ;;  %v3080_v2 = vld [vmem:[%s5566_s3 + $0x4f8] sm:$0xff] }
 0x2b9   : > { %2132 = vmatmul.f32.gmra.mxu0 %v4907_v28  ;;  %2173 = vmatmul.f32.gmra.mxu1 %v4907_v28  ;;  %v1079_v4 = vadd.f32 %v5736_v16, %v833_v59  ;;  %v3077_v59 = vld [vmem:[%s5566_s3 + $0x4e0] sm:$0xff]  ;;  %v3071_v16 = vld [vmem:[%s5566_s3 + $0x4b0] sm:$0xff] }
 0x2ba   : > { %v1661_v47 = vmax.f32 %v1613_v52, 0.0  ;;  %1978 = vmatpush.msra.mxu2 %v2999_v12  ;;  %2020 = vmatpush.msra.mxu3 %v2998_v61  ;;  %v1664_v9 = vmax.f32 %v1616_v27, 0.0 }
 0x2bc   : > { %v1690_v35 = vmax.f32 %v1660_v3, %v1661_v47  ;;  %1979 = vmatpush.msra.mxu2 %v2997_v56  ;;  %2021 = vmatpush.msra.mxu3 %v2996_v21  ;;  %v1183_v3 = vpop.f32.mrf.mxu2  ;;  %v5740_v56 = vld [vmem:[#allocation60_spill] sm:$0xff] }
 0x2bd   : > { %v1507_v39 = vpop.f32.mrf.mxu1  ;;  %v1424_v37 = vpop.f32.mrf.mxu0 }
 0x2be   : > { %v1561_v19 = vadd.f32 %v1507_v39, %v1317_v44  ;;  %v1564_v52 = vadd.f32 %v1424_v37, %v1320_v46  ;;  %1980 = vmatpush.msra.mxu2 %v2995_v17  ;;  %2022 = vmatpush.msra.mxu3 %v2994_v31  ;;  %v5734_v39 = vld [vmem:[#allocation48_spill] sm:$0xff]  ;;  %v1272_v48 = vpop.f32.mrf.mxu3  ;;  %v5738_v37 = vld [vmem:[#allocation59_spill] sm:$0xff] }
 0x2bf   : > { %v1078_v40 = vadd.f32 %v5735_v26, %v5734_v39 }
 0x2c0   : > { %v1615_v13 = vadd.f32 %v4410_v30, %v1561_v19  ;;  %1871 = vmatmul.f32.vlgmr.msrb.gmra.mxu2 %v4505_v8  ;;  %1912 = vmatmul.f32.vlgmr.msrb.gmra.mxu3 %v4505_v8  ;;  %v5727_v8 = vld [vmem:[#allocation46_spill] sm:$0xff]  ;;  %v1618_v49 = vadd.f32 %v4401_v23, %v1564_v52 }
 0x2c1   : > { %v830_v53 = vadd.f32 %v5728_v50, %v5727_v8  ;;  %v1322_v38 = vadd.f32 %v1183_v3, %v1078_v40  ;;  %2023 = vmatpush.msra.mxu3 %v2992_v63  ;;  %v836_v8 = vadd.f32 %v5740_v56, %v5739_v6  ;;  %v2986_v3 = vld [vmem:[%s5566_s3 + $0x208] sm:$0xff]  ;;  %v3067_v63 = vld [vmem:[%s5566_s3 + $0x490] sm:$0xff] }
 0x2c2   : > { %v1663_v7 = vmax.f32 %v1615_v13, 0.0  ;;  %v2990_v13 = vld [vmem:[%s5566_s3 + $0x228] sm:$0xff]  ;;  %v1666_v54 = vmax.f32 %v1618_v49, 0.0  ;;  %v3075_v49 = vld [vmem:[%s5566_s3 + $0x4d0] sm:$0xff] }
 0x2c3   : > { %v1077_v32 = vadd.f32 %v5731_v24, %v830_v53  ;;  %2024 = vmatpush.msra.mxu3 %v2990_v13  ;;  %v3065_v13 = vld [vmem:[%s5566_s3 + $0x480] sm:$0xff] }
 0x2c4   : > { %v1691_v14 = vmax.f32 %v1662_v41, %v1663_v7  ;;  %v5737_v7 = vld [vmem:[#allocation8_spill] sm:$0xff]  ;;  %v1186_v50 = vpop.f32.mrf.mxu2 }
 0x2c5   : > { %v1510_v5 = vpop.f32.mrf.mxu1  ;;  %v1321_v47 = vadd.f32 %v1269_v51, %v1077_v32  ;;  %v1427_v44 = vpop.f32.mrf.mxu0  ;;  %v5741_v51 = vld [vmem:[#allocation87_spill] sm:$0xff] }
 0x2c6   : > { %v4965_v29 = vmax.f32 %v1690_v35, %v1691_v14  ;;  %v1563_v33 = vadd.f32 %v1510_v5, %v1319_v1  ;;  %v1566_v41 = vadd.f32 %v1427_v44, %v1322_v38  ;;  %v747_v1 = vadd.f32 %v5738_v37, %v5737_v7  ;;  %v2987_v32 = vld [vmem:[%s5566_s3 + $0x210] sm:$0xff]  ;;  %v1275_v17 = vpop.f32.mrf.mxu3  ;;  %v3074_v38 = vld [vmem:[%s5566_s3 + $0x4c8] sm:$0xff]  ;;  %v3061_v7 = vld [vmem:[%s5566_s3 + $0x460] sm:$0xff] }
 0x2c7   : > { %v1323_v14 = vadd.f32 %v1272_v48, %v1079_v4  ;;  %v3073_v48 = vld [vmem:[%s5566_s3 + $0x4c0] sm:$0xff]  ;;  %v3072_v4 = vld [vmem:[%s5566_s3 + $0x4b8] sm:$0xff]  ;;  %v3062_v37 = vld [vmem:[%s5566_s3 + $0x468] sm:$0xff] }
 0x2c8   : > { %v1617_v45 = vadd.f32 %v4410_v30, %v1563_v33  ;;  %1874 = vmatmul.f32.gmra.mxu2 %v4590_v57  ;;  %1915 = vmatmul.f32.gmra.mxu3 %v4590_v57  ;;  %v2993_v57 = vld [vmem:[%s5566_s3 + $0x240] sm:$0xff]  ;;  %v1080_v5 = vadd.f32 %v5741_v51, %v747_v1  ;;  %v1620_v61 = vadd.f32 %v4401_v23, %v1566_v41  ;;  %v3063_v41 = vld [vmem:[%s5566_s3 + $0x470] sm:$0xff] }
 0x2c9   : > { %2135 = vmatmul.f32.gmra.mxu0 %v4965_v29  ;;  %2176 = vmatmul.f32.gmra.mxu1 %v4965_v29  ;;  %v5742_v33 = vld [vmem:[#allocation90_spill] sm:$0xff] }
 0x2ca   : > { %v1665_v43 = vmax.f32 %v1617_v45, 0.0  ;;  %1981 = vmatpush.msra.mxu2 %v2993_v57  ;;  %v1324_v27 = vadd.f32 %v1186_v50, %v1080_v5  ;;  %v1081_v46 = vadd.f32 %v5742_v33, %v836_v8  ;;  %v2988_v45 = vld [vmem:[%s5566_s3 + $0x218] sm:$0xff]  ;;  %v1668_v21 = vmax.f32 %v1620_v61, 0.0  ;;  %v3057_v8 = vld [vmem:[%s5566_s3 + $0x440] sm:$0xff]  ;;  %v3055_v50 = vld [vmem:[%s5566_s3 + $0x430] sm:$0xff] }
 0x2cb   : > { %2025 = vmatpush.msra.mxu3 %v2988_v45  ;;  %v3053_v51 = vld [vmem:[%s5566_s3 + $0x420] sm:$0xff]  ;;  %v3054_v5 = vld [vmem:[%s5566_s3 + $0x428] sm:$0xff] }
 0x2cc   : > { %v1692_v55 = vmax.f32 %v1664_v9, %v1665_v43  ;;  %1982 = vmatpush.msra.mxu2 %v2991_v42  ;;  %v2985_v43 = vld [vmem:[%s5566_s3 + $0x200] sm:$0xff]  ;;  %v1325_v57 = vadd.f32 %v1275_v17, %v1081_v46  ;;  %v3070_v42 = vld [vmem:[%s5566_s3 + $0x4a8] sm:$0xff]  ;;  %v5106_v1 = vpop.f32.mrf.mxu2 }
 0x2cd   : > { %v1513_v35 = vpop.f32.mrf.mxu1  ;;  %v1430_v18 = vpop.f32.mrf.mxu0  ;;  %2026 = vmatpush.msra.mxu3 %v2986_v3 }
 0x2ce   : > { %v1565_v15 = vadd.f32 %v1513_v35, %v1321_v47  ;;  %1983 = vmatpush.msra.mxu2 %v2989_v22  ;;  %v1568_v9 = vadd.f32 %v1430_v18, %v1324_v27  ;;  %v3068_v22 = vld [vmem:[%s5566_s3 + $0x498] sm:$0xff]  ;;  %v3051_v18 = vld [vmem:[%s5566_s3 + $0x410] sm:$0xff] }
 0x2cf   : > { %2273 = vmatpush.msrb.mxu3 %v3080_v2  ;;  %v3052_v27 = vld [vmem:[%s5566_s3 + $0x418] sm:$0xff] }
 0x2d0   : > { %v1619_v19 = vadd.f32 %v4410_v30, %v1565_v15  ;;  %1877 = vmatmul.f32.gmra.mxu2 %v4632_v34  ;;  %1918 = vmatmul.f32.gmra.mxu3 %v4632_v34  ;;  %v3076_v15 = vld [vmem:[%s5566_s3 + $0x4d8] sm:$0xff] }
 0x2d1   : > { %1984 = vmatpush.msra.mxu2 %v2987_v32  ;;  %v3050_v32 = vld [vmem:[%s5566_s3 + $0x408] sm:$0xff] }
 0x2d2   : > { %v1667_v10 = vmax.f32 %v1619_v19, 0.0  ;;  %v3069_v19 = vld [vmem:[%s5566_s3 + $0x4a0] sm:$0xff] }
 0x2d3   : > { %1985 = vmatpush.msra.mxu2 %v2985_v43 }
 0x2d4   : > { %v1693_v12 = vmax.f32 %v1666_v54, %v1667_v10  ;;  %v3066_v54 = vld [vmem:[%s5566_s3 + $0x488] sm:$0xff]  ;;  %v3064_v10 = vld [vmem:[%s5566_s3 + $0x478] sm:$0xff] }
 0x2d5   : > { %v1516_v53 = vpop.f32.mrf.mxu1  ;;  %2232 = vmatpush.msrb.mxu2 %v3079_v60 }
 0x2d6   : > { %v5012_v0 = vmax.f32 %v1692_v55, %v1693_v12  ;;  %v1567_v36 = vadd.f32 %v1516_v53, %v1323_v14  ;;  %v1622_v55 = vadd.f32 %v4401_v23, %v1568_v9  ;;  %v3078_v23 = vld [vmem:[%s5566_s3 + $0x4e8] sm:$0xff]  ;;  %v3059_v14 = vld [vmem:[%s5566_s3 + $0x450] sm:$0xff]  ;;  %v3060_v12 = vld [vmem:[%s5566_s3 + $0x458] sm:$0xff] }
 0x2d7   : > { %2233 = vmatpush.msrb.mxu2 %v3077_v59  ;;  %2274 = vmatpush.msrb.mxu3 %v3078_v23  ;;  %v3056_v53 = vld [vmem:[%s5566_s3 + $0x438] sm:$0xff] }
 0x2d8   : > { %v1621_v24 = vadd.f32 %v4410_v30, %v1567_v36  ;;  %1880 = vmatmul.f32.gmra.mxu2 %v4663_v62  ;;  %1921 = vmatmul.f32.gmra.mxu3 %v4663_v62 }
 0x2d9   : > { %2138 = vmatmul.f32.gmra.mxu0 %v5012_v0  ;;  %2179 = vmatmul.f32.gmra.mxu1 %v5012_v0 }
 0x2da   : > { %v1669_v52 = vmax.f32 %v1621_v24, 0.0  ;;  %2234 = vmatpush.msrb.mxu2 %v3075_v49  ;;  %2275 = vmatpush.msrb.mxu3 %v3076_v15  ;;  %v3049_v24 = vld [vmem:[%s5566_s3 + $0x400] sm:$0xff] }
 0x2db   : > { %v5118_v6 = vpop.f32.mrf.mxu2 }
 0x2dc   : > { %v1694_v31 = vmax.f32 %v1668_v21, %v1669_v52  ;;  %2235 = vmatpush.msrb.mxu2 %v3073_v48  ;;  %2276 = vmatpush.msrb.mxu3 %v3074_v38 }
 0x2dd   : > { %v1519_v47 = vpop.f32.mrf.mxu1 }
 0x2de   : > { %v1569_v44 = vadd.f32 %v1519_v47, %v1325_v57  ;;  %2236 = vmatpush.msrb.mxu2 %v3071_v16  ;;  %2277 = vmatpush.msrb.mxu3 %v3072_v4 }
 0x2e0   : > { %v1623_v35 = vadd.f32 %v4410_v30, %v1569_v44  ;;  %1883 = vmatmul.f32.gmra.mxu2 %v4719_v20  ;;  %1924 = vmatmul.f32.gmra.mxu3 %v4719_v20  ;;  %v1670_v30 = vmax.f32 %v1622_v55, 0.0 }
 0x2e1   : > { %2237 = vmatpush.msrb.mxu2 %v3069_v19  ;;  %2278 = vmatpush.msrb.mxu3 %v3070_v42 }
 0x2e2   : > { %v1671_v39 = vmax.f32 %v1623_v35, 0.0 }
 0x2e3   : > { %2238 = vmatpush.msrb.mxu2 %v3067_v63  ;;  %2279 = vmatpush.msrb.mxu3 %v3068_v22 }
 0x2e4   : > { %v1695_v26 = vmax.f32 %v1670_v30, %v1671_v39 }
 0x2e5   : > { %2239 = vmatpush.msrb.mxu2 %v3065_v13  ;;  %2280 = vmatpush.msrb.mxu3 %v3066_v54  ;;  %v2396_v13 = vld [vmem:[%s5568_s5 + $0x78] sm:$0xff]  ;;  %v2395_v54 = vld [vmem:[%s5568_s5 + $0x70] sm:$0xff] }
 0x2e6   : > { %v5048_v40 = vmax.f32 %v1694_v31, %v1695_v26  ;;  %2397 = vmatpush.msra.mxu0 %v2396_v13 }
 0x2e7   : > { %2240 = vmatpush.msrb.mxu2 %v3063_v41  ;;  %2281 = vmatpush.msrb.mxu3 %v3064_v10 }
 0x2e8   : > { %1886 = vmatmul.f32.gmra.mxu2 %v4771_v11  ;;  %1927 = vmatmul.f32.gmra.mxu3 %v4771_v11 }
 0x2e9   : > { %2241 = vmatpush.msrb.mxu2 %v3061_v7  ;;  %2282 = vmatpush.msrb.mxu3 %v3062_v37  ;;  %v2394_v7 = vld [vmem:[%s5568_s5 + $0x68] sm:$0xff]  ;;  %v2393_v37 = vld [vmem:[%s5568_s5 + $0x60] sm:$0xff] }
 0x2ea   : > { %2398 = vmatpush.msra.mxu0 %v2395_v54 }
 0x2eb   : > { %2242 = vmatpush.msrb.mxu2 %v3059_v14  ;;  %2283 = vmatpush.msrb.mxu3 %v3060_v12  ;;  %v5142_v61 = vpop.f32.mrf.mxu2  ;;  %v2392_v14 = vld [vmem:[%s5568_s5 + $0x58] sm:$0xff]  ;;  %v2391_v12 = vld [vmem:[%s5568_s5 + $0x50] sm:$0xff] }
 0x2ec   : > { %2399 = vmatpush.msra.mxu0 %v2394_v7  ;;  %v3110_v7 = vld [vmem:[%s5568_s5 + $0x168] sm:$0xff] }
 0x2ed   : > { %2243 = vmatpush.msrb.mxu2 %v3057_v8 }
 0x2ee   : > { %2400 = vmatpush.msra.mxu0 %v2393_v37  ;;  %v3126_v37 = vld [vmem:[%s5568_s5 + $0x1e8] sm:$0xff] }
 0x2ef   : > { %2244 = vmatpush.msrb.mxu2 %v3055_v50 }
 0x2f0   : > { %1889 = vmatmul.f32.gmra.mxu2 %v4818_v25  ;;  %1930 = vmatmul.f32.gmra.mxu3 %v4818_v25 }
 0x2f1   : > { %2245 = vmatpush.msrb.mxu2 %v3053_v51  ;;  %2401 = vmatpush.msra.mxu0 %v2392_v14  ;;  %v2390_v51 = vld [vmem:[%s5568_s5 + $0x48] sm:$0xff]  ;;  %v3109_v14 = vld [vmem:[%s5568_s5 + $0x160] sm:$0xff] }
 0x2f3   : > { %2246 = vmatpush.msrb.mxu2 %v3051_v18  ;;  %2402 = vmatpush.msra.mxu0 %v2391_v12  ;;  %v2388_v18 = vld [vmem:[%s5568_s5 + $0x38] sm:$0xff]  ;;  %v3089_v12 = vld [vmem:[%s5568_s5 + $0xc0] sm:$0xff] }
 0x2f5   : > { %2247 = vmatpush.msrb.mxu2 %v3049_v24  ;;  %2403 = vmatpush.msra.mxu0 %v2390_v51  ;;  %v2387_v24 = vld [vmem:[%s5568_s5 + $0x30] sm:$0xff] }
 0x2f6   : > { %v3107_v51 = vld [vmem:[%s5568_s5 + $0x150] sm:$0xff] }
 0x2f8   : > { %1892 = vmatmul.f32.gmra.mxu2 %v4863_v58  ;;  %1933 = vmatmul.f32.gmra.mxu3 %v4863_v58 }
 0x2fb   : > { %v5154_v33 = vpop.f32.mrf.mxu2 }
 0x300   : > { %1986 = vmatmul.f32.vlgmr.msra.gmra.mxu2 %v4632_v34  ;;  %2027 = vmatmul.f32.vlgmr.msra.gmra.mxu3 %v4632_v34  ;;  %v5108_v34 = vpop.f32.mrf.mxu3 }
 0x308   : > { %1989 = vmatmul.f32.gmra.mxu2 %v4663_v62  ;;  %2030 = vmatmul.f32.gmra.mxu3 %v4663_v62  ;;  %v5120_v56 = vpop.f32.mrf.mxu3  ;;  %v3058_v62 = vld [vmem:[%s5566_s3 + $0x448] sm:$0xff] }
 0x309   : > { %2284 = vmatpush.msrb.mxu3 %v3058_v62 }
 0x30b   : > { %2285 = vmatpush.msrb.mxu3 %v3056_v53  ;;  %v5166_v45 = vpop.f32.mrf.mxu2 }
 0x30d   : > { %2286 = vmatpush.msrb.mxu3 %v3054_v5 }
 0x30f   : > { %2287 = vmatpush.msrb.mxu3 %v3052_v27  ;;  %v3096_v27 = vld [vmem:[%s5568_s5 + $0xf8] sm:$0xff] }
 0x310   : > { %1992 = vmatmul.f32.gmra.mxu2 %v4719_v20  ;;  %2033 = vmatmul.f32.gmra.mxu3 %v4719_v20  ;;  %v5144_v36 = vpop.f32.mrf.mxu3 }
 0x311   : > { %2288 = vmatpush.msrb.mxu3 %v3050_v32  ;;  %2438 = vmatpush.msrb.mxu1 %v3096_v27  ;;  %v3095_v32 = vld [vmem:[%s5568_s5 + $0xf0] sm:$0xff] }
 0x312   : > { %v3123_v27 = vld [vmem:[%s5568_s5 + $0x1d0] sm:$0xff] }
 0x313   : > { %2439 = vmatpush.msrb.mxu1 %v3095_v32 }
 0x318   : > { %1995 = vmatmul.f32.gmra.mxu2 %v4771_v11  ;;  %2036 = vmatmul.f32.gmra.mxu3 %v4771_v11  ;;  %v5156_v46 = vpop.f32.mrf.mxu3 }
 0x31b   : > { %v5172_v21 = vpop.f32.mrf.mxu2 }
 0x320   : > { %1998 = vmatmul.f32.gmra.mxu2 %v4818_v25  ;;  %2039 = vmatmul.f32.gmra.mxu3 %v4818_v25  ;;  %v5168_v17 = vpop.f32.mrf.mxu3 }
 0x328   : > { %2001 = vmatmul.f32.gmra.mxu2 %v4863_v58  ;;  %2042 = vmatmul.f32.gmra.mxu3 %v4863_v58  ;;  %v5174_v9 = vpop.f32.mrf.mxu3 }
 0x32b   : > { %v1808_v52 = vpop.f32.mrf.mxu2 }
 0x330   : > { %2004 = vmatmul.f32.gmra.mxu2 %v4907_v28  ;;  %2045 = vmatmul.f32.gmra.mxu3 %v4907_v28  ;;  %v1849_v43 = vpop.f32.mrf.mxu3 }
 0x338   : > { %2007 = vmatmul.f32.gmra.mxu2 %v4965_v29  ;;  %2048 = vmatmul.f32.gmra.mxu3 %v4965_v29 }
 0x33b   : > { %v1811_v3 = vpop.f32.mrf.mxu2  ;;  %v1852_v57 = vpop.f32.mrf.mxu3 }
 0x340   : > { %2248 = vmatmul.f32.vlgmr.msrb.gmra.mxu2 %v4719_v20  ;;  %2289 = vmatmul.f32.vlgmr.msrb.gmra.mxu3 %v4719_v20 }
 0x343   : > { %v5182_v31 = vpop.f32.mrf.mxu2  ;;  %v5184_v47 = vpop.f32.mrf.mxu3 }
 0x344   : > { %v1873_v32 = vadd.f32 %v5182_v31, %v5106_v1  ;;  %v3084_v1 = vld [vmem:[%s5568_s5 + $0x98] sm:$0xff]  ;;  %v2118_v31 = vpop.f32.mrf.mxu0 }
 0x348   : > { %2251 = vmatmul.f32.gmra.mxu2 %v4771_v11  ;;  %2292 = vmatmul.f32.gmra.mxu3 %v4771_v11 }
 0x34b   : > { %v5188_v55 = vpop.f32.mrf.mxu2  ;;  %v5190_v44 = vpop.f32.mrf.mxu3 }
 0x350   : > { %2254 = vmatmul.f32.gmra.mxu2 %v4818_v25  ;;  %2295 = vmatmul.f32.gmra.mxu3 %v4818_v25 }
 0x353   : > { %v1878_v35 = vpop.f32.mrf.mxu2  ;;  %v1919_v60 = vpop.f32.mrf.mxu3 }
 0x354   : > { %v1879_v4 = vadd.f32 %v1878_v35, %v5142_v61  ;;  %v1920_v19 = vadd.f32 %v1919_v60, %v5144_v36  ;;  %v2389_v36 = vld [vmem:[%s5568_s5 + $0x40] sm:$0xff]  ;;  %v2386_v35 = vld [vmem:[%s5568_s5 + $0x28] sm:$0xff] }
 0x355   : > { %2404 = vmatpush.msra.mxu0 %v2389_v36  ;;  %v3094_v60 = vld [vmem:[%s5568_s5 + $0xe8] sm:$0xff] }
 0x356   : > { %2440 = vmatpush.msrb.mxu1 %v3094_v60 }
 0x357   : > { %2405 = vmatpush.msra.mxu0 %v2388_v18 }
 0x358   : > { %2257 = vmatmul.f32.gmra.mxu2 %v4863_v58  ;;  %2298 = vmatmul.f32.gmra.mxu3 %v4863_v58 }
 0x359   : > { %2406 = vmatpush.msra.mxu0 %v2387_v24  ;;  %v3086_v24 = vld [vmem:[%s5568_s5 + $0xa8] sm:$0xff] }
 0x35b   : > { %v5196_v20 = vpop.f32.mrf.mxu2  ;;  %v5198_v2 = vpop.f32.mrf.mxu3  ;;  %2407 = vmatpush.msra.mxu0 %v2386_v35  ;;  %v2330_v35 = vld [vmem:[#allocation2] sm:$0x3] }
 0x360   : > { %2260 = vmatmul.f32.gmra.mxu2 %v4907_v28  ;;  %2301 = vmatmul.f32.gmra.mxu3 %v4907_v28 }
 0x363   : > { %v1884_v11 = vpop.f32.mrf.mxu2  ;;  %v1925_v59 = vpop.f32.mrf.mxu3 }
 0x364   : > { %v1885_v8 = vadd.f32 %v1884_v11, %v5166_v45  ;;  %v1926_v62 = vadd.f32 %v1925_v59, %v5168_v17  ;;  %v3112_v45 = vld [vmem:[%s5568_s5 + $0x178] sm:$0xff]  ;;  %v2385_v11 = vld [vmem:[%s5568_s5 + $0x20] sm:$0xff] }
 0x365   : > { %v3128_v17 = vld [vmem:[%s5568_s5 + $0x1f8] sm:$0xff]  ;;  %2476 = vmatpush.msra.mxu2 %v3112_v45  ;;  %v3093_v59 = vld [vmem:[%s5568_s5 + $0xe0] sm:$0xff]  ;;  %2408 = vmatpush.msra.mxu0 %v2385_v11  ;;  %v1914_v45 = vadd.f32 %v5184_v47, %v5108_v34  ;;  %v2159_v34 = vpop.f32.mrf.mxu1  ;;  %v3083_v47 = vld [vmem:[%s5568_s5 + $0x90] sm:$0xff]  ;;  %v5390_v11 = vperm.slane %v2330_v35, 0 }
 0x366   : > { %2514 = vmatpush.msra.mxu3 %v3128_v17  ;;  %2441 = vmatpush.msrb.mxu1 %v3093_v59  ;;  %v3085_v17 = vld [vmem:[%s5568_s5 + $0xa0] sm:$0xff] }
 0x368   : > { %2263 = vmatmul.f32.gmra.mxu2 %v4965_v29  ;;  %2304 = vmatmul.f32.gmra.mxu3 %v4965_v29 }
 0x36b   : > { %v5204_v25 = vpop.f32.mrf.mxu2  ;;  %v5206_v23 = vpop.f32.mrf.mxu3 }
 0x370   : > { %2266 = vmatmul.f32.gmra.mxu2 %v5012_v0  ;;  %2307 = vmatmul.f32.gmra.mxu3 %v5012_v0 }
 0x373   : > { %v1890_v58 = vpop.f32.mrf.mxu2  ;;  %v1931_v30 = vpop.f32.mrf.mxu3 }
 0x374   : > { %v5210_v39 = vadd.f32 %v1890_v58, %v1808_v52  ;;  %v5212_v26 = vadd.f32 %v1931_v30, %v1849_v43  ;;  %v3111_v52 = vld [vmem:[%s5568_s5 + $0x170] sm:$0xff]  ;;  %v2384_v58 = vld [vmem:[%s5568_s5 + $0x18] sm:$0xff] }
 0x375   : > { %2477 = vmatpush.msra.mxu2 %v3111_v52  ;;  %v3092_v30 = vld [vmem:[%s5568_s5 + $0xd8] sm:$0xff]  ;;  %2409 = vmatpush.msra.mxu0 %v2384_v58 }
 0x376   : > { %2442 = vmatpush.msrb.mxu1 %v3092_v30 }
 0x377   : > { %2478 = vmatpush.msra.mxu2 %v3110_v7 }
 0x378   : > { %2269 = vmatmul.f32.gmra.mxu2 %v5048_v40  ;;  %2310 = vmatmul.f32.gmra.mxu3 %v5048_v40 }
 0x379   : > { %2479 = vmatpush.msra.mxu2 %v3109_v14 }
 0x37b   : > { %v1893_v28 = vpop.f32.mrf.mxu2  ;;  %v1934_v29 = vpop.f32.mrf.mxu3 }
 0x37c   : > { %v5216_v49 = vadd.f32 %v1893_v28, %v1811_v3  ;;  %v5218_v15 = vadd.f32 %v1934_v29, %v1852_v57  ;;  %v3127_v57 = vld [vmem:[%s5568_s5 + $0x1f0] sm:$0xff] }
 0x37d   : > { %2515 = vmatpush.msra.mxu3 %v3127_v57  ;;  %v2383_v28 = vld [vmem:[%s5568_s5 + $0x10] sm:$0xff] }
 0x37e   : > { %v3091_v29 = vld [vmem:[%s5568_s5 + $0xd0] sm:$0xff]  ;;  %2410 = vmatpush.msra.mxu0 %v2383_v28  ;;  %v3106_v28 = vld [vmem:[%s5568_s5 + $0x148] sm:$0xff] }
 0x37f   : > { %2443 = vmatpush.msrb.mxu1 %v3091_v29  ;;  %2516 = vmatpush.msra.mxu3 %v3126_v37  ;;  %v3082_v29 = vld [vmem:[%s5568_s5 + $0x88] sm:$0xff] }
 0x383   : > { %v5220_v48 = vpop.f32.mrf.mxu2  ;;  %v5222_v38 = vpop.f32.mrf.mxu3 }
 0x384   : > { %v2052_v52 = vadd.f32 %v5220_v48, %v1873_v32  ;;  %v2053_v57 = vadd.f32 %v5222_v38, %v1914_v45  ;;  %v5392_v48 = vperm.slane %v2330_v35, 1  ;;  %v1876_v38 = vadd.f32 %v5188_v55, %v5118_v6  ;;  %v3122_v6 = vld [vmem:[%s5568_s5 + $0x1c8] sm:$0xff]  ;;  %v3105_v55 = vld [vmem:[%s5568_s5 + $0x140] sm:$0xff] }
 0x385   : > { %v3102_v45 = vld [vmem:[%s5568_s5 + $0x128] sm:$0xff] }
 0x386   : > { %v2183_v60 = vadd.f32 %v2118_v31, %v2052_v52  ;;  %v2184_v59 = vadd.f32 %v2159_v34, %v2053_v57  ;;  %v3101_v57 = vld [vmem:[%s5568_s5 + $0x120] sm:$0xff]  ;;  %v3100_v31 = vld [vmem:[%s5568_s5 + $0x118] sm:$0xff] }
 0x38b   : > { %v5224_v0 = vpop.f32.mrf.mxu2  ;;  %v5226_v16 = vpop.f32.mrf.mxu3 }
 0x38c   : > { %v2054_v7 = vadd.f32 %v5224_v0, %v1876_v38  ;;  %v3099_v38 = vld [vmem:[%s5568_s5 + $0x110] sm:$0xff] }
 0x393   : > { %v1993_v42 = vpop.f32.mrf.mxu2  ;;  %v2034_v40 = vpop.f32.mrf.mxu3 }
 0x394   : > { %v5230_v63 = vadd.f32 %v1993_v42, %v1879_v4  ;;  %v5232_v22 = vadd.f32 %v2034_v40, %v1920_v19  ;;  %v2382_v42 = vld [vmem:[%s5568_s5 + $0x8] sm:$0xff] }
 0x395   : > { %v3090_v40 = vld [vmem:[%s5568_s5 + $0xc8] sm:$0xff]  ;;  %2411 = vmatpush.msra.mxu0 %v2382_v42 }
 0x396   : > { %2444 = vmatpush.msrb.mxu1 %v3090_v40  ;;  %v3121_v40 = vld [vmem:[%s5568_s5 + $0x1c0] sm:$0xff] }
 0x398   : > { %2445 = vmatpush.msrb.mxu1 %v3089_v12  ;;  %v2121_v12 = vpop.f32.mrf.mxu0 }
 0x39b   : > { %v5240_v41 = vpop.f32.mrf.mxu2  ;;  %v5242_v10 = vpop.f32.mrf.mxu3 }
 0x3a3   : > { %v1999_v50 = vpop.f32.mrf.mxu2  ;;  %v2040_v53 = vpop.f32.mrf.mxu3 }
 0x3a4   : > { %v5261_v5 = vadd.f32 %v1999_v50, %v1885_v8  ;;  %v5263_v61 = vadd.f32 %v2040_v53, %v1926_v62  ;;  %v3088_v8 = vld [vmem:[%s5568_s5 + $0xb8] sm:$0xff]  ;;  %v3087_v62 = vld [vmem:[%s5568_s5 + $0xb0] sm:$0xff] }
 0x3a5   : > { %2446 = vmatpush.msrb.mxu1 %v3088_v8  ;;  %v3108_v50 = vld [vmem:[%s5568_s5 + $0x158] sm:$0xff]  ;;  %v2162_v8 = vpop.f32.mrf.mxu1 }
 0x3a6   : > { %v3124_v53 = vld [vmem:[%s5568_s5 + $0x1d8] sm:$0xff]  ;;  %2480 = vmatpush.msra.mxu2 %v3108_v50  ;;  %v2185_v50 = vadd.f32 %v2121_v12, %v2054_v7 }
 0x3a7   : > { %2447 = vmatpush.msrb.mxu1 %v3087_v62  ;;  %v3116_v12 = vld [vmem:[%s5568_s5 + $0x198] sm:$0xff] }
 0x3a8   : > { %2481 = vmatpush.msra.mxu2 %v3107_v51  ;;  %v3120_v51 = vld [vmem:[%s5568_s5 + $0x1b8] sm:$0xff] }
 0x3a9   : > { %2448 = vmatpush.msrb.mxu1 %v3086_v24 }
 0x3aa   : > { %2482 = vmatpush.msra.mxu2 %v3106_v28 }
 0x3ab   : > { %v5289_v43 = vpop.f32.mrf.mxu2  ;;  %v5291_v3 = vpop.f32.mrf.mxu3  ;;  %2449 = vmatpush.msrb.mxu1 %v3085_v17 }
 0x3ac   : > { %2483 = vmatpush.msra.mxu2 %v3105_v55 }
 0x3ad   : > { %2450 = vmatpush.msrb.mxu1 %v3084_v1 }
 0x3af   : > { %2451 = vmatpush.msrb.mxu1 %v3083_v47 }
 0x3b1   : > { %2452 = vmatpush.msrb.mxu1 %v3082_v29  ;;  %v1882_v29 = vadd.f32 %v5196_v20, %v5154_v33  ;;  %v3117_v33 = vld [vmem:[%s5568_s5 + $0x1a0] sm:$0xff] }
 0x3b3   : > { %v2005_v4 = vpop.f32.mrf.mxu2  ;;  %v2046_v19 = vpop.f32.mrf.mxu3  ;;  %v2058_v20 = vadd.f32 %v5240_v41, %v1882_v29 }
 0x3b4   : > { %v5327_v13 = vadd.f32 %v2005_v4, %v5210_v39  ;;  %v5330_v54 = vadd.f32 %v2046_v19, %v5212_v26  ;;  %v3125_v39 = vld [vmem:[%s5568_s5 + $0x1e0] sm:$0xff]  ;;  %v1917_v4 = vadd.f32 %v5190_v44, %v5120_v56 }
 0x3b5   : > { %v2381_v26 = vld [vmem:[%s5568_s5] sm:$0xff]  ;;  %2517 = vmatpush.msra.mxu3 %v3125_v39  ;;  %v3104_v39 = vld [vmem:[%s5568_s5 + $0x138] sm:$0xff] }
 0x3b6   : > { %2412 = vmatpush.msra.mxu0 %v2381_v26  ;;  %v3081_v56 = vld [vmem:[%s5568_s5 + $0x80] sm:$0xff]  ;;  %v2055_v44 = vadd.f32 %v5226_v16, %v1917_v4  ;;  %2484 = vmatpush.msra.mxu2 %v3104_v39  ;;  %v3103_v16 = vld [vmem:[%s5568_s5 + $0x130] sm:$0xff] }
 0x3b7   : > { %2518 = vmatpush.msra.mxu3 %v3124_v53  ;;  %2453 = vmatpush.msrb.mxu1 %v3081_v56 }
 0x3b8   : > { %v2186_v53 = vadd.f32 %v2162_v8, %v2055_v44  ;;  %2485 = vmatpush.msra.mxu2 %v3103_v16 }
 0x3b9   : > { %2519 = vmatpush.msra.mxu3 %v3123_v27  ;;  %v3119_v27 = vld [vmem:[%s5568_s5 + $0x1b0] sm:$0xff] }
 0x3ba   : > { %2486 = vmatpush.msra.mxu2 %v3102_v45 }
 0x3bb   : > { %v5365_v36 = vpop.f32.mrf.mxu2  ;;  %v5367_v18 = vpop.f32.mrf.mxu3  ;;  %2520 = vmatpush.msra.mxu3 %v3122_v6  ;;  %v1923_v6 = vadd.f32 %v5198_v2, %v5156_v46 }
 0x3bc   : > { %2487 = vmatpush.msra.mxu2 %v3101_v57 }
 0x3bd   : > { %2521 = vmatpush.msra.mxu3 %v3121_v40  ;;  %v2059_v46 = vadd.f32 %v5242_v10, %v1923_v6  ;;  %v3115_v10 = vld [vmem:[%s5568_s5 + $0x190] sm:$0xff] }
 0x3be   : > { %2488 = vmatpush.msra.mxu2 %v3100_v31 }
 0x3bf   : > { %2522 = vmatpush.msra.mxu3 %v3120_v51 }
 0x3c0   : > { %2489 = vmatpush.msra.mxu2 %v3099_v38 }
 0x3c1   : > { %2523 = vmatpush.msra.mxu3 %v3119_v27 }
 0x3c3   : > { %v2249_v58 = vpop.f32.mrf.mxu2  ;;  %v2290_v30 = vpop.f32.mrf.mxu3 }
 0x3c4   : > { %v2314_v19 = vadd.f32 %v2249_v58, %v2183_v60  ;;  %v2315_v42 = vadd.f32 %v2290_v30, %v2184_v59  ;;  %v2124_v60 = vpop.f32.mrf.mxu0  ;;  %v2165_v59 = vpop.f32.mrf.mxu1 }
 0x3c5   : > { %v2187_v30 = vadd.f32 %v2124_v60, %v5230_v63  ;;  %v2188_v28 = vadd.f32 %v2165_v59, %v5232_v22  ;;  %v3118_v63 = vld [vmem:[%s5568_s5 + $0x1a8] sm:$0xff]  ;;  %v3097_v22 = vld [vmem:[%s5568_s5 + $0x100] sm:$0xff] }
 0x3c6   : > { %v2336_v37 = vadd.f32 %v5390_v11, %v2314_v19  ;;  %v2337_v14 = vadd.f32 %v5392_v48, %v2315_v42  ;;  %v3098_v42 = vld [vmem:[%s5568_s5 + $0x108] sm:$0xff]  ;;  %2524 = vmatpush.msra.mxu3 %v3118_v63 }
 0x3c7   : > { %2490 = vmatpush.msra.mxu2 %v3098_v42 }
 0x3c8   : > { %v2352_v26 = vmax.f32 %v2336_v37, 0.0  ;;  %v2353_v0 = vmax.f32 %v2337_v14, 0.0  ;;  %2525 = vmatpush.msra.mxu3 %v3117_v33 }
 0x3c9   : > { %2491 = vmatpush.msra.mxu2 %v3097_v22 }
 0x3ca   : > { %v2368_v62 = vmax.f32 %v2352_v26, %v2353_v0  ;;  %2526 = vmatpush.msra.mxu3 %v3116_v12 }
 0x3cb   : > { %v2252_v24 = vpop.f32.mrf.mxu2  ;;  %v2293_v32 = vpop.f32.mrf.mxu3 }
 0x3cc   : > { %v2316_v17 = vadd.f32 %v2252_v24, %v2185_v50  ;;  %v2317_v52 = vadd.f32 %v2293_v32, %v2186_v53  ;;  %v2127_v14 = vpop.f32.mrf.mxu0  ;;  %v2168_v39 = vpop.f32.mrf.mxu1  ;;  %2527 = vmatpush.msra.mxu3 %v3115_v10 }
 0x3cd   : > { %v2189_v41 = vadd.f32 %v2127_v14, %v2058_v20  ;;  %v2190_v0 = vadd.f32 %v2168_v39, %v2059_v46 }
 0x3ce   : > { %v2338_v35 = vadd.f32 %v5390_v11, %v2316_v17  ;;  %v2339_v1 = vadd.f32 %v5392_v48, %v2317_v52 }
 0x3d0   : > { %v2354_v34 = vmax.f32 %v2338_v35, 0.0  ;;  %v2355_v47 = vmax.f32 %v2339_v1, 0.0  ;;  %v1888_v35 = vadd.f32 %v5204_v25, %v5172_v21 }
 0x3d2   : > { %v2369_v58 = vmax.f32 %v2354_v34, %v2355_v47  ;;  %v3114_v34 = vld [vmem:[%s5568_s5 + $0x188] sm:$0xff]  ;;  %v1929_v47 = vadd.f32 %v5206_v23, %v5174_v9 }
 0x3d3   : > { %v2255_v4 = vpop.f32.mrf.mxu2  ;;  %v2296_v19 = vpop.f32.mrf.mxu3  ;;  %2528 = vmatpush.msra.mxu3 %v3114_v34 }
 0x3d4   : > { %v2376_v55 = vmax.f32 %v2368_v62, %v2369_v58  ;;  %v2318_v40 = vadd.f32 %v2255_v4, %v2187_v30  ;;  %v2319_v7 = vadd.f32 %v2296_v19, %v2188_v28  ;;  %v2130_v32 = vpop.f32.mrf.mxu0  ;;  %v2171_v45 = vpop.f32.mrf.mxu1  ;;  %v2063_v21 = vadd.f32 %v5291_v3, %v1929_v47 }
 0x3d5   : > { %v2191_v52 = vadd.f32 %v2130_v32, %v5261_v5  ;;  %v2192_v57 = vadd.f32 %v2171_v45, %v5263_v61  ;;  %v3113_v5 = vld [vmem:[%s5568_s5 + $0x180] sm:$0xff]  ;;  %v2062_v61 = vadd.f32 %v5289_v43, %v1888_v35  ;;  %v2536_v35 = vld [vmem:[%s5570_s7 + $0x8] sm:$0xff] }
 0x3d6   : > { %v2340_v2 = vadd.f32 %v5390_v11, %v2318_v40  ;;  %v2341_v56 = vadd.f32 %v5392_v48, %v2319_v7  ;;  %2413 = vmatmul.f32.vlgmr.msra.gmra.mxu0 %v2376_v55  ;;  %2529 = vmatpush.msra.mxu3 %v3113_v5 }
 0x3d8   : > { %v2356_v44 = vmax.f32 %v2340_v2, 0.0  ;;  %v2357_v37 = vmax.f32 %v2341_v56, 0.0 }
 0x3da   : > { %v2370_v26 = vmax.f32 %v2356_v44, %v2357_v37 }
 0x3db   : > { %v2258_v8 = vpop.f32.mrf.mxu2  ;;  %v2299_v16 = vpop.f32.mrf.mxu3 }
 0x3dc   : > { %v2320_v62 = vadd.f32 %v2258_v8, %v2189_v41  ;;  %v2321_v50 = vadd.f32 %v2299_v16, %v2190_v0  ;;  %v2133_v23 = vpop.f32.mrf.mxu0  ;;  %v2174_v28 = vpop.f32.mrf.mxu1  ;;  %v2067_v41 = vadd.f32 %v5367_v18, %v5218_v15 }
 0x3dd   : > { %v2193_v4 = vadd.f32 %v2133_v23, %v2062_v61  ;;  %v2194_v19 = vadd.f32 %v2174_v28, %v2063_v21 }
 0x3de   : > { %v2342_v53 = vadd.f32 %v5390_v11, %v2320_v62  ;;  %v2343_v51 = vadd.f32 %v5392_v48, %v2321_v50 }
 0x3e0   : > { %v2358_v27 = vmax.f32 %v2342_v53, 0.0  ;;  %v2359_v24 = vmax.f32 %v2343_v51, 0.0 }
 0x3e2   : > { %v2371_v17 = vmax.f32 %v2358_v27, %v2359_v24 }
 0x3e3   : > { %v2261_v1 = vpop.f32.mrf.mxu2  ;;  %v2302_v31 = vpop.f32.mrf.mxu3 }
 0x3e4   : > { %v2377_v60 = vmax.f32 %v2370_v26, %v2371_v17  ;;  %v2322_v59 = vadd.f32 %v2261_v1, %v2191_v52  ;;  %v2323_v38 = vadd.f32 %v2302_v31, %v2192_v57  ;;  %v2136_v33 = vpop.f32.mrf.mxu0  ;;  %v2177_v20 = vpop.f32.mrf.mxu1  ;;  %v2066_v26 = vadd.f32 %v5365_v36, %v5216_v49  ;;  %v2541_v17 = vld [vmem:[%s5570_s7 + $0x30] sm:$0x3]  ;;  %v2540_v52 = vld [vmem:[%s5570_s7 + $0x28] sm:$0xff]  ;;  %v2535_v1 = vld [vmem:[%s5570_s7] sm:$0xff] }
 0x3e5   : > { %v2195_v46 = vadd.f32 %v2136_v33, %v5327_v13  ;;  %v2196_v2 = vadd.f32 %v2177_v20, %v5330_v54  ;;  %3129 = vmatpush.msk.msrb.mxu0 %vm2550_vm2, %v2541_v17  ;;  %v2537_v57 = vld [vmem:[%s5570_s7 + $0x10] sm:$0xff]  ;;  %v3189_v31 = vld [vmem:[%s5569_s6] ss:$0 sm:$0xff] }
 0x3e6   : > { %v2344_v25 = vadd.f32 %v5390_v11, %v2322_v59  ;;  %v2345_v58 = vadd.f32 %v5392_v48, %v2323_v38  ;;  %2454 = vmatmul.f32.vlgmr.msrb.gmra.mxu1 %v2377_v60 }
 0x3e7   : > { %2564 = vmatpush.msrb.mxu0 %v2540_v52 }
 0x3e8   : > { %v2360_v30 = vmax.f32 %v2344_v25, 0.0  ;;  %v2361_v9 = vmax.f32 %v2345_v58, 0.0  ;;  %v3190_v25 = vld [vmem:[%s5571_s8] ss:$0 sm:$0xff] }
 0x3ea   : > { %v2372_v29 = vmax.f32 %v2360_v30, %v2361_v9 }
 0x3eb   : > { %v2264_v42 = vpop.f32.mrf.mxu2  ;;  %v2305_v6 = vpop.f32.mrf.mxu3 }
 0x3ec   : > { %v2324_v55 = vadd.f32 %v2264_v42, %v2193_v4  ;;  %v2325_v40 = vadd.f32 %v2305_v6, %v2194_v19  ;;  %v2139_v8 = vpop.f32.mrf.mxu0  ;;  %v2180_v54 = vpop.f32.mrf.mxu1 }
 0x3ed   : > { %v2197_v62 = vadd.f32 %v2139_v8, %v2066_v26  ;;  %v2198_v50 = vadd.f32 %v2180_v54, %v2067_v41 }
 0x3ee   : > { %v2346_v43 = vadd.f32 %v5390_v11, %v2324_v55  ;;  %v2347_v3 = vadd.f32 %v5392_v48, %v2325_v40 }
 0x3f0   : > { %v2362_v7 = vmax.f32 %v2346_v43, 0.0  ;;  %v2363_v63 = vmax.f32 %v2347_v3, 0.0 }
 0x3f2   : > { %v2373_v22 = vmax.f32 %v2362_v7, %v2363_v63 }
 0x3f3   : > { %v2267_v56 = vpop.f32.mrf.mxu2  ;;  %v2308_v44 = vpop.f32.mrf.mxu3 }
 0x3f4   : > { %v2378_v37 = vmax.f32 %v2372_v29, %v2373_v22  ;;  %v2326_v14 = vadd.f32 %v2267_v56, %v2195_v46  ;;  %v2327_v39 = vadd.f32 %v2308_v44, %v2196_v2 }
 0x3f6   : > { %v2348_v0 = vadd.f32 %v5390_v11, %v2326_v14  ;;  %v2349_v12 = vadd.f32 %v5392_v48, %v2327_v39  ;;  %2492 = vmatmul.f32.vlgmr.msra.gmra.mxu2 %v2378_v37 }
 0x3f8   : > { %v2364_v10 = vmax.f32 %v2348_v0, 0.0  ;;  %v2365_v13 = vmax.f32 %v2349_v12, 0.0 }
 0x3fa   : > { %v2374_v16 = vmax.f32 %v2364_v10, %v2365_v13 }
 0x3fb   : > { %v2270_v53 = vpop.f32.mrf.mxu2  ;;  %v2311_v51 = vpop.f32.mrf.mxu3 }
 0x3fc   : > { %v2328_v27 = vadd.f32 %v2270_v53, %v2197_v62  ;;  %v2329_v24 = vadd.f32 %v2311_v51, %v2198_v50 }
 0x3fe   : > { %v2350_v49 = vadd.f32 %v5390_v11, %v2328_v27  ;;  %v2351_v15 = vadd.f32 %v5392_v48, %v2329_v24  ;;  %v2539_v11 = vld [vmem:[%s5570_s7 + $0x20] sm:$0xff]  ;;  %v2538_v48 = vld [vmem:[%s5570_s7 + $0x18] sm:$0xff] }
 0x3ff   : > { %2565 = vmatpush.msrb.mxu0 %v2539_v11 }
 0x400   : > { %v2366_v36 = vmax.f32 %v2350_v49, 0.0  ;;  %v2367_v18 = vmax.f32 %v2351_v15, 0.0 }
 0x401   : > { %2566 = vmatpush.msrb.mxu0 %v2538_v48 }
 0x402   : > { %v2375_v32 = vmax.f32 %v2366_v36, %v2367_v18 }
 0x403   : > { %2567 = vmatpush.msrb.mxu0 %v2537_v57 }
 0x404   : > { %v2379_v45 = vmax.f32 %v2374_v16, %v2375_v32 }
 0x405   : > { %2568 = vmatpush.msrb.mxu0 %v2536_v35 }
 0x406   : > { %2530 = vmatmul.f32.vlgmr.msra.gmra.mxu3 %v2379_v45 }
 0x407   : > { %2569 = vmatpush.msrb.mxu0 %v2535_v1 }
 0x453   : > { %v2414_v34 = vpop.f32.mrf.mxu0 }
 0x454   : > { %v2420_v60 = vadd.f32 %v3189_v31, %v2414_v34 }
 0x463   : > { %v2455_v47 = vpop.f32.mrf.mxu1 }
 0x464   : > { %v2458_v38 = vadd.f32 %v2455_v47, %v2420_v60 }
 0x479   : > { %v2493_v59 = vpop.f32.mrf.mxu2 }
 0x47a   : > { %v2496_v5 = vadd.f32 %v2493_v59, %v2458_v38 }
 0x489   : > { %v2531_v61 = vpop.f32.mrf.mxu3 }
 0x48a   : > { %v2534_v21 = vadd.f32 %v2531_v61, %v2496_v5 }
 0x48c   : > { %3130 = vmatmul.msk.f32.vlgmr.msrb.gmra.mxu0 %vm2546_vm3, %v2534_v21 }
 0x509   : > { %v2571_v58 = vpop.f32.mrf.mxu0 }
 0x50a   : > { %v2572_v30 = vadd.f32 %v3190_v25, %v2571_v58 }
 0x50c   : > { %2575 = vst.msk [vmem:[%s341_s28] sm:$0xff] %vm2574_vm4, %v2572_v30 }
 0x50d   : > { %3249 = shalt.err (!%p3246_p8)
}
 0x50e   : > { %3143 = dma.vmem_to_hbm [thread:$0]  (%p3379_p5), %s2590_s27, 128, %s2592_s29, %s2577_s14  }
 0x50f PF: > { %p3155_p9 = scmp.ge.s32.totalorder %s3288_s12, 2  ;;  %s2603_s21 = sand.u32 1, %s3276_s30  }
 0x510   : > { %s2604_s25 = scalar_lea.sflag [#allocation4], %s2603_s21 }
 0x511   : > { %p3150_p10 = pnand %p3155_p9, %p3383_p6 }
 0x513   : > { %p3151_p11 = pneg %p3150_p10 }
 0x515   : > { %3271 = dma.done.wait (%p3151_p11), %s2604_s25, 128  }
 0x516   : > { %3273 = vsyncadd (%p3151_p11), %s2604_s25, 4294967168  ;;  %p20_p12 = scmp.ge.s32.totalorder %s3366_s15, 4   ;;  %s5743_s30 = smov %s3280_s10 }
 0x517   : > { %s5744_s10 = smov %s3284_s11  ;;  %s5745_s11 = smov %s3377_s18 }
 0x518   : > { %s5746_s12 = smov %s3366_s15  ;;  %22 = sbr.rel (!%p20_p12) target bundleno = 6 (0x6), region = 107 }
 0x51d   :  { %2610 = vsyncpa [#allocation3], 1 }
 0x51e   :  { %2612 = vsyncpa [#allocation3 + $0x1], 1 }
 0x51f   :  { %2613 = vsyncpa [#allocation4], 1 }
 0x520   :  { %2615 = vsyncpa [#allocation4 + $0x1], 1 }

</bundles_post_ra>
